<compile_context>
chip_gen: v7x
topology: tpu7x:2x2x1
jax: 0.10.0
libtpu: 0.0.40
codegen_flags: <defaults>
</compile_context>

<pallas_src>
import functools

import jax
import jax.numpy as jnp
from jax import lax
from jax.experimental import pallas as pl
from jax.experimental.pallas import tpu as pltpu


def _round_up(x, m):
    return ((x + m - 1) // m) * m


def _warp_kernel(v_ref, img_ref, out_ref, vgrid_ref, s_ref, *, dims, in_dims):
    """One (batch, output-tile, input-chunk) grid step.

    v_ref     : (3, TP)      un-normalized sample coords (base grid + flow), x/y/z rows
    img_ref   : (C_pad, TK)  one K-chunk of the flattened input image
    out_ref   : (C_pad, TP)  warped output tile (accumulated across K)
    vgrid_ref : (3, TP)      normalized vgrid tile (module's second return value)
    s_ref     : (TK, TP)     VMEM scratch: one-hot-weighted sampling matrix chunk
    """
    D, H, W = dims
    D_in, H_in, W_in = in_dims
    tk, tp = s_ref.shape
    k_tile = pl.program_id(2)

    v = v_ref[...]                 # (3, TP)
    vx = v[0:1, :]
    vy = v[1:2, :]
    vz = v[2:3, :]

    # torch: vgrid[:, i] = 2 * (vgrid[:, i] / (shape[i] - 1) - 0.5), shape = (D, H, W).
    # Channel order is (x, y, z); channel i is divided by shape[i]-1 exactly as in the
    # original loop. NOTE: a singleton spatial dim divides by zero, same as the torch code.
    inv0 = 1.0 / (D - 1.0)
    inv1 = 1.0 / (H - 1.0)
    inv2 = 1.0 / (W - 1.0)

    # grid_sample(align_corners=True) input-pixel coords, with the normalize /
    # un-normalize round trip folded into one constant scale per axis.
    ix = vx * ((W_in - 1.0) * inv0)
    iy = vy * ((H_in - 1.0) * inv1)
    iz = vz * ((D_in - 1.0) * inv2)

    x0f = jnp.floor(ix)
    y0f = jnp.floor(iy)
    z0f = jnp.floor(iz)
    wx1 = ix - x0f
    wy1 = iy - y0f
    wz1 = iz - z0f
    x0 = x0f.astype(jnp.int32)
    y0 = y0f.astype(jnp.int32)
    z0 = z0f.astype(jnp.int32)
    flat000 = (z0 * H_in + y0) * W_in + x0          # (1, TP) int32, corner (0,0,0)

    @pl.when(k_tile == 0)
    def _init():
        out_ref[...] = jnp.zeros_like(out_ref)
        # Normalized vgrid (returned by the module); written once per output tile.
        vgrid_ref[0:1, :] = 2.0 * (vx * inv0 - 0.5)
        vgrid_ref[1:2, :] = 2.0 * (vy * inv1 - 0.5)
        vgrid_ref[2:3, :] = 2.0 * (vz * inv2 - 0.5)

    # Every corner index of every point in this tile lies inside
    # [min(flat000), max(flat000) + H_in*W_in + W_in + 1]; skip K chunks that cannot
    # overlap that band. Out-of-bounds corners only widen the band (conservative) and
    # always carry zero weight, so skipping is safe.
    k0 = k_tile * tk
    band_lo = jnp.min(flat000)
    band_hi = jnp.max(flat000) + (H_in * W_in + W_in + 1)

    @pl.when((band_hi >= k0) & (band_lo < k0 + tk))
    def _accumulate():
        s_ref[...] = jnp.zeros_like(s_ref)
        row = lax.broadcasted_iota(jnp.int32, (tk, tp), 0)   # row id within this chunk

        def corner(c, carry):
            xc = c & 1
            yc = (c >> 1) & 1
            zc = (c >> 2) & 1
            xcf = xc.astype(jnp.float32)
            ycf = yc.astype(jnp.float32)
            zcf = zc.astype(jnp.float32)
            w = ((wx1 * xcf + (1.0 - wx1) * (1.0 - xcf)) *
                 (wy1 * ycf + (1.0 - wy1) * (1.0 - ycf)) *
                 (wz1 * zcf + (1.0 - wz1) * (1.0 - zcf)))    # (1, TP) trilinear weight
            xi = x0 + xc
            yi = y0 + yc
            zi = z0 + zc
            valid = ((xi >= 0) & (xi < W_in) & (yi >= 0) & (yi < H_in) &
                     (zi >= 0) & (zi < D_in))
            w = jnp.where(valid, w, 0.0)                     # zeros padding
            flat_rel = (zi * H_in + yi) * W_in + xi - k0     # (1, TP)
            # Fused one-hot * weight: one compare + one select + one add of (TK, TP)
            # per corner (no separate float cast / full-size multiply).
            s_ref[...] += jnp.where(row == flat_rel, w, 0.0)
            return carry

        lax.fori_loop(0, 8, corner, 0, unroll=True)

        # (C_pad, TK) @ (TK, TP) on the MXU; output stays lane-dense along TP.
        out_ref[...] += jnp.dot(img_ref[...], s_ref[...],
                                preferred_element_type=jnp.float32)


def warper3d(flow, img, *, mode="bilinear", tp=512, tk=512):
    """Pallas TPU implementation of Warper3d.forward. Returns (output, vgrid)."""
    # TODO(synk): only mode='bilinear' (trilinear) grid_sample is implemented; the
    # 'nearest' variant selectable via the module's `model` arg is not provided.
    assert mode == "bilinear"

    N, three, D, H, W = flow.shape
    assert three == 3
    Ni, C, D_in, H_in, W_in = img.shape
    assert Ni == N

    P = D * H * W
    P_in = D_in * H_in * W_in

    tp = _round_up(min(int(tp), P), 128)
    tk = _round_up(min(int(tk), P_in), 128)
    P_pad = _round_up(P, tp)
    P_in_pad = _round_up(P_in, tk)
    num_p = P_pad // tp
    num_k = P_in_pad // tk
    C_pad = _round_up(C, 8)

    # Module's base sampling grid, folded into the flow on the host (this is the
    # module's own `vgrid = grid + flow` step) -> no separate base-grid HBM input.
    xx = jnp.arange(W, dtype=jnp.float32)[None, None, :]
    yy = jnp.arange(H, dtype=jnp.float32)[None, :, None]
    zz = jnp.arange(D, dtype=jnp.float32)[:, None, None]
    base = jnp.stack([jnp.broadcast_to(xx, (D, H, W)),
                      jnp.broadcast_to(yy, (D, H, W)),
                      jnp.broadcast_to(zz, (D, H, W))], axis=0).reshape(1, 3, P)
    v = base + flow.reshape(N, 3, P).astype(jnp.float32)
    v = jnp.pad(v, ((0, 0), (0, 0), (0, P_pad - P)))

    img_flat = jnp.pad(img.reshape(N, C, P_in).astype(jnp.float32),
                       ((0, 0), (0, C_pad - C), (0, P_in_pad - P_in)))

    kernel = functools.partial(_warp_kernel, dims=(D, H, W),
                               in_dims=(D_in, H_in, W_in))

    cost = pl.CostEstimate(
        flops=2 * N * C_pad * P_in_pad * P_pad,
        transcendentals=0,
        bytes_accessed=4 * (N * 3 * P_pad                     # coords in
                            + N * num_p * C_pad * P_in_pad    # img re-read per P tile
                            + N * C_pad * P_pad               # out
                            + N * 3 * P_pad))                 # vgrid out

    # VMEM budget: S scratch + double-buffered blocks; keep margin for v7x (64 MiB).
    vmem_bytes = 4 * (tk * tp + 2 * (C_pad * tk + C_pad * tp + 3 * tp + 3 * tp))
    vmem_limit = int(min(max(4 * vmem_bytes, 32 * 1024 * 1024), 64 * 1024 * 1024))

    out_flat, vgrid_flat = pl.pallas_call(
        kernel,
        out_shape=(jax.ShapeDtypeStruct((N, C_pad, P_pad), jnp.float32),
                   jax.ShapeDtypeStruct((N, 3, P_pad), jnp.float32)),
        grid_spec=pltpu.PrefetchScalarGridSpec(
            num_scalar_prefetch=0,
            grid=(N, num_p, num_k),
            in_specs=[
                pl.BlockSpec((None, 3, tp), lambda n, p, k: (n, 0, p)),       # coords
                pl.BlockSpec((None, C_pad, tk), lambda n, p, k: (n, 0, k)),   # img chunk
            ],
            out_specs=[
                pl.BlockSpec((None, C_pad, tp), lambda n, p, k: (n, 0, p)),   # output
                pl.BlockSpec((None, 3, tp), lambda n, p, k: (n, 0, p)),       # vgrid
            ],
            scratch_shapes=[pltpu.VMEM((tk, tp), jnp.float32)],
        ),
        compiler_params=pltpu.CompilerParams(
            dimension_semantics=("parallel", "parallel", "arbitrary"),
            vmem_limit_bytes=vmem_limit),
        cost_estimate=cost,
    )(v, img_flat)

    output = out_flat[:, :C, :P].reshape(N, C, D, H, W)
    # torch returns vgrid permuted to (N, D, H, W, 3)
    vgrid = jnp.transpose(vgrid_flat[:, :, :P].reshape(N, 3, D, H, W),
                          (0, 2, 3, 4, 1))
    return output, vgrid


def _reference(flow, img):
    """Pure-JAX reference of Warper3d.forward (bilinear, align_corners=True, zeros pad)."""
    N, _, D, H, W = flow.shape
    _, C, D_in, H_in, W_in = img.shape
    xx = jnp.arange(W, dtype=jnp.float32)[None, None, None, :]
    yy = jnp.arange(H, dtype=jnp.float32)[None, None, :, None]
    zz = jnp.arange(D, dtype=jnp.float32)[None, :, None, None]
    vx = xx + flow[:, 0]
    vy = yy + flow[:, 1]
    vz = zz + flow[:, 2]
    vgrid = jnp.stack([2.0 * (vx / (D - 1.0) - 0.5),
                       2.0 * (vy / (H - 1.0) - 0.5),
                       2.0 * (vz / (W - 1.0) - 0.5)], axis=-1)
    ix = vx * (W_in - 1.0) / (D - 1.0)
    iy = vy * (H_in - 1.0) / (H - 1.0)
    iz = vz * (D_in - 1.0) / (W - 1.0)
    x0 = jnp.floor(ix); wx = ix - x0; x0 = x0.astype(jnp.int32)
    y0 = jnp.floor(iy); wy = iy - y0; y0 = y0.astype(jnp.int32)
    z0 = jnp.floor(iz); wz = iz - z0; z0 = z0.astype(jnp.int32)
    img_f = img.reshape(N, C, D_in * H_in * W_in).astype(jnp.float32)
    out = jnp.zeros((N, C, D, H, W), jnp.float32)
    for zc in (0, 1):
        for yc in (0, 1):
            for xc in (0, 1):
                xi, yi, zi = x0 + xc, y0 + yc, z0 + zc
                w = ((wx if xc else 1.0 - wx) * (wy if yc else 1.0 - wy) *
                     (wz if zc else 1.0 - wz))
                valid = ((xi >= 0) & (xi < W_in) & (yi >= 0) & (yi < H_in) &
                         (zi >= 0) & (zi < D_in))
                w = jnp.where(valid, w, 0.0)
                flat = jnp.clip((zi * H_in + yi) * W_in + xi, 0,
                                D_in * H_in * W_in - 1)
                idx = jnp.broadcast_to(flat.reshape(N, 1, -1), img_f.shape)
                vals = jnp.take_along_axis(img_f, idx, axis=2)
                out = out + w[:, None] * vals.reshape(N, C, D, H, W)
    return out, vgrid


if __name__ == "__main__":
    img_size = 8
    N, C = 2, 4
    key = jax.random.PRNGKey(0)
    k_flow, k_img = jax.random.split(key)
    flow = 2.0 * jax.random.normal(
        k_flow, (N, 3, img_size, img_size, img_size), dtype=jnp.float32)
    img = jax.random.normal(
        k_img, (N, C, img_size, img_size, img_size), dtype=jnp.float32)

    # Small tiles to exercise the P-tile / K-chunk / band-skip paths at this size.
    output, vgrid = warper3d(flow, img, mode="bilinear", tp=256, tk=256)
    jax.block_until_ready((output, vgrid))

    assert output.shape == (N, C, img_size, img_size, img_size)
    assert vgrid.shape == (N, img_size, img_size, img_size, 3)

    ref_out, ref_vgrid = _reference(flow, img)
    vgrid_err = float(jnp.max(jnp.abs(vgrid - ref_vgrid)))
    out_err = float(jnp.max(jnp.abs(output - ref_out)))
    assert vgrid_err < 1e-4, f"vgrid mismatch: max |diff| = {vgrid_err}"
    assert out_err < 5e-2, f"output mismatch: max |diff| = {out_err}"

    print("KERNEL_OK")
</pallas_src>

<mosaic_0001>
module attributes {stable_mosaic.version = 11 : i64} {
  func.func @_warp_kernel(%arg0: i32, %arg1: i32, %arg2: i32, %arg3: memref<1x3x256xf32, #tpu.memory_space<vmem>>, %arg4: memref<1x8x256xf32, #tpu.memory_space<vmem>>, %arg5: memref<1x8x256xf32, #tpu.memory_space<vmem>>, %arg6: memref<1x3x256xf32, #tpu.memory_space<vmem>>, %arg7: memref<256x256xf32, #tpu.memory_space<vmem>>) attributes {dimension_semantics = [#tpu.dimension_semantics<parallel>, #tpu.dimension_semantics<parallel>, #tpu.dimension_semantics<arbitrary>], iteration_bounds = array<i64: 2, 2, 2>, scalar_prefetch = 0 : i64, scratch_operands = 1 : i64, tpu.core_type = #tpu.core_type<tc>, window_params = [{transform_indices = @transform_0, window_bounds = array<i64: 1, 3, 256>}, {transform_indices = @transform_1, window_bounds = array<i64: 1, 8, 256>}, {transform_indices = @transform_2, window_bounds = array<i64: 1, 8, 256>}, {transform_indices = @transform_3, window_bounds = array<i64: 1, 3, 256>}]} {
    %c0 = arith.constant 0 : index
    %c0_0 = arith.constant 0 : index
    %c0_1 = arith.constant 0 : index
    %0 = vector.load %arg3[%c0, %c0_0, %c0_1] : memref<1x3x256xf32, #tpu.memory_space<vmem>>, vector<1x3x256xf32>
    %1 = vector.shape_cast %0 : vector<1x3x256xf32> to vector<3x256xf32>
    %2 = vector.extract_strided_slice %1 {offsets = [0, 0], sizes = [1, 256], strides = [1, 1]} : vector<3x256xf32> to vector<1x256xf32>
    %3 = vector.extract_strided_slice %1 {offsets = [1, 0], sizes = [1, 256], strides = [1, 1]} : vector<3x256xf32> to vector<1x256xf32>
    %4 = vector.extract_strided_slice %1 {offsets = [2, 0], sizes = [1, 256], strides = [1, 1]} : vector<3x256xf32> to vector<1x256xf32>
    %cst = arith.constant 1.000000e+00 : f32
    %5 = vector.broadcast %cst : f32 to vector<1x256xf32>
    %6 = arith.mulf %2, %5 : vector<1x256xf32>
    %cst_2 = arith.constant 1.000000e+00 : f32
    %7 = vector.broadcast %cst_2 : f32 to vector<1x256xf32>
    %8 = arith.mulf %3, %7 : vector<1x256xf32>
    %cst_3 = arith.constant 1.000000e+00 : f32
    %9 = vector.broadcast %cst_3 : f32 to vector<1x256xf32>
    %10 = arith.mulf %4, %9 : vector<1x256xf32>
    %11 = math.floor %6 : vector<1x256xf32>
    %12 = math.floor %8 : vector<1x256xf32>
    %13 = math.floor %10 : vector<1x256xf32>
    %14 = arith.subf %6, %11 : vector<1x256xf32>
    %15 = arith.subf %8, %12 : vector<1x256xf32>
    %16 = arith.subf %10, %13 : vector<1x256xf32>
    %17 = arith.fptosi %11 : vector<1x256xf32> to vector<1x256xi32>
    %18 = arith.fptosi %12 : vector<1x256xf32> to vector<1x256xi32>
    %19 = arith.fptosi %13 : vector<1x256xf32> to vector<1x256xi32>
    %c8_i32 = arith.constant 8 : i32
    %20 = vector.broadcast %c8_i32 : i32 to vector<1x256xi32>
    %21 = arith.muli %19, %20 : vector<1x256xi32>
    %22 = arith.addi %21, %18 : vector<1x256xi32>
    %c8_i32_4 = arith.constant 8 : i32
    %23 = vector.broadcast %c8_i32_4 : i32 to vector<1x256xi32>
    %24 = arith.muli %22, %23 : vector<1x256xi32>
    %25 = arith.addi %24, %17 : vector<1x256xi32>
    %c0_i32 = arith.constant 0 : i32
    %26 = arith.cmpi eq, %arg2, %c0_i32 : i32
    %27 = arith.extui %26 : i1 to i32
    %c0_i32_5 = arith.constant 0 : i32
    %28 = arith.cmpi ne, %27, %c0_i32_5 : i32
    scf.if %28 {
      %cst_10 = arith.constant 0.000000e+00 : f32
      %45 = vector.broadcast %cst_10 : f32 to vector<8x256xf32>
      %c0_11 = arith.constant 0 : index
      %c0_12 = arith.constant 0 : index
      %c0_13 = arith.constant 0 : index
      %46 = vector.load %arg5[%c0_11, %c0_12, %c0_13] : memref<1x8x256xf32, #tpu.memory_space<vmem>>, vector<1x8x256xf32>
      %47 = vector.shape_cast %46 : vector<1x8x256xf32> to vector<8x256xf32>
      %48 = vector.shape_cast %45 : vector<8x256xf32> to vector<1x8x256xf32>
      tpu.vector_store %arg5[%c0_11, %c0_12, %c0_13], %48 {strides = array<i32>} : memref<1x8x256xf32, #tpu.memory_space<vmem>>, vector<1x8x256xf32>,
      %cst_14 = arith.constant 0.142857149 : f32
      %49 = vector.broadcast %cst_14 : f32 to vector<1x256xf32>
      %50 = arith.mulf %2, %49 : vector<1x256xf32>
      %cst_15 = arith.constant 5.000000e-01 : f32
      %51 = vector.broadcast %cst_15 : f32 to vector<1x256xf32>
      %52 = arith.subf %50, %51 : vector<1x256xf32>
      %cst_16 = arith.constant 2.000000e+00 : f32
      %53 = vector.broadcast %cst_16 : f32 to vector<1x256xf32>
      %54 = arith.mulf %53, %52 : vector<1x256xf32>
      %c0_17 = arith.constant 0 : index
      %c0_18 = arith.constant 0 : index
      %c0_19 = arith.constant 0 : index
      %55 = vector.load %arg6[%c0_17, %c0_18, %c0_19] : memref<1x3x256xf32, #tpu.memory_space<vmem>>, vector<1x1x256xf32>
      %56 = vector.shape_cast %55 : vector<1x1x256xf32> to vector<1x256xf32>
      %57 = vector.shape_cast %54 : vector<1x256xf32> to vector<1x1x256xf32>
      tpu.vector_store %arg6[%c0_17, %c0_18, %c0_19], %57 {strides = array<i32>} : memref<1x3x256xf32, #tpu.memory_space<vmem>>, vector<1x1x256xf32>,
      %cst_20 = arith.constant 0.142857149 : f32
      %58 = vector.broadcast %cst_20 : f32 to vector<1x256xf32>
      %59 = arith.mulf %3, %58 : vector<1x256xf32>
      %cst_21 = arith.constant 5.000000e-01 : f32
      %60 = vector.broadcast %cst_21 : f32 to vector<1x256xf32>
      %61 = arith.subf %59, %60 : vector<1x256xf32>
      %cst_22 = arith.constant 2.000000e+00 : f32
      %62 = vector.broadcast %cst_22 : f32 to vector<1x256xf32>
      %63 = arith.mulf %62, %61 : vector<1x256xf32>
      %c0_23 = arith.constant 0 : index
      %c1 = arith.constant 1 : index
      %c0_24 = arith.constant 0 : index
      %64 = vector.load %arg6[%c0_23, %c1, %c0_24] : memref<1x3x256xf32, #tpu.memory_space<vmem>>, vector<1x1x256xf32>
      %65 = vector.shape_cast %64 : vector<1x1x256xf32> to vector<1x256xf32>
      %66 = vector.shape_cast %63 : vector<1x256xf32> to vector<1x1x256xf32>
      tpu.vector_store %arg6[%c0_23, %c1, %c0_24], %66 {strides = array<i32>} : memref<1x3x256xf32, #tpu.memory_space<vmem>>, vector<1x1x256xf32>,
      %cst_25 = arith.constant 0.142857149 : f32
      %67 = vector.broadcast %cst_25 : f32 to vector<1x256xf32>
      %68 = arith.mulf %4, %67 : vector<1x256xf32>
      %cst_26 = arith.constant 5.000000e-01 : f32
      %69 = vector.broadcast %cst_26 : f32 to vector<1x256xf32>
      %70 = arith.subf %68, %69 : vector<1x256xf32>
      %cst_27 = arith.constant 2.000000e+00 : f32
      %71 = vector.broadcast %cst_27 : f32 to vector<1x256xf32>
      %72 = arith.mulf %71, %70 : vector<1x256xf32>
      %c0_28 = arith.constant 0 : index
      %c2 = arith.constant 2 : index
      %c0_29 = arith.constant 0 : index
      %73 = vector.load %arg6[%c0_28, %c2, %c0_29] : memref<1x3x256xf32, #tpu.memory_space<vmem>>, vector<1x1x256xf32>
      %74 = vector.shape_cast %73 : vector<1x1x256xf32> to vector<1x256xf32>
      %75 = vector.shape_cast %72 : vector<1x256xf32> to vector<1x1x256xf32>
      tpu.vector_store %arg6[%c0_28, %c2, %c0_29], %75 {strides = array<i32>} : memref<1x3x256xf32, #tpu.memory_space<vmem>>, vector<1x1x256xf32>,
    } else {
    }
    %c256_i32 = arith.constant 256 : i32
    %29 = arith.muli %arg2, %c256_i32 : i32
    %30 = vector.shape_cast %25 : vector<1x256xi32> to vector<1x1x256xi32>
    %cst_6 = arith.constant dense<2147483647> : vector<1xi32>
    %31 = vector.multi_reduction <minsi>, %30, %cst_6 [1, 2] : vector<1x1x256xi32> to vector<1xi32>
    %32 = vector.shape_cast %31 : vector<1xi32> to vector<1x1x1xi32>
    %33 = vector.extract %32[0, 0, 0] : i32 from vector<1x1x1xi32>
    %34 = vector.shape_cast %25 : vector<1x256xi32> to vector<1x1x256xi32>
    %cst_7 = arith.constant dense<-2147483648> : vector<1xi32>
    %35 = vector.multi_reduction <maxsi>, %34, %cst_7 [1, 2] : vector<1x1x256xi32> to vector<1xi32>
    %36 = vector.shape_cast %35 : vector<1xi32> to vector<1x1x1xi32>
    %37 = vector.extract %36[0, 0, 0] : i32 from vector<1x1x1xi32>
    %c73_i32 = arith.constant 73 : i32
    %38 = arith.addi %37, %c73_i32 : i32
    %39 = arith.cmpi sge, %38, %29 : i32
    %c256_i32_8 = arith.constant 256 : i32
    %40 = arith.addi %29, %c256_i32_8 : i32
    %41 = arith.cmpi slt, %33, %40 : i32
    %42 = arith.andi %39, %41 : i1
    %43 = arith.extui %42 : i1 to i32
    %c0_i32_9 = arith.constant 0 : i32
    %44 = arith.cmpi ne, %43, %c0_i32_9 : i32
    scf.if %44 {
      %cst_10 = arith.constant 0.000000e+00 : f32
      %45 = vector.broadcast %cst_10 : f32 to vector<256x256xf32>
      %c0_11 = arith.constant 0 : index
      %c0_12 = arith.constant 0 : index
      %46 = vector.load %arg7[%c0_11, %c0_12] : memref<256x256xf32, #tpu.memory_space<vmem>>, vector<256x256xf32>
      tpu.vector_store %arg7[%c0_11, %c0_12], %45 {strides = array<i32>} : memref<256x256xf32, #tpu.memory_space<vmem>>, vector<256x256xf32>,
      %47 = tpu.iota {dimensions = array<i32: 0>} : vector<256x256xi32>
      %c0_i32_13 = arith.constant 0 : i32
      %c1_i32 = arith.constant 1 : i32
      %48 = arith.andi %c0_i32_13, %c1_i32 : i32
      %c1_i32_14 = arith.constant 1 : i32
      %49 = arith.shrsi %c0_i32_13, %c1_i32_14 : i32
      %c1_i32_15 = arith.constant 1 : i32
      %50 = arith.andi %49, %c1_i32_15 : i32
      %c2_i32 = arith.constant 2 : i32
      %51 = arith.shrsi %c0_i32_13, %c2_i32 : i32
      %c1_i32_16 = arith.constant 1 : i32
      %52 = arith.andi %51, %c1_i32_16 : i32
      %53 = arith.sitofp %48 : i32 to f32
      %54 = arith.sitofp %50 : i32 to f32
      %55 = arith.sitofp %52 : i32 to f32
      %56 = vector.broadcast %53 : f32 to vector<1x256xf32>
      %57 = arith.mulf %14, %56 : vector<1x256xf32>
      %cst_17 = arith.constant 1.000000e+00 : f32
      %58 = vector.broadcast %cst_17 : f32 to vector<1x256xf32>
      %59 = arith.subf %58, %14 : vector<1x256xf32>
      %cst_18 = arith.constant 1.000000e+00 : f32
      %60 = arith.subf %cst_18, %53 : f32
      %61 = vector.broadcast %60 : f32 to vector<1x256xf32>
      %62 = arith.mulf %59, %61 : vector<1x256xf32>
      %63 = arith.addf %57, %62 : vector<1x256xf32>
      %64 = vector.broadcast %54 : f32 to vector<1x256xf32>
      %65 = arith.mulf %15, %64 : vector<1x256xf32>
      %cst_19 = arith.constant 1.000000e+00 : f32
      %66 = vector.broadcast %cst_19 : f32 to vector<1x256xf32>
      %67 = arith.subf %66, %15 : vector<1x256xf32>
      %cst_20 = arith.constant 1.000000e+00 : f32
      %68 = arith.subf %cst_20, %54 : f32
      %69 = vector.broadcast %68 : f32 to vector<1x256xf32>
      %70 = arith.mulf %67, %69 : vector<1x256xf32>
      %71 = arith.addf %65, %70 : vector<1x256xf32>
      %72 = arith.mulf %63, %71 : vector<1x256xf32>
      %73 = vector.broadcast %55 : f32 to vector<1x256xf32>
      %74 = arith.mulf %16, %73 : vector<1x256xf32>
      %cst_21 = arith.constant 1.000000e+00 : f32
      %75 = vector.broadcast %cst_21 : f32 to vector<1x256xf32>
      %76 = arith.subf %75, %16 : vector<1x256xf32>
      %cst_22 = arith.constant 1.000000e+00 : f32
      %77 = arith.subf %cst_22, %55 : f32
      %78 = vector.broadcast %77 : f32 to vector<1x256xf32>
      %79 = arith.mulf %76, %78 : vector<1x256xf32>
      %80 = arith.addf %74, %79 : vector<1x256xf32>
      %81 = arith.mulf %72, %80 : vector<1x256xf32>
      %82 = vector.broadcast %48 : i32 to vector<1x256xi32>
      %83 = arith.addi %17, %82 : vector<1x256xi32>
      %84 = vector.broadcast %50 : i32 to vector<1x256xi32>
      %85 = arith.addi %18, %84 : vector<1x256xi32>
      %86 = vector.broadcast %52 : i32 to vector<1x256xi32>
      %87 = arith.addi %19, %86 : vector<1x256xi32>
      %c0_i32_23 = arith.constant 0 : i32
      %88 = vector.broadcast %c0_i32_23 : i32 to vector<1x256xi32>
      %89 = arith.cmpi sge, %83, %88 : vector<1x256xi32>
      %c8_i32_24 = arith.constant 8 : i32
      %90 = vector.broadcast %c8_i32_24 : i32 to vector<1x256xi32>
      %91 = arith.cmpi slt, %83, %90 : vector<1x256xi32>
      %92 = arith.andi %89, %91 : vector<1x256xi1>
      %c0_i32_25 = arith.constant 0 : i32
      %93 = vector.broadcast %c0_i32_25 : i32 to vector<1x256xi32>
      %94 = arith.cmpi sge, %85, %93 : vector<1x256xi32>
      %95 = arith.andi %92, %94 : vector<1x256xi1>
      %c8_i32_26 = arith.constant 8 : i32
      %96 = vector.broadcast %c8_i32_26 : i32 to vector<1x256xi32>
      %97 = arith.cmpi slt, %85, %96 : vector<1x256xi32>
      %98 = arith.andi %95, %97 : vector<1x256xi1>
      %c0_i32_27 = arith.constant 0 : i32
      %99 = vector.broadcast %c0_i32_27 : i32 to vector<1x256xi32>
      %100 = arith.cmpi sge, %87, %99 : vector<1x256xi32>
      %101 = arith.andi %98, %100 : vector<1x256xi1>
      %c8_i32_28 = arith.constant 8 : i32
      %102 = vector.broadcast %c8_i32_28 : i32 to vector<1x256xi32>
      %103 = arith.cmpi slt, %87, %102 : vector<1x256xi32>
      %104 = arith.andi %101, %103 : vector<1x256xi1>
      %cst_29 = arith.constant 0.000000e+00 : f32
      %105 = vector.broadcast %cst_29 : f32 to vector<1x256xf32>
      %106 = arith.select %104, %81, %105 : vector<1x256xi1>, vector<1x256xf32>
      %c8_i32_30 = arith.constant 8 : i32
      %107 = vector.broadcast %c8_i32_30 : i32 to vector<1x256xi32>
      %108 = arith.muli %87, %107 : vector<1x256xi32>
      %109 = arith.addi %108, %85 : vector<1x256xi32>
      %c8_i32_31 = arith.constant 8 : i32
      %110 = vector.broadcast %c8_i32_31 : i32 to vector<1x256xi32>
      %111 = arith.muli %109, %110 : vector<1x256xi32>
      %112 = arith.addi %111, %83 : vector<1x256xi32>
      %113 = vector.broadcast %29 : i32 to vector<1x256xi32>
      %114 = arith.subi %112, %113 : vector<1x256xi32>
      %c0_32 = arith.constant 0 : index
      %c0_33 = arith.constant 0 : index
      %115 = vector.load %arg7[%c0_32, %c0_33] : memref<256x256xf32, #tpu.memory_space<vmem>>, vector<256x256xf32>
      %116 = vector.broadcast %114 : vector<1x256xi32> to vector<256x256xi32>
      %117 = arith.cmpi eq, %47, %116 : vector<256x256xi32>
      %cst_34 = arith.constant 0.000000e+00 : f32
      %118 = vector.shape_cast %106 : vector<1x256xf32> to vector<1x256xf32>
      %119 = vector.broadcast %118 : vector<1x256xf32> to vector<256x256xf32>
      %120 = vector.broadcast %cst_34 : f32 to vector<256x256xf32>
      %121 = arith.select %117, %119, %120 : vector<256x256xi1>, vector<256x256xf32>
      %122 = arith.addf %115, %121 : vector<256x256xf32>
      %c0_35 = arith.constant 0 : index
      %c0_36 = arith.constant 0 : index
      %123 = vector.load %arg7[%c0_35, %c0_36] : memref<256x256xf32, #tpu.memory_space<vmem>>, vector<256x256xf32>
      tpu.vector_store %arg7[%c0_35, %c0_36], %122 {strides = array<i32>} : memref<256x256xf32, #tpu.memory_space<vmem>>, vector<256x256xf32>,
      %c1_i32_37 = arith.constant 1 : i32
      %c1_i32_38 = arith.constant 1 : i32
      %124 = arith.andi %c1_i32_37, %c1_i32_38 : i32
      %c1_i32_39 = arith.constant 1 : i32
      %125 = arith.shrsi %c1_i32_37, %c1_i32_39 : i32
      %c1_i32_40 = arith.constant 1 : i32
      %126 = arith.andi %125, %c1_i32_40 : i32
      %c2_i32_41 = arith.constant 2 : i32
      %127 = arith.shrsi %c1_i32_37, %c2_i32_41 : i32
      %c1_i32_42 = arith.constant 1 : i32
      %128 = arith.andi %127, %c1_i32_42 : i32
      %129 = arith.sitofp %124 : i32 to f32
      %130 = arith.sitofp %126 : i32 to f32
      %131 = arith.sitofp %128 : i32 to f32
      %132 = vector.broadcast %129 : f32 to vector<1x256xf32>
      %133 = arith.mulf %14, %132 : vector<1x256xf32>
      %cst_43 = arith.constant 1.000000e+00 : f32
      %134 = vector.broadcast %cst_43 : f32 to vector<1x256xf32>
      %135 = arith.subf %134, %14 : vector<1x256xf32>
      %cst_44 = arith.constant 1.000000e+00 : f32
      %136 = arith.subf %cst_44, %129 : f32
      %137 = vector.broadcast %136 : f32 to vector<1x256xf32>
      %138 = arith.mulf %135, %137 : vector<1x256xf32>
      %139 = arith.addf %133, %138 : vector<1x256xf32>
      %140 = vector.broadcast %130 : f32 to vector<1x256xf32>
      %141 = arith.mulf %15, %140 : vector<1x256xf32>
      %cst_45 = arith.constant 1.000000e+00 : f32
      %142 = vector.broadcast %cst_45 : f32 to vector<1x256xf32>
      %143 = arith.subf %142, %15 : vector<1x256xf32>
      %cst_46 = arith.constant 1.000000e+00 : f32
      %144 = arith.subf %cst_46, %130 : f32
      %145 = vector.broadcast %144 : f32 to vector<1x256xf32>
      %146 = arith.mulf %143, %145 : vector<1x256xf32>
      %147 = arith.addf %141, %146 : vector<1x256xf32>
      %148 = arith.mulf %139, %147 : vector<1x256xf32>
      %149 = vector.broadcast %131 : f32 to vector<1x256xf32>
      %150 = arith.mulf %16, %149 : vector<1x256xf32>
      %cst_47 = arith.constant 1.000000e+00 : f32
      %151 = vector.broadcast %cst_47 : f32 to vector<1x256xf32>
      %152 = arith.subf %151, %16 : vector<1x256xf32>
      %cst_48 = arith.constant 1.000000e+00 : f32
      %153 = arith.subf %cst_48, %131 : f32
      %154 = vector.broadcast %153 : f32 to vector<1x256xf32>
      %155 = arith.mulf %152, %154 : vector<1x256xf32>
      %156 = arith.addf %150, %155 : vector<1x256xf32>
      %157 = arith.mulf %148, %156 : vector<1x256xf32>
      %158 = vector.broadcast %124 : i32 to vector<1x256xi32>
      %159 = arith.addi %17, %158 : vector<1x256xi32>
      %160 = vector.broadcast %126 : i32 to vector<1x256xi32>
      %161 = arith.addi %18, %160 : vector<1x256xi32>
      %162 = vector.broadcast %128 : i32 to vector<1x256xi32>
      %163 = arith.addi %19, %162 : vector<1x256xi32>
      %c0_i32_49 = arith.constant 0 : i32
      %164 = vector.broadcast %c0_i32_49 : i32 to vector<1x256xi32>
      %165 = arith.cmpi sge, %159, %164 : vector<1x256xi32>
      %c8_i32_50 = arith.constant 8 : i32
      %166 = vector.broadcast %c8_i32_50 : i32 to vector<1x256xi32>
      %167 = arith.cmpi slt, %159, %166 : vector<1x256xi32>
      %168 = arith.andi %165, %167 : vector<1x256xi1>
      %c0_i32_51 = arith.constant 0 : i32
      %169 = vector.broadcast %c0_i32_51 : i32 to vector<1x256xi32>
      %170 = arith.cmpi sge, %161, %169 : vector<1x256xi32>
      %171 = arith.andi %168, %170 : vector<1x256xi1>
      %c8_i32_52 = arith.constant 8 : i32
      %172 = vector.broadcast %c8_i32_52 : i32 to vector<1x256xi32>
      %173 = arith.cmpi slt, %161, %172 : vector<1x256xi32>
      %174 = arith.andi %171, %173 : vector<1x256xi1>
      %c0_i32_53 = arith.constant 0 : i32
      %175 = vector.broadcast %c0_i32_53 : i32 to vector<1x256xi32>
      %176 = arith.cmpi sge, %163, %175 : vector<1x256xi32>
      %177 = arith.andi %174, %176 : vector<1x256xi1>
      %c8_i32_54 = arith.constant 8 : i32
      %178 = vector.broadcast %c8_i32_54 : i32 to vector<1x256xi32>
      %179 = arith.cmpi slt, %163, %178 : vector<1x256xi32>
      %180 = arith.andi %177, %179 : vector<1x256xi1>
      %cst_55 = arith.constant 0.000000e+00 : f32
      %181 = vector.broadcast %cst_55 : f32 to vector<1x256xf32>
      %182 = arith.select %180, %157, %181 : vector<1x256xi1>, vector<1x256xf32>
      %c8_i32_56 = arith.constant 8 : i32
      %183 = vector.broadcast %c8_i32_56 : i32 to vector<1x256xi32>
      %184 = arith.muli %163, %183 : vector<1x256xi32>
      %185 = arith.addi %184, %161 : vector<1x256xi32>
      %c8_i32_57 = arith.constant 8 : i32
      %186 = vector.broadcast %c8_i32_57 : i32 to vector<1x256xi32>
      %187 = arith.muli %185, %186 : vector<1x256xi32>
      %188 = arith.addi %187, %159 : vector<1x256xi32>
      %189 = vector.broadcast %29 : i32 to vector<1x256xi32>
      %190 = arith.subi %188, %189 : vector<1x256xi32>
      %c0_58 = arith.constant 0 : index
      %c0_59 = arith.constant 0 : index
      %191 = vector.load %arg7[%c0_58, %c0_59] : memref<256x256xf32, #tpu.memory_space<vmem>>, vector<256x256xf32>
      %192 = vector.broadcast %190 : vector<1x256xi32> to vector<256x256xi32>
      %193 = arith.cmpi eq, %47, %192 : vector<256x256xi32>
      %cst_60 = arith.constant 0.000000e+00 : f32
      %194 = vector.shape_cast %182 : vector<1x256xf32> to vector<1x256xf32>
      %195 = vector.broadcast %194 : vector<1x256xf32> to vector<256x256xf32>
      %196 = vector.broadcast %cst_60 : f32 to vector<256x256xf32>
      %197 = arith.select %193, %195, %196 : vector<256x256xi1>, vector<256x256xf32>
      %198 = arith.addf %191, %197 : vector<256x256xf32>
      %c0_61 = arith.constant 0 : index
      %c0_62 = arith.constant 0 : index
      %199 = vector.load %arg7[%c0_61, %c0_62] : memref<256x256xf32, #tpu.memory_space<vmem>>, vector<256x256xf32>
      tpu.vector_store %arg7[%c0_61, %c0_62], %198 {strides = array<i32>} : memref<256x256xf32, #tpu.memory_space<vmem>>, vector<256x256xf32>,
      %c2_i32_63 = arith.constant 2 : i32
      %c1_i32_64 = arith.constant 1 : i32
      %200 = arith.andi %c2_i32_63, %c1_i32_64 : i32
      %c1_i32_65 = arith.constant 1 : i32
      %201 = arith.shrsi %c2_i32_63, %c1_i32_65 : i32
      %c1_i32_66 = arith.constant 1 : i32
      %202 = arith.andi %201, %c1_i32_66 : i32
      %c2_i32_67 = arith.constant 2 : i32
      %203 = arith.shrsi %c2_i32_63, %c2_i32_67 : i32
      %c1_i32_68 = arith.constant 1 : i32
      %204 = arith.andi %203, %c1_i32_68 : i32
      %205 = arith.sitofp %200 : i32 to f32
      %206 = arith.sitofp %202 : i32 to f32
      %207 = arith.sitofp %204 : i32 to f32
      %208 = vector.broadcast %205 : f32 to vector<1x256xf32>
      %209 = arith.mulf %14, %208 : vector<1x256xf32>
      %cst_69 = arith.constant 1.000000e+00 : f32
      %210 = vector.broadcast %cst_69 : f32 to vector<1x256xf32>
      %211 = arith.subf %210, %14 : vector<1x256xf32>
      %cst_70 = arith.constant 1.000000e+00 : f32
      %212 = arith.subf %cst_70, %205 : f32
      %213 = vector.broadcast %212 : f32 to vector<1x256xf32>
      %214 = arith.mulf %211, %213 : vector<1x256xf32>
      %215 = arith.addf %209, %214 : vector<1x256xf32>
      %216 = vector.broadcast %206 : f32 to vector<1x256xf32>
      %217 = arith.mulf %15, %216 : vector<1x256xf32>
      %cst_71 = arith.constant 1.000000e+00 : f32
      %218 = vector.broadcast %cst_71 : f32 to vector<1x256xf32>
      %219 = arith.subf %218, %15 : vector<1x256xf32>
      %cst_72 = arith.constant 1.000000e+00 : f32
      %220 = arith.subf %cst_72, %206 : f32
      %221 = vector.broadcast %220 : f32 to vector<1x256xf32>
      %222 = arith.mulf %219, %221 : vector<1x256xf32>
      %223 = arith.addf %217, %222 : vector<1x256xf32>
      %224 = arith.mulf %215, %223 : vector<1x256xf32>
      %225 = vector.broadcast %207 : f32 to vector<1x256xf32>
      %226 = arith.mulf %16, %225 : vector<1x256xf32>
      %cst_73 = arith.constant 1.000000e+00 : f32
      %227 = vector.broadcast %cst_73 : f32 to vector<1x256xf32>
      %228 = arith.subf %227, %16 : vector<1x256xf32>
      %cst_74 = arith.constant 1.000000e+00 : f32
      %229 = arith.subf %cst_74, %207 : f32
      %230 = vector.broadcast %229 : f32 to vector<1x256xf32>
      %231 = arith.mulf %228, %230 : vector<1x256xf32>
      %232 = arith.addf %226, %231 : vector<1x256xf32>
      %233 = arith.mulf %224, %232 : vector<1x256xf32>
      %234 = vector.broadcast %200 : i32 to vector<1x256xi32>
      %235 = arith.addi %17, %234 : vector<1x256xi32>
      %236 = vector.broadcast %202 : i32 to vector<1x256xi32>
      %237 = arith.addi %18, %236 : vector<1x256xi32>
      %238 = vector.broadcast %204 : i32 to vector<1x256xi32>
      %239 = arith.addi %19, %238 : vector<1x256xi32>
      %c0_i32_75 = arith.constant 0 : i32
      %240 = vector.broadcast %c0_i32_75 : i32 to vector<1x256xi32>
      %241 = arith.cmpi sge, %235, %240 : vector<1x256xi32>
      %c8_i32_76 = arith.constant 8 : i32
      %242 = vector.broadcast %c8_i32_76 : i32 to vector<1x256xi32>
      %243 = arith.cmpi slt, %235, %242 : vector<1x256xi32>
      %244 = arith.andi %241, %243 : vector<1x256xi1>
      %c0_i32_77 = arith.constant 0 : i32
      %245 = vector.broadcast %c0_i32_77 : i32 to vector<1x256xi32>
      %246 = arith.cmpi sge, %237, %245 : vector<1x256xi32>
      %247 = arith.andi %244, %246 : vector<1x256xi1>
      %c8_i32_78 = arith.constant 8 : i32
      %248 = vector.broadcast %c8_i32_78 : i32 to vector<1x256xi32>
      %249 = arith.cmpi slt, %237, %248 : vector<1x256xi32>
      %250 = arith.andi %247, %249 : vector<1x256xi1>
      %c0_i32_79 = arith.constant 0 : i32
      %251 = vector.broadcast %c0_i32_79 : i32 to vector<1x256xi32>
      %252 = arith.cmpi sge, %239, %251 : vector<1x256xi32>
      %253 = arith.andi %250, %252 : vector<1x256xi1>
      %c8_i32_80 = arith.constant 8 : i32
      %254 = vector.broadcast %c8_i32_80 : i32 to vector<1x256xi32>
      %255 = arith.cmpi slt, %239, %254 : vector<1x256xi32>
      %256 = arith.andi %253, %255 : vector<1x256xi1>
      %cst_81 = arith.constant 0.000000e+00 : f32
      %257 = vector.broadcast %cst_81 : f32 to vector<1x256xf32>
      %258 = arith.select %256, %233, %257 : vector<1x256xi1>, vector<1x256xf32>
      %c8_i32_82 = arith.constant 8 : i32
      %259 = vector.broadcast %c8_i32_82 : i32 to vector<1x256xi32>
      %260 = arith.muli %239, %259 : vector<1x256xi32>
      %261 = arith.addi %260, %237 : vector<1x256xi32>
      %c8_i32_83 = arith.constant 8 : i32
      %262 = vector.broadcast %c8_i32_83 : i32 to vector<1x256xi32>
      %263 = arith.muli %261, %262 : vector<1x256xi32>
      %264 = arith.addi %263, %235 : vector<1x256xi32>
      %265 = vector.broadcast %29 : i32 to vector<1x256xi32>
      %266 = arith.subi %264, %265 : vector<1x256xi32>
      %c0_84 = arith.constant 0 : index
      %c0_85 = arith.constant 0 : index
      %267 = vector.load %arg7[%c0_84, %c0_85] : memref<256x256xf32, #tpu.memory_space<vmem>>, vector<256x256xf32>
      %268 = vector.broadcast %266 : vector<1x256xi32> to vector<256x256xi32>
      %269 = arith.cmpi eq, %47, %268 : vector<256x256xi32>
      %cst_86 = arith.constant 0.000000e+00 : f32
      %270 = vector.shape_cast %258 : vector<1x256xf32> to vector<1x256xf32>
      %271 = vector.broadcast %270 : vector<1x256xf32> to vector<256x256xf32>
      %272 = vector.broadcast %cst_86 : f32 to vector<256x256xf32>
      %273 = arith.select %269, %271, %272 : vector<256x256xi1>, vector<256x256xf32>
      %274 = arith.addf %267, %273 : vector<256x256xf32>
      %c0_87 = arith.constant 0 : index
      %c0_88 = arith.constant 0 : index
      %275 = vector.load %arg7[%c0_87, %c0_88] : memref<256x256xf32, #tpu.memory_space<vmem>>, vector<256x256xf32>
      tpu.vector_store %arg7[%c0_87, %c0_88], %274 {strides = array<i32>} : memref<256x256xf32, #tpu.memory_space<vmem>>, vector<256x256xf32>,
      %c3_i32 = arith.constant 3 : i32
      %c1_i32_89 = arith.constant 1 : i32
      %276 = arith.andi %c3_i32, %c1_i32_89 : i32
      %c1_i32_90 = arith.constant 1 : i32
      %277 = arith.shrsi %c3_i32, %c1_i32_90 : i32
      %c1_i32_91 = arith.constant 1 : i32
      %278 = arith.andi %277, %c1_i32_91 : i32
      %c2_i32_92 = arith.constant 2 : i32
      %279 = arith.shrsi %c3_i32, %c2_i32_92 : i32
      %c1_i32_93 = arith.constant 1 : i32
      %280 = arith.andi %279, %c1_i32_93 : i32
      %281 = arith.sitofp %276 : i32 to f32
      %282 = arith.sitofp %278 : i32 to f32
      %283 = arith.sitofp %280 : i32 to f32
      %284 = vector.broadcast %281 : f32 to vector<1x256xf32>
      %285 = arith.mulf %14, %284 : vector<1x256xf32>
      %cst_94 = arith.constant 1.000000e+00 : f32
      %286 = vector.broadcast %cst_94 : f32 to vector<1x256xf32>
      %287 = arith.subf %286, %14 : vector<1x256xf32>
      %cst_95 = arith.constant 1.000000e+00 : f32
      %288 = arith.subf %cst_95, %281 : f32
      %289 = vector.broadcast %288 : f32 to vector<1x256xf32>
      %290 = arith.mulf %287, %289 : vector<1x256xf32>
      %291 = arith.addf %285, %290 : vector<1x256xf32>
      %292 = vector.broadcast %282 : f32 to vector<1x256xf32>
      %293 = arith.mulf %15, %292 : vector<1x256xf32>
      %cst_96 = arith.constant 1.000000e+00 : f32
      %294 = vector.broadcast %cst_96 : f32 to vector<1x256xf32>
      %295 = arith.subf %294, %15 : vector<1x256xf32>
      %cst_97 = arith.constant 1.000000e+00 : f32
      %296 = arith.subf %cst_97, %282 : f32
      %297 = vector.broadcast %296 : f32 to vector<1x256xf32>
      %298 = arith.mulf %295, %297 : vector<1x256xf32>
      %299 = arith.addf %293, %298 : vector<1x256xf32>
      %300 = arith.mulf %291, %299 : vector<1x256xf32>
      %301 = vector.broadcast %283 : f32 to vector<1x256xf32>
      %302 = arith.mulf %16, %301 : vector<1x256xf32>
      %cst_98 = arith.constant 1.000000e+00 : f32
      %303 = vector.broadcast %cst_98 : f32 to vector<1x256xf32>
      %304 = arith.subf %303, %16 : vector<1x256xf32>
      %cst_99 = arith.constant 1.000000e+00 : f32
      %305 = arith.subf %cst_99, %283 : f32
      %306 = vector.broadcast %305 : f32 to vector<1x256xf32>
      %307 = arith.mulf %304, %306 : vector<1x256xf32>
      %308 = arith.addf %302, %307 : vector<1x256xf32>
      %309 = arith.mulf %300, %308 : vector<1x256xf32>
      %310 = vector.broadcast %276 : i32 to vector<1x256xi32>
      %311 = arith.addi %17, %310 : vector<1x256xi32>
      %312 = vector.broadcast %278 : i32 to vector<1x256xi32>
      %313 = arith.addi %18, %312 : vector<1x256xi32>
      %314 = vector.broadcast %280 : i32 to vector<1x256xi32>
      %315 = arith.addi %19, %314 : vector<1x256xi32>
      %c0_i32_100 = arith.constant 0 : i32
      %316 = vector.broadcast %c0_i32_100 : i32 to vector<1x256xi32>
      %317 = arith.cmpi sge, %311, %316 : vector<1x256xi32>
      %c8_i32_101 = arith.constant 8 : i32
      %318 = vector.broadcast %c8_i32_101 : i32 to vector<1x256xi32>
      %319 = arith.cmpi slt, %311, %318 : vector<1x256xi32>
      %320 = arith.andi %317, %319 : vector<1x256xi1>
      %c0_i32_102 = arith.constant 0 : i32
      %321 = vector.broadcast %c0_i32_102 : i32 to vector<1x256xi32>
      %322 = arith.cmpi sge, %313, %321 : vector<1x256xi32>
      %323 = arith.andi %320, %322 : vector<1x256xi1>
      %c8_i32_103 = arith.constant 8 : i32
      %324 = vector.broadcast %c8_i32_103 : i32 to vector<1x256xi32>
      %325 = arith.cmpi slt, %313, %324 : vector<1x256xi32>
      %326 = arith.andi %323, %325 : vector<1x256xi1>
      %c0_i32_104 = arith.constant 0 : i32
      %327 = vector.broadcast %c0_i32_104 : i32 to vector<1x256xi32>
      %328 = arith.cmpi sge, %315, %327 : vector<1x256xi32>
      %329 = arith.andi %326, %328 : vector<1x256xi1>
      %c8_i32_105 = arith.constant 8 : i32
      %330 = vector.broadcast %c8_i32_105 : i32 to vector<1x256xi32>
      %331 = arith.cmpi slt, %315, %330 : vector<1x256xi32>
      %332 = arith.andi %329, %331 : vector<1x256xi1>
      %cst_106 = arith.constant 0.000000e+00 : f32
      %333 = vector.broadcast %cst_106 : f32 to vector<1x256xf32>
      %334 = arith.select %332, %309, %333 : vector<1x256xi1>, vector<1x256xf32>
      %c8_i32_107 = arith.constant 8 : i32
      %335 = vector.broadcast %c8_i32_107 : i32 to vector<1x256xi32>
      %336 = arith.muli %315, %335 : vector<1x256xi32>
      %337 = arith.addi %336, %313 : vector<1x256xi32>
      %c8_i32_108 = arith.constant 8 : i32
      %338 = vector.broadcast %c8_i32_108 : i32 to vector<1x256xi32>
      %339 = arith.muli %337, %338 : vector<1x256xi32>
      %340 = arith.addi %339, %311 : vector<1x256xi32>
      %341 = vector.broadcast %29 : i32 to vector<1x256xi32>
      %342 = arith.subi %340, %341 : vector<1x256xi32>
      %c0_109 = arith.constant 0 : index
      %c0_110 = arith.constant 0 : index
      %343 = vector.load %arg7[%c0_109, %c0_110] : memref<256x256xf32, #tpu.memory_space<vmem>>, vector<256x256xf32>
      %344 = vector.broadcast %342 : vector<1x256xi32> to vector<256x256xi32>
      %345 = arith.cmpi eq, %47, %344 : vector<256x256xi32>
      %cst_111 = arith.constant 0.000000e+00 : f32
      %346 = vector.shape_cast %334 : vector<1x256xf32> to vector<1x256xf32>
      %347 = vector.broadcast %346 : vector<1x256xf32> to vector<256x256xf32>
      %348 = vector.broadcast %cst_111 : f32 to vector<256x256xf32>
      %349 = arith.select %345, %347, %348 : vector<256x256xi1>, vector<256x256xf32>
      %350 = arith.addf %343, %349 : vector<256x256xf32>
      %c0_112 = arith.constant 0 : index
      %c0_113 = arith.constant 0 : index
      %351 = vector.load %arg7[%c0_112, %c0_113] : memref<256x256xf32, #tpu.memory_space<vmem>>, vector<256x256xf32>
      tpu.vector_store %arg7[%c0_112, %c0_113], %350 {strides = array<i32>} : memref<256x256xf32, #tpu.memory_space<vmem>>, vector<256x256xf32>,
      %c4_i32 = arith.constant 4 : i32
      %c1_i32_114 = arith.constant 1 : i32
      %352 = arith.andi %c4_i32, %c1_i32_114 : i32
      %c1_i32_115 = arith.constant 1 : i32
      %353 = arith.shrsi %c4_i32, %c1_i32_115 : i32
      %c1_i32_116 = arith.constant 1 : i32
      %354 = arith.andi %353, %c1_i32_116 : i32
      %c2_i32_117 = arith.constant 2 : i32
      %355 = arith.shrsi %c4_i32, %c2_i32_117 : i32
      %c1_i32_118 = arith.constant 1 : i32
      %356 = arith.andi %355, %c1_i32_118 : i32
      %357 = arith.sitofp %352 : i32 to f32
      %358 = arith.sitofp %354 : i32 to f32
      %359 = arith.sitofp %356 : i32 to f32
      %360 = vector.broadcast %357 : f32 to vector<1x256xf32>
      %361 = arith.mulf %14, %360 : vector<1x256xf32>
      %cst_119 = arith.constant 1.000000e+00 : f32
      %362 = vector.broadcast %cst_119 : f32 to vector<1x256xf32>
      %363 = arith.subf %362, %14 : vector<1x256xf32>
      %cst_120 = arith.constant 1.000000e+00 : f32
      %364 = arith.subf %cst_120, %357 : f32
      %365 = vector.broadcast %364 : f32 to vector<1x256xf32>
      %366 = arith.mulf %363, %365 : vector<1x256xf32>
      %367 = arith.addf %361, %366 : vector<1x256xf32>
      %368 = vector.broadcast %358 : f32 to vector<1x256xf32>
      %369 = arith.mulf %15, %368 : vector<1x256xf32>
      %cst_121 = arith.constant 1.000000e+00 : f32
      %370 = vector.broadcast %cst_121 : f32 to vector<1x256xf32>
      %371 = arith.subf %370, %15 : vector<1x256xf32>
      %cst_122 = arith.constant 1.000000e+00 : f32
      %372 = arith.subf %cst_122, %358 : f32
      %373 = vector.broadcast %372 : f32 to vector<1x256xf32>
      %374 = arith.mulf %371, %373 : vector<1x256xf32>
      %375 = arith.addf %369, %374 : vector<1x256xf32>
      %376 = arith.mulf %367, %375 : vector<1x256xf32>
      %377 = vector.broadcast %359 : f32 to vector<1x256xf32>
      %378 = arith.mulf %16, %377 : vector<1x256xf32>
      %cst_123 = arith.constant 1.000000e+00 : f32
      %379 = vector.broadcast %cst_123 : f32 to vector<1x256xf32>
      %380 = arith.subf %379, %16 : vector<1x256xf32>
      %cst_124 = arith.constant 1.000000e+00 : f32
      %381 = arith.subf %cst_124, %359 : f32
      %382 = vector.broadcast %381 : f32 to vector<1x256xf32>
      %383 = arith.mulf %380, %382 : vector<1x256xf32>
      %384 = arith.addf %378, %383 : vector<1x256xf32>
      %385 = arith.mulf %376, %384 : vector<1x256xf32>
      %386 = vector.broadcast %352 : i32 to vector<1x256xi32>
      %387 = arith.addi %17, %386 : vector<1x256xi32>
      %388 = vector.broadcast %354 : i32 to vector<1x256xi32>
      %389 = arith.addi %18, %388 : vector<1x256xi32>
      %390 = vector.broadcast %356 : i32 to vector<1x256xi32>
      %391 = arith.addi %19, %390 : vector<1x256xi32>
      %c0_i32_125 = arith.constant 0 : i32
      %392 = vector.broadcast %c0_i32_125 : i32 to vector<1x256xi32>
      %393 = arith.cmpi sge, %387, %392 : vector<1x256xi32>
      %c8_i32_126 = arith.constant 8 : i32
      %394 = vector.broadcast %c8_i32_126 : i32 to vector<1x256xi32>
      %395 = arith.cmpi slt, %387, %394 : vector<1x256xi32>
      %396 = arith.andi %393, %395 : vector<1x256xi1>
      %c0_i32_127 = arith.constant 0 : i32
      %397 = vector.broadcast %c0_i32_127 : i32 to vector<1x256xi32>
      %398 = arith.cmpi sge, %389, %397 : vector<1x256xi32>
      %399 = arith.andi %396, %398 : vector<1x256xi1>
      %c8_i32_128 = arith.constant 8 : i32
      %400 = vector.broadcast %c8_i32_128 : i32 to vector<1x256xi32>
      %401 = arith.cmpi slt, %389, %400 : vector<1x256xi32>
      %402 = arith.andi %399, %401 : vector<1x256xi1>
      %c0_i32_129 = arith.constant 0 : i32
      %403 = vector.broadcast %c0_i32_129 : i32 to vector<1x256xi32>
      %404 = arith.cmpi sge, %391, %403 : vector<1x256xi32>
      %405 = arith.andi %402, %404 : vector<1x256xi1>
      %c8_i32_130 = arith.constant 8 : i32
      %406 = vector.broadcast %c8_i32_130 : i32 to vector<1x256xi32>
      %407 = arith.cmpi slt, %391, %406 : vector<1x256xi32>
      %408 = arith.andi %405, %407 : vector<1x256xi1>
      %cst_131 = arith.constant 0.000000e+00 : f32
      %409 = vector.broadcast %cst_131 : f32 to vector<1x256xf32>
      %410 = arith.select %408, %385, %409 : vector<1x256xi1>, vector<1x256xf32>
      %c8_i32_132 = arith.constant 8 : i32
      %411 = vector.broadcast %c8_i32_132 : i32 to vector<1x256xi32>
      %412 = arith.muli %391, %411 : vector<1x256xi32>
      %413 = arith.addi %412, %389 : vector<1x256xi32>
      %c8_i32_133 = arith.constant 8 : i32
      %414 = vector.broadcast %c8_i32_133 : i32 to vector<1x256xi32>
      %415 = arith.muli %413, %414 : vector<1x256xi32>
      %416 = arith.addi %415, %387 : vector<1x256xi32>
      %417 = vector.broadcast %29 : i32 to vector<1x256xi32>
      %418 = arith.subi %416, %417 : vector<1x256xi32>
      %c0_134 = arith.constant 0 : index
      %c0_135 = arith.constant 0 : index
      %419 = vector.load %arg7[%c0_134, %c0_135] : memref<256x256xf32, #tpu.memory_space<vmem>>, vector<256x256xf32>
      %420 = vector.broadcast %418 : vector<1x256xi32> to vector<256x256xi32>
      %421 = arith.cmpi eq, %47, %420 : vector<256x256xi32>
      %cst_136 = arith.constant 0.000000e+00 : f32
      %422 = vector.shape_cast %410 : vector<1x256xf32> to vector<1x256xf32>
      %423 = vector.broadcast %422 : vector<1x256xf32> to vector<256x256xf32>
      %424 = vector.broadcast %cst_136 : f32 to vector<256x256xf32>
      %425 = arith.select %421, %423, %424 : vector<256x256xi1>, vector<256x256xf32>
      %426 = arith.addf %419, %425 : vector<256x256xf32>
      %c0_137 = arith.constant 0 : index
      %c0_138 = arith.constant 0 : index
      %427 = vector.load %arg7[%c0_137, %c0_138] : memref<256x256xf32, #tpu.memory_space<vmem>>, vector<256x256xf32>
      tpu.vector_store %arg7[%c0_137, %c0_138], %426 {strides = array<i32>} : memref<256x256xf32, #tpu.memory_space<vmem>>, vector<256x256xf32>,
      %c5_i32 = arith.constant 5 : i32
      %c1_i32_139 = arith.constant 1 : i32
      %428 = arith.andi %c5_i32, %c1_i32_139 : i32
      %c1_i32_140 = arith.constant 1 : i32
      %429 = arith.shrsi %c5_i32, %c1_i32_140 : i32
      %c1_i32_141 = arith.constant 1 : i32
      %430 = arith.andi %429, %c1_i32_141 : i32
      %c2_i32_142 = arith.constant 2 : i32
      %431 = arith.shrsi %c5_i32, %c2_i32_142 : i32
      %c1_i32_143 = arith.constant 1 : i32
      %432 = arith.andi %431, %c1_i32_143 : i32
      %433 = arith.sitofp %428 : i32 to f32
      %434 = arith.sitofp %430 : i32 to f32
      %435 = arith.sitofp %432 : i32 to f32
      %436 = vector.broadcast %433 : f32 to vector<1x256xf32>
      %437 = arith.mulf %14, %436 : vector<1x256xf32>
      %cst_144 = arith.constant 1.000000e+00 : f32
      %438 = vector.broadcast %cst_144 : f32 to vector<1x256xf32>
      %439 = arith.subf %438, %14 : vector<1x256xf32>
      %cst_145 = arith.constant 1.000000e+00 : f32
      %440 = arith.subf %cst_145, %433 : f32
      %441 = vector.broadcast %440 : f32 to vector<1x256xf32>
      %442 = arith.mulf %439, %441 : vector<1x256xf32>
      %443 = arith.addf %437, %442 : vector<1x256xf32>
      %444 = vector.broadcast %434 : f32 to vector<1x256xf32>
      %445 = arith.mulf %15, %444 : vector<1x256xf32>
      %cst_146 = arith.constant 1.000000e+00 : f32
      %446 = vector.broadcast %cst_146 : f32 to vector<1x256xf32>
      %447 = arith.subf %446, %15 : vector<1x256xf32>
      %cst_147 = arith.constant 1.000000e+00 : f32
      %448 = arith.subf %cst_147, %434 : f32
      %449 = vector.broadcast %448 : f32 to vector<1x256xf32>
      %450 = arith.mulf %447, %449 : vector<1x256xf32>
      %451 = arith.addf %445, %450 : vector<1x256xf32>
      %452 = arith.mulf %443, %451 : vector<1x256xf32>
      %453 = vector.broadcast %435 : f32 to vector<1x256xf32>
      %454 = arith.mulf %16, %453 : vector<1x256xf32>
      %cst_148 = arith.constant 1.000000e+00 : f32
      %455 = vector.broadcast %cst_148 : f32 to vector<1x256xf32>
      %456 = arith.subf %455, %16 : vector<1x256xf32>
      %cst_149 = arith.constant 1.000000e+00 : f32
      %457 = arith.subf %cst_149, %435 : f32
      %458 = vector.broadcast %457 : f32 to vector<1x256xf32>
      %459 = arith.mulf %456, %458 : vector<1x256xf32>
      %460 = arith.addf %454, %459 : vector<1x256xf32>
      %461 = arith.mulf %452, %460 : vector<1x256xf32>
      %462 = vector.broadcast %428 : i32 to vector<1x256xi32>
      %463 = arith.addi %17, %462 : vector<1x256xi32>
      %464 = vector.broadcast %430 : i32 to vector<1x256xi32>
      %465 = arith.addi %18, %464 : vector<1x256xi32>
      %466 = vector.broadcast %432 : i32 to vector<1x256xi32>
      %467 = arith.addi %19, %466 : vector<1x256xi32>
      %c0_i32_150 = arith.constant 0 : i32
      %468 = vector.broadcast %c0_i32_150 : i32 to vector<1x256xi32>
      %469 = arith.cmpi sge, %463, %468 : vector<1x256xi32>
      %c8_i32_151 = arith.constant 8 : i32
      %470 = vector.broadcast %c8_i32_151 : i32 to vector<1x256xi32>
      %471 = arith.cmpi slt, %463, %470 : vector<1x256xi32>
      %472 = arith.andi %469, %471 : vector<1x256xi1>
      %c0_i32_152 = arith.constant 0 : i32
      %473 = vector.broadcast %c0_i32_152 : i32 to vector<1x256xi32>
      %474 = arith.cmpi sge, %465, %473 : vector<1x256xi32>
      %475 = arith.andi %472, %474 : vector<1x256xi1>
      %c8_i32_153 = arith.constant 8 : i32
      %476 = vector.broadcast %c8_i32_153 : i32 to vector<1x256xi32>
      %477 = arith.cmpi slt, %465, %476 : vector<1x256xi32>
      %478 = arith.andi %475, %477 : vector<1x256xi1>
      %c0_i32_154 = arith.constant 0 : i32
      %479 = vector.broadcast %c0_i32_154 : i32 to vector<1x256xi32>
      %480 = arith.cmpi sge, %467, %479 : vector<1x256xi32>
      %481 = arith.andi %478, %480 : vector<1x256xi1>
      %c8_i32_155 = arith.constant 8 : i32
      %482 = vector.broadcast %c8_i32_155 : i32 to vector<1x256xi32>
      %483 = arith.cmpi slt, %467, %482 : vector<1x256xi32>
      %484 = arith.andi %481, %483 : vector<1x256xi1>
      %cst_156 = arith.constant 0.000000e+00 : f32
      %485 = vector.broadcast %cst_156 : f32 to vector<1x256xf32>
      %486 = arith.select %484, %461, %485 : vector<1x256xi1>, vector<1x256xf32>
      %c8_i32_157 = arith.constant 8 : i32
      %487 = vector.broadcast %c8_i32_157 : i32 to vector<1x256xi32>
      %488 = arith.muli %467, %487 : vector<1x256xi32>
      %489 = arith.addi %488, %465 : vector<1x256xi32>
      %c8_i32_158 = arith.constant 8 : i32
      %490 = vector.broadcast %c8_i32_158 : i32 to vector<1x256xi32>
      %491 = arith.muli %489, %490 : vector<1x256xi32>
      %492 = arith.addi %491, %463 : vector<1x256xi32>
      %493 = vector.broadcast %29 : i32 to vector<1x256xi32>
      %494 = arith.subi %492, %493 : vector<1x256xi32>
      %c0_159 = arith.constant 0 : index
      %c0_160 = arith.constant 0 : index
      %495 = vector.load %arg7[%c0_159, %c0_160] : memref<256x256xf32, #tpu.memory_space<vmem>>, vector<256x256xf32>
      %496 = vector.broadcast %494 : vector<1x256xi32> to vector<256x256xi32>
      %497 = arith.cmpi eq, %47, %496 : vector<256x256xi32>
      %cst_161 = arith.constant 0.000000e+00 : f32
      %498 = vector.shape_cast %486 : vector<1x256xf32> to vector<1x256xf32>
      %499 = vector.broadcast %498 : vector<1x256xf32> to vector<256x256xf32>
      %500 = vector.broadcast %cst_161 : f32 to vector<256x256xf32>
      %501 = arith.select %497, %499, %500 : vector<256x256xi1>, vector<256x256xf32>
      %502 = arith.addf %495, %501 : vector<256x256xf32>
      %c0_162 = arith.constant 0 : index
      %c0_163 = arith.constant 0 : index
      %503 = vector.load %arg7[%c0_162, %c0_163] : memref<256x256xf32, #tpu.memory_space<vmem>>, vector<256x256xf32>
      tpu.vector_store %arg7[%c0_162, %c0_163], %502 {strides = array<i32>} : memref<256x256xf32, #tpu.memory_space<vmem>>, vector<256x256xf32>,
      %c6_i32 = arith.constant 6 : i32
      %c1_i32_164 = arith.constant 1 : i32
      %504 = arith.andi %c6_i32, %c1_i32_164 : i32
      %c1_i32_165 = arith.constant 1 : i32
      %505 = arith.shrsi %c6_i32, %c1_i32_165 : i32
      %c1_i32_166 = arith.constant 1 : i32
      %506 = arith.andi %505, %c1_i32_166 : i32
      %c2_i32_167 = arith.constant 2 : i32
      %507 = arith.shrsi %c6_i32, %c2_i32_167 : i32
      %c1_i32_168 = arith.constant 1 : i32
      %508 = arith.andi %507, %c1_i32_168 : i32
      %509 = arith.sitofp %504 : i32 to f32
      %510 = arith.sitofp %506 : i32 to f32
      %511 = arith.sitofp %508 : i32 to f32
      %512 = vector.broadcast %509 : f32 to vector<1x256xf32>
      %513 = arith.mulf %14, %512 : vector<1x256xf32>
      %cst_169 = arith.constant 1.000000e+00 : f32
      %514 = vector.broadcast %cst_169 : f32 to vector<1x256xf32>
      %515 = arith.subf %514, %14 : vector<1x256xf32>
      %cst_170 = arith.constant 1.000000e+00 : f32
      %516 = arith.subf %cst_170, %509 : f32
      %517 = vector.broadcast %516 : f32 to vector<1x256xf32>
      %518 = arith.mulf %515, %517 : vector<1x256xf32>
      %519 = arith.addf %513, %518 : vector<1x256xf32>
      %520 = vector.broadcast %510 : f32 to vector<1x256xf32>
      %521 = arith.mulf %15, %520 : vector<1x256xf32>
      %cst_171 = arith.constant 1.000000e+00 : f32
      %522 = vector.broadcast %cst_171 : f32 to vector<1x256xf32>
      %523 = arith.subf %522, %15 : vector<1x256xf32>
      %cst_172 = arith.constant 1.000000e+00 : f32
      %524 = arith.subf %cst_172, %510 : f32
      %525 = vector.broadcast %524 : f32 to vector<1x256xf32>
      %526 = arith.mulf %523, %525 : vector<1x256xf32>
      %527 = arith.addf %521, %526 : vector<1x256xf32>
      %528 = arith.mulf %519, %527 : vector<1x256xf32>
      %529 = vector.broadcast %511 : f32 to vector<1x256xf32>
      %530 = arith.mulf %16, %529 : vector<1x256xf32>
      %cst_173 = arith.constant 1.000000e+00 : f32
      %531 = vector.broadcast %cst_173 : f32 to vector<1x256xf32>
      %532 = arith.subf %531, %16 : vector<1x256xf32>
      %cst_174 = arith.constant 1.000000e+00 : f32
      %533 = arith.subf %cst_174, %511 : f32
      %534 = vector.broadcast %533 : f32 to vector<1x256xf32>
      %535 = arith.mulf %532, %534 : vector<1x256xf32>
      %536 = arith.addf %530, %535 : vector<1x256xf32>
      %537 = arith.mulf %528, %536 : vector<1x256xf32>
      %538 = vector.broadcast %504 : i32 to vector<1x256xi32>
      %539 = arith.addi %17, %538 : vector<1x256xi32>
      %540 = vector.broadcast %506 : i32 to vector<1x256xi32>
      %541 = arith.addi %18, %540 : vector<1x256xi32>
      %542 = vector.broadcast %508 : i32 to vector<1x256xi32>
      %543 = arith.addi %19, %542 : vector<1x256xi32>
      %c0_i32_175 = arith.constant 0 : i32
      %544 = vector.broadcast %c0_i32_175 : i32 to vector<1x256xi32>
      %545 = arith.cmpi sge, %539, %544 : vector<1x256xi32>
      %c8_i32_176 = arith.constant 8 : i32
      %546 = vector.broadcast %c8_i32_176 : i32 to vector<1x256xi32>
      %547 = arith.cmpi slt, %539, %546 : vector<1x256xi32>
      %548 = arith.andi %545, %547 : vector<1x256xi1>
      %c0_i32_177 = arith.constant 0 : i32
      %549 = vector.broadcast %c0_i32_177 : i32 to vector<1x256xi32>
      %550 = arith.cmpi sge, %541, %549 : vector<1x256xi32>
      %551 = arith.andi %548, %550 : vector<1x256xi1>
      %c8_i32_178 = arith.constant 8 : i32
      %552 = vector.broadcast %c8_i32_178 : i32 to vector<1x256xi32>
      %553 = arith.cmpi slt, %541, %552 : vector<1x256xi32>
      %554 = arith.andi %551, %553 : vector<1x256xi1>
      %c0_i32_179 = arith.constant 0 : i32
      %555 = vector.broadcast %c0_i32_179 : i32 to vector<1x256xi32>
      %556 = arith.cmpi sge, %543, %555 : vector<1x256xi32>
      %557 = arith.andi %554, %556 : vector<1x256xi1>
      %c8_i32_180 = arith.constant 8 : i32
      %558 = vector.broadcast %c8_i32_180 : i32 to vector<1x256xi32>
      %559 = arith.cmpi slt, %543, %558 : vector<1x256xi32>
      %560 = arith.andi %557, %559 : vector<1x256xi1>
      %cst_181 = arith.constant 0.000000e+00 : f32
      %561 = vector.broadcast %cst_181 : f32 to vector<1x256xf32>
      %562 = arith.select %560, %537, %561 : vector<1x256xi1>, vector<1x256xf32>
      %c8_i32_182 = arith.constant 8 : i32
      %563 = vector.broadcast %c8_i32_182 : i32 to vector<1x256xi32>
      %564 = arith.muli %543, %563 : vector<1x256xi32>
      %565 = arith.addi %564, %541 : vector<1x256xi32>
      %c8_i32_183 = arith.constant 8 : i32
      %566 = vector.broadcast %c8_i32_183 : i32 to vector<1x256xi32>
      %567 = arith.muli %565, %566 : vector<1x256xi32>
      %568 = arith.addi %567, %539 : vector<1x256xi32>
      %569 = vector.broadcast %29 : i32 to vector<1x256xi32>
      %570 = arith.subi %568, %569 : vector<1x256xi32>
      %c0_184 = arith.constant 0 : index
      %c0_185 = arith.constant 0 : index
      %571 = vector.load %arg7[%c0_184, %c0_185] : memref<256x256xf32, #tpu.memory_space<vmem>>, vector<256x256xf32>
      %572 = vector.broadcast %570 : vector<1x256xi32> to vector<256x256xi32>
      %573 = arith.cmpi eq, %47, %572 : vector<256x256xi32>
      %cst_186 = arith.constant 0.000000e+00 : f32
      %574 = vector.shape_cast %562 : vector<1x256xf32> to vector<1x256xf32>
      %575 = vector.broadcast %574 : vector<1x256xf32> to vector<256x256xf32>
      %576 = vector.broadcast %cst_186 : f32 to vector<256x256xf32>
      %577 = arith.select %573, %575, %576 : vector<256x256xi1>, vector<256x256xf32>
      %578 = arith.addf %571, %577 : vector<256x256xf32>
      %c0_187 = arith.constant 0 : index
      %c0_188 = arith.constant 0 : index
      %579 = vector.load %arg7[%c0_187, %c0_188] : memref<256x256xf32, #tpu.memory_space<vmem>>, vector<256x256xf32>
      tpu.vector_store %arg7[%c0_187, %c0_188], %578 {strides = array<i32>} : memref<256x256xf32, #tpu.memory_space<vmem>>, vector<256x256xf32>,
      %c7_i32 = arith.constant 7 : i32
      %c1_i32_189 = arith.constant 1 : i32
      %580 = arith.andi %c7_i32, %c1_i32_189 : i32
      %c1_i32_190 = arith.constant 1 : i32
      %581 = arith.shrsi %c7_i32, %c1_i32_190 : i32
      %c1_i32_191 = arith.constant 1 : i32
      %582 = arith.andi %581, %c1_i32_191 : i32
      %c2_i32_192 = arith.constant 2 : i32
      %583 = arith.shrsi %c7_i32, %c2_i32_192 : i32
      %c1_i32_193 = arith.constant 1 : i32
      %584 = arith.andi %583, %c1_i32_193 : i32
      %585 = arith.sitofp %580 : i32 to f32
      %586 = arith.sitofp %582 : i32 to f32
      %587 = arith.sitofp %584 : i32 to f32
      %588 = vector.broadcast %585 : f32 to vector<1x256xf32>
      %589 = arith.mulf %14, %588 : vector<1x256xf32>
      %cst_194 = arith.constant 1.000000e+00 : f32
      %590 = vector.broadcast %cst_194 : f32 to vector<1x256xf32>
      %591 = arith.subf %590, %14 : vector<1x256xf32>
      %cst_195 = arith.constant 1.000000e+00 : f32
      %592 = arith.subf %cst_195, %585 : f32
      %593 = vector.broadcast %592 : f32 to vector<1x256xf32>
      %594 = arith.mulf %591, %593 : vector<1x256xf32>
      %595 = arith.addf %589, %594 : vector<1x256xf32>
      %596 = vector.broadcast %586 : f32 to vector<1x256xf32>
      %597 = arith.mulf %15, %596 : vector<1x256xf32>
      %cst_196 = arith.constant 1.000000e+00 : f32
      %598 = vector.broadcast %cst_196 : f32 to vector<1x256xf32>
      %599 = arith.subf %598, %15 : vector<1x256xf32>
      %cst_197 = arith.constant 1.000000e+00 : f32
      %600 = arith.subf %cst_197, %586 : f32
      %601 = vector.broadcast %600 : f32 to vector<1x256xf32>
      %602 = arith.mulf %599, %601 : vector<1x256xf32>
      %603 = arith.addf %597, %602 : vector<1x256xf32>
      %604 = arith.mulf %595, %603 : vector<1x256xf32>
      %605 = vector.broadcast %587 : f32 to vector<1x256xf32>
      %606 = arith.mulf %16, %605 : vector<1x256xf32>
      %cst_198 = arith.constant 1.000000e+00 : f32
      %607 = vector.broadcast %cst_198 : f32 to vector<1x256xf32>
      %608 = arith.subf %607, %16 : vector<1x256xf32>
      %cst_199 = arith.constant 1.000000e+00 : f32
      %609 = arith.subf %cst_199, %587 : f32
      %610 = vector.broadcast %609 : f32 to vector<1x256xf32>
      %611 = arith.mulf %608, %610 : vector<1x256xf32>
      %612 = arith.addf %606, %611 : vector<1x256xf32>
      %613 = arith.mulf %604, %612 : vector<1x256xf32>
      %614 = vector.broadcast %580 : i32 to vector<1x256xi32>
      %615 = arith.addi %17, %614 : vector<1x256xi32>
      %616 = vector.broadcast %582 : i32 to vector<1x256xi32>
      %617 = arith.addi %18, %616 : vector<1x256xi32>
      %618 = vector.broadcast %584 : i32 to vector<1x256xi32>
      %619 = arith.addi %19, %618 : vector<1x256xi32>
      %c0_i32_200 = arith.constant 0 : i32
      %620 = vector.broadcast %c0_i32_200 : i32 to vector<1x256xi32>
      %621 = arith.cmpi sge, %615, %620 : vector<1x256xi32>
      %c8_i32_201 = arith.constant 8 : i32
      %622 = vector.broadcast %c8_i32_201 : i32 to vector<1x256xi32>
      %623 = arith.cmpi slt, %615, %622 : vector<1x256xi32>
      %624 = arith.andi %621, %623 : vector<1x256xi1>
      %c0_i32_202 = arith.constant 0 : i32
      %625 = vector.broadcast %c0_i32_202 : i32 to vector<1x256xi32>
      %626 = arith.cmpi sge, %617, %625 : vector<1x256xi32>
      %627 = arith.andi %624, %626 : vector<1x256xi1>
      %c8_i32_203 = arith.constant 8 : i32
      %628 = vector.broadcast %c8_i32_203 : i32 to vector<1x256xi32>
      %629 = arith.cmpi slt, %617, %628 : vector<1x256xi32>
      %630 = arith.andi %627, %629 : vector<1x256xi1>
      %c0_i32_204 = arith.constant 0 : i32
      %631 = vector.broadcast %c0_i32_204 : i32 to vector<1x256xi32>
      %632 = arith.cmpi sge, %619, %631 : vector<1x256xi32>
      %633 = arith.andi %630, %632 : vector<1x256xi1>
      %c8_i32_205 = arith.constant 8 : i32
      %634 = vector.broadcast %c8_i32_205 : i32 to vector<1x256xi32>
      %635 = arith.cmpi slt, %619, %634 : vector<1x256xi32>
      %636 = arith.andi %633, %635 : vector<1x256xi1>
      %cst_206 = arith.constant 0.000000e+00 : f32
      %637 = vector.broadcast %cst_206 : f32 to vector<1x256xf32>
      %638 = arith.select %636, %613, %637 : vector<1x256xi1>, vector<1x256xf32>
      %c8_i32_207 = arith.constant 8 : i32
      %639 = vector.broadcast %c8_i32_207 : i32 to vector<1x256xi32>
      %640 = arith.muli %619, %639 : vector<1x256xi32>
      %641 = arith.addi %640, %617 : vector<1x256xi32>
      %c8_i32_208 = arith.constant 8 : i32
      %642 = vector.broadcast %c8_i32_208 : i32 to vector<1x256xi32>
      %643 = arith.muli %641, %642 : vector<1x256xi32>
      %644 = arith.addi %643, %615 : vector<1x256xi32>
      %645 = vector.broadcast %29 : i32 to vector<1x256xi32>
      %646 = arith.subi %644, %645 : vector<1x256xi32>
      %c0_209 = arith.constant 0 : index
      %c0_210 = arith.constant 0 : index
      %647 = vector.load %arg7[%c0_209, %c0_210] : memref<256x256xf32, #tpu.memory_space<vmem>>, vector<256x256xf32>
      %648 = vector.broadcast %646 : vector<1x256xi32> to vector<256x256xi32>
      %649 = arith.cmpi eq, %47, %648 : vector<256x256xi32>
      %cst_211 = arith.constant 0.000000e+00 : f32
      %650 = vector.shape_cast %638 : vector<1x256xf32> to vector<1x256xf32>
      %651 = vector.broadcast %650 : vector<1x256xf32> to vector<256x256xf32>
      %652 = vector.broadcast %cst_211 : f32 to vector<256x256xf32>
      %653 = arith.select %649, %651, %652 : vector<256x256xi1>, vector<256x256xf32>
      %654 = arith.addf %647, %653 : vector<256x256xf32>
      %c0_212 = arith.constant 0 : index
      %c0_213 = arith.constant 0 : index
      %655 = vector.load %arg7[%c0_212, %c0_213] : memref<256x256xf32, #tpu.memory_space<vmem>>, vector<256x256xf32>
      tpu.vector_store %arg7[%c0_212, %c0_213], %654 {strides = array<i32>} : memref<256x256xf32, #tpu.memory_space<vmem>>, vector<256x256xf32>,
      %c8_i32_214 = arith.constant 8 : i32
      %c0_215 = arith.constant 0 : index
      %c0_216 = arith.constant 0 : index
      %c0_217 = arith.constant 0 : index
      %656 = vector.load %arg5[%c0_215, %c0_216, %c0_217] : memref<1x8x256xf32, #tpu.memory_space<vmem>>, vector<1x8x256xf32>
      %657 = vector.shape_cast %656 : vector<1x8x256xf32> to vector<8x256xf32>
      %c0_218 = arith.constant 0 : index
      %c0_219 = arith.constant 0 : index
      %c0_220 = arith.constant 0 : index
      %658 = vector.load %arg4[%c0_218, %c0_219, %c0_220] : memref<1x8x256xf32, #tpu.memory_space<vmem>>, vector<1x8x256xf32>
      %659 = vector.shape_cast %658 : vector<1x8x256xf32> to vector<8x256xf32>
      %c0_221 = arith.constant 0 : index
      %c0_222 = arith.constant 0 : index
      %660 = vector.load %arg7[%c0_221, %c0_222] : memref<256x256xf32, #tpu.memory_space<vmem>>, vector<256x256xf32>
      %cst_223 = arith.constant dense<0.000000e+00> : vector<8x256xf32>
      %661 = tpu.matmul %659, %660, %cst_223 {dimension_numbers = #tpu.dot_dimension_numbers<[1], [0], [0], [1], [0, 0, 1, 1], [], []>} : vector<8x256xf32>, vector<256x256xf32>, vector<8x256xf32> -> vector<8x256xf32>
      %662 = arith.addf %657, %661 : vector<8x256xf32>
      %c0_224 = arith.constant 0 : index
      %c0_225 = arith.constant 0 : index
      %c0_226 = arith.constant 0 : index
      %663 = vector.load %arg5[%c0_224, %c0_225, %c0_226] : memref<1x8x256xf32, #tpu.memory_space<vmem>>, vector<1x8x256xf32>
      %664 = vector.shape_cast %663 : vector<1x8x256xf32> to vector<8x256xf32>
      %665 = vector.shape_cast %662 : vector<8x256xf32> to vector<1x8x256xf32>
      tpu.vector_store %arg5[%c0_224, %c0_225, %c0_226], %665 {strides = array<i32>} : memref<1x8x256xf32, #tpu.memory_space<vmem>>, vector<1x8x256xf32>,
    } else {
    }
    return
  }
  func.func @transform_0(%arg0: i32, %arg1: i32, %arg2: i32) -> (i32, i32, i32) {
    %c0_i32 = arith.constant 0 : i32
    %c0_i32_0 = arith.constant 0 : i32
    return %arg0, %c0_i32, %arg1 : i32, i32, i32
  }
  func.func @transform_1(%arg0: i32, %arg1: i32, %arg2: i32) -> (i32, i32, i32) {
    %c0_i32 = arith.constant 0 : i32
    %c0_i32_0 = arith.constant 0 : i32
    return %arg0, %c0_i32, %arg2 : i32, i32, i32
  }
  func.func @transform_2(%arg0: i32, %arg1: i32, %arg2: i32) -> (i32, i32, i32) {
    %c0_i32 = arith.constant 0 : i32
    %c0_i32_0 = arith.constant 0 : i32
    return %arg0, %c0_i32, %arg1 : i32, i32, i32
  }
  func.func @transform_3(%arg0: i32, %arg1: i32, %arg2: i32) -> (i32, i32, i32) {
    %c0_i32 = arith.constant 0 : i32
    %c0_i32_0 = arith.constant 0 : i32
    return %arg0, %c0_i32, %arg1 : i32, i32, i32
  }
}

</mosaic_0001>

<bundles_post_ra>
// kernel: tpu_custom_call.1
= control target key start
LH: loop header
LB: loop body
LE: loop exit
PB: predicated region body
PF: predicated region fallthrough
CT: control target
= control target key end

     0   :  { %9 = vsyncpa [#allocation4], 0  ;;  %s6572_s0 = inlined_call_operand.vmem [shape: f32[2,3,512], index: 0, kind: input, shape index: {}]   ;;  %s6573_s1 = inlined_call_operand.hbm [shape: f32[2,8,512], index: 1, kind: input, shape index: {}]   ;;  %s6574_s2 = inlined_call_operand.hbm [shape: f32[2,8,512], index: 2, kind: output, shape index: {0}]   ;;  %s6575_s3 = inlined_call_operand.vmem [shape: f32[2,3,512], index: 3, kind: output, shape index: {1}]  }
   0x1   :  { %11 = vsyncpa [#allocation4 + $0x1], 0 }
   0x2   :  { %12 = vsyncpa [#allocation5], 0 }
   0x3   :  { %14 = vsyncpa [#allocation5 + $0x1], 0  ;;  %s4206_s12 = smov 0   ;;  %s4208_s13 = smov 0  }
   0x4   :  { %s4210_s14 = smov 0   ;;  %s4212_s15 = smov 0  }
   0x5   :  { %s4214_s16 = smov 0   ;;  %s4216_s17 = smov 0  }
   0x6   :  { %s4218_s18 = smov 0   ;;  %s4220_s19 = smov 0  }
   0x7   :  { %s4222_s20 = smov 0   ;;  %s4224_s21 = smov 0  }
   0x8   :  { %s4226_s22 = smov 0   ;;  %s4228_s23 = smov 0  }
   0x9   :  { %s4230_s24 = smov 0  }
   0xa LB: > { %6582 = sst [smem:[#allocation9_spill]] %s4131_s12  ;;  %s3784_s25 = sadd.s32 4294967295, %s4179_s24   ;;  %s4179_s24 = sphi %s4230_s24, %s20_s24   ;;  %s4175_s23 = sphi %s4228_s23, %s6645_s23   ;;  %s4171_s22 = sphi %s4226_s22, %s6632_s22   ;;  %s4167_s21 = sphi %s4224_s21, %s6644_s21   ;;  %s4163_s20 = sphi %s4222_s20, %s6643_s20   ;;  %s4159_s19 = sphi %s4220_s19, %s6642_s19   ;;  %s4155_s18 = sphi %s4218_s18, %s6641_s18   ;;  %s4151_s17 = sphi %s4216_s17, %s6640_s17   ;;  %s4147_s16 = sphi %s4214_s16, %s6639_s16   ;;  %s4143_s15 = sphi %s4212_s15, %s6638_s15   ;;  %s4139_s14 = sphi %s4210_s14, %s6637_s14   ;;  %s4135_s13 = sphi %s4208_s13, %s6636_s13   ;;  %s4131_s12 = sphi %s4206_s12, %s6635_s12  }
   0xb   : > { %6583 = sst [smem:[#allocation10_spill]] %s4171_s22  ;;  %s3785_s26 = sadd.s32 4294967294, %s4179_s24  }
   0xc   : > { %s32_s27 = sadd.s32 1, %s4167_s21  ;;  %s35_s28 = sadd.s32 1, %s4171_s22 }
   0xd   : > { %p33_p0 = scmp.ge.s32.totalorder %s32_s27, 2  ;;  %s39_s29 = sadd.s32 1, %s4175_s23 }
   0xe   : > { %s76_s30 = sadd.s32 1, %s4151_s17  ;;  %p83_p1 = scmp.ne.s32.totalorder %s4151_s17, %s4147_s16 }
   0xf   : > { %s6647_s27 = smov (%p33_p0, %s32_s27), 0  ;;  %s6649_s28 = smov (!%p33_p0, %s35_s28), %s4171_s22 }
  0x10   : > { %6584 = sst [smem:[#allocation11_spill]] %s6647_s27  ;;  %s72_s4 = ssub.s32 %s4167_s21, %s6647_s27 }
  0x11   : > { %p84_p2 = scmp.eq.s32.totalorder %s4179_s24, 0  ;;  %p37_p3 = scmp.ge.s32.totalorder %s6649_s28, 2 }
  0x12   : > { %p89_p4 = scmp.ne.s32.totalorder %s4147_s16, %s4143_s15  ;;  %p90_p6 = scmp.eq.s32.totalorder %s3784_s25, 0 }
  0x13   : > { %p4284_p5 = por %p84_p2, %p83_p1  ;;  %s6651_s28 = smov (%p37_p3, %s6649_s28), 0 }
  0x14   : > { %6586 = sst [smem:[#allocation12_spill]] %s6651_s28  ;;  %s6653_s29 = smov (!%p37_p3, %s39_s29), %s4175_s23 }
  0x15   : > { %p4291_p7 = por %p90_p6, %p89_p4  ;;  %s100_s7 = ssub.s32 %s4171_s22, %s6651_s28 }
  0x16   : > { %p41_p8 = scmp.ge.s32.totalorder %s6653_s29, 2  ;;  %s104_s8 = sadd.s32 1, %s4139_s14 }
  0x17   : > { %p114_p9 = scmp.ne.s32.totalorder %s4139_s14, %s4135_s13  ;;  %p115_p10 = scmp.eq.s32.totalorder %s3784_s25, 7 }
  0x18   : > { %s6655_s29 = smov (%p41_p8, %s6653_s29), 0  ;;  %p120_p12 = scmp.ne.s32.totalorder %s4135_s13, %s4131_s12 }
  0x19   : > { %6588 = sst [smem:[#allocation13_spill]] %s6655_s29  ;;  %p4302_p11 = por %p115_p10, %p114_p9 }
  0x1a   : > { %s71_s10 = ssub.s32 %s4175_s23, %s6655_s29  ;;  %p121_p13 = scmp.eq.s32.totalorder %s3785_s26, 7 }
  0x1b   : > { %s6589_s9 = scalar_select %p4302_p11, 1, 0 }
  0x1c   : > { %s73_s11 = sor.u32 %s72_s4, %s71_s10  ;;  %s101_s15 = sor.u32 %s100_s7, %s71_s10 }
  0x1d   : > { %p74_p0 = scmp.eq.s32.totalorder %s73_s11, 0  ;;  %p102_p1 = scmp.eq.s32.totalorder %s101_s15, 0 }
  0x1e   : > { %p4310_p2 = por %p121_p13, %p120_p12  ;;  %p3902_p3 = scmp.lt.s32.totalorder %s4179_s24, 8 }
  0x1f   : > { %s4315_s28 = scalar_select %p74_p0, %s4151_s17, %s76_s30  }
  0x20   : > { %s6590_s25 = scalar_select %p4310_p2, 1, 0 }
  0x21   : > { %6591 = sst [smem:[#allocation14_spill]] %s4315_s28  ;;  %s182_s22 = sand.u32 1, %s4151_s17  }
  0x22   : > { %s4318_s27 = scalar_select %p102_p1, %s4139_s14, %s104_s8  }
  0x23   : > { %s3788_s12 = sshll.u32 %s182_s22, 4  ;;  %s3789_s29 = sshll.u32 %s4167_s21, 1 }
  0x24   : > { %s3790_s26 = sshll.u32 %s4175_s23, 2  ;;  %s186_s4 = scalar_lea.vmem [#allocation3], %s3788_s12 }
  0x25   : > { %s196_s7 = sshll.u32 %s186_s4, 4  ;;  %s192_s10 = sadd.s32 %s3790_s26, %s3789_s29  ;;  %s4324_s7 = int_to_ptr.vmem [resolvable:$true] %s196_s7 }
  0x26   : > { %s3791_s11 = sshll.u32 %s192_s10, 7  ;;  %p4328_p4 = pnand %p3902_p3, %p4284_p5 }
  0x27   : > { %s4335_s8 = scalar_lea.hbm %s6573_s1, %s3791_s11  ;;  %s183_s12 = scalar_lea.sflag [#allocation4], %s182_s22 }
  0x28   : > { %s4011_s29 = scalar_lea.hbm %s4335_s8, 256  ;;  %p4013_p5 = pneg %p4328_p4 }
  0x29   : > { %p4012_p9 = scmp.ne.s32.totalorder %s4335_s8, %s4011_s29  ;;  %s4016_s26 = scalar_lea.hbm %s6573_s1, 1024 }
  0x2a   : > { %p4017_p13 = scmp.lt.u32.totalorder %s4335_s8, %s6573_s1  ;;  %p4018_p0 = scmp.lt.u32.totalorder %s4016_s26, %s4011_s29 }
  0x2b   : > { %p4014_p10 = pnand %p4013_p5, %p4012_p9  ;;  %p4020_p3 = scmp.lt.u32.totalorder %s4011_s29, %s4335_s8 }
  0x2c   : > { %p4019_p1 = por %p4018_p0, %p4017_p13 }
  0x2d   : > { %p4015_p12 = pneg %p4014_p10 }
  0x2e   : > { %p4021_p6 = por %p4020_p3, %p4019_p1 }
  0x30   : > { %p4022_p8 = pnand %p4021_p6, %p4015_p12 }
  0x32   : > { %4025 = shalt.err (!%p4022_p8)
}
  0x33   : > { %s4026_s22 = scalar_lea.vmem %s4324_s7, 256  ;;  %s4181_s11 = smov [#allocation3]  }
  0x34   : > { %p4027_p9 = scmp.ne.s32.totalorder %s4324_s7, %s4026_s22  ;;  %s4031_s30 = sshll.u32 %s4181_s11, 4  ;;  %s4032_s30 = int_to_ptr.vmem [resolvable:$false] %s4031_s30 }
  0x35   : > { %s4033_s28 = scalar_lea.vmem %s4032_s30, 512  ;;  %p4034_p11 = scmp.lt.s32.totalorder %s4324_s7, %s4032_s30 }
  0x36   : > { %p4029_p10 = pnand %p4027_p9, %p4013_p5  ;;  %p4035_p13 = scmp.lt.s32.totalorder %s4033_s28, %s4026_s22 }
  0x38   : > { %p4030_p2 = pneg %p4029_p10  ;;  %p4036_p0 = por %p4035_p13, %p4034_p11 }
  0x3a   : > { %p4037_p1 = pnand %p4036_p0, %p4030_p2 }
  0x3c   : > { %4040 = shalt.err (!%p4037_p1)
}
  0x3d   : > { %3897 = dma.hbm_to_vmem [thread:$0]  (!%p4328_p4), %s4335_s8, 256, %s4324_s7, %s183_s12  }
  0x3e   : > { %p6593_p6 = scmp.lt.s32.totalorder %s4179_s24, 9  ;;  %p6594_p8 = scmp.ge.s32.totalorder %s4179_s24, 1 }
  0x40   : > { %p202_p5 = pnand %p6594_p8, %p6593_p6 }
  0x41   : > { %s207_s29 = sand.u32 (!%p202_p5), 1, %s4147_s16  }
  0x42   : > { %205 = sbr.rel (%p202_p5) target bundleno = 1144 (0x478), region = 28  ;;  %s4369_s5 = sshll.u32 (!%p202_p5), %s207_s29, 4 }
  0x43   : > { %s208_s26 = scalar_lea.sflag (!%p202_p5), [#allocation4], %s207_s29 }
  0x49   : > { %4122 = dma.done.wait (%p4291_p7), %s208_s26, 256  }
  0x4a   : > { %4124 = vsyncadd (%p4291_p7), %s208_s26, 4294967040  ;;  %s4377_s7 = sshll.u32 %s4159_s19, 1  ;;  %p253_p11 = scmp.lt.s32.totalorder %s4163_s20, 1 }
  0x4b   : > { %p255_p2 = scmp.lt.s32.totalorder %s4377_s7, 3  ;;  %s238_s15 = sand.u32 1, %s4135_s13  }
  0x4c   : > { %s254_s8 = scalar_select %p253_p11, %s4163_s20, 1 }
  0x4d   : > { %s256_s12 = scalar_select %p255_p2, %s4377_s7, 3 }
  0x4e   : > { %s3796_s10 = sshll.u32 %s254_s8, 2  ;;  %s3794_s22 = sshll.u32 %s238_s15, 4 }
  0x4f   : > { %s258_s11 = sadd.s32 %s3796_s10, %s256_s12  ;;  %s4415_s4 = scalar_lea.vmem [#allocation6], %s3794_s22 }
  0x50   : > { %s3797_s6 = sshll.u32 %s258_s11, 2  ;;  %p3801_p7 = scmp.ne.s32.totalorder %s4155_s18, 0 }
  0x51   : > { %s260_s29 = scalar_lea.vmem %s6572_s0, %s3797_s6  ;;  %s4392_s19 = scalar_lea.vmem %s6575_s3, %s3797_s6  ;;  %v297_v12 = vlaneseq (!%p3801_p7)  ;;  %v4182_v13 = vmov (!%p3801_p7), 0.0   ;;  %v4183_v14 = vmov (!%p3801_p7), 1966171168  }
  0x52   : > { %v274_v0 = vld [vmem:[%s260_s29] sm:$0x77]  ;;  %288 = vst [vmem:[%s4415_s4] sm:$0xff] (!%p3801_p7), %v4182_v13  ;;  %289 = vst [vmem:[%s4415_s4 + $0x8] sm:$0xff] (!%p3801_p7), %v4182_v13  ;;  %v295_v15 = vunpack.c.l.s4 (!%p3801_p7), %v4183_v14 }
  0x53   : > { %v275_v1 = vfloor.f32 %v274_v0  ;;  %v290_v11 = vmul.f32 (!%p3801_p7), 0.14285715, %v274_v0  ;;  %v298_v17 = vshrl.u32 (!%p3801_p7), %v297_v12, 7  ;;  %vm311_vm0 = vcmp.lt.s32.totalorder (!%p3801_p7), %v297_v12, 256 }
  0x54   : > { %v296_v18 = vunpack.c.0.s8 (!%p3801_p7), %v295_v15 }
  0x55   : > { %v4394_v2 = vsub.f32 %v274_v0, %v275_v1  ;;  %v3884_v3 = vtrunc.f32 %v275_v1  ;;  %v3802_v16 = vadd.f32 (!%p3801_p7), -0.5, %v290_v11 }
  0x56   : > { %v299_v20 = vsub.s32 (!%p3801_p7), %v296_v18, %v298_v17 }
  0x57   : > { %v4396_v4 = vcvt.f32.s32 %v3884_v3  ;;  %v292_v19 = vmul.f32 (!%p3801_p7), 2.0, %v3802_v16 }
  0x59   : > { %v278_v5 = vmul.u32 8, %v4396_v4  ;;  %v279_v6 = vrot.slane %v4396_v4, 7  ;;  %v4407_v8 = vrot.slane %v4396_v4, 6  ;;  %287 = sbr.rel (%p3801_p7) target bundleno = 96 (0x60), region = 36  ;;  %v300_v21 = vrot.slane (!%p3801_p7), %v292_v19, %v299_v20 }
  0x5b   : > { %v4404_v7 = vadd.s32 %v279_v6, %v278_v5  ;;  %v307_v22 = vrot.slane (!%p3801_p7), %v300_v21, %v299_v20  ;;  %v314_v23 = vcombine.high (!%p3801_p7), %v300_v21, %v300_v21 }
  0x5d   : > { %v281_v9 = vmul.u32 8, %v4404_v7  ;;  %313 = vst.msk [vmem:[%s4392_s19] ss:$4 sm:$0x3] (!%p3801_p7), %vm311_vm0, %v307_v22  ;;  %v321_v24 = vrot.slane (!%p3801_p7), %v314_v23, %v299_v20  ;;  %v325_v25 = vcombine.high (!%p3801_p7), %v307_v22, %v307_v22 }
  0x5f   : > { %v4413_v10 = vadd.s32 %v4407_v8, %v281_v9  ;;  %3803 = vst.msk [vmem:[%s4392_s19 + $0x1] ss:$4 sm:$0x3] (!%p3801_p7), %vm311_vm0, %v321_v24  ;;  %3804 = vst.msk [vmem:[%s4392_s19 + $0x2] ss:$4 sm:$0x3] (!%p3801_p7), %vm311_vm0, %v325_v25 }
  0x60 PF: > { %v330_v26 = vlaneseq  ;;  %vm338_vm1 = vcmask 1042434   ;;  %s3805_s8 = sshll.u32 %s4155_s18, 8 }
  0x61   : > { %s397_s10 = sadd.s32 256, %s3805_s8 }
  0x62   : > { %v4423_v27 = vshrl.u32 %v330_v26, 7 }
  0x64   : > { %v4426_v28 = vsub.s32 2, %v4423_v27  ;;  %v4429_v29 = vsub.s32 6, %v4423_v27 }
  0x66   : > { %v333_v30 = vrot.slane %v4413_v10, %v4426_v28  ;;  %v337_v31 = vrot.slane %v4413_v10, %v4429_v29 }
  0x68   : > { %v339_v32 = vsel %vm338_vm1, %v333_v30, 2147483647  ;;  %v340_v33 = vsel %vm338_vm1, %v337_v31, 2147483647  ;;  %v367_v34 = vsel %vm338_vm1, %v333_v30, 2147483648  ;;  %v368_v35 = vsel %vm338_vm1, %v337_v31, 2147483648 }
  0x69   : > { %vm341_vm2 = vcmp.lt.s32.totalorder %v339_v32, %v340_v33  ;;  %vm369_vm3 = vcmp.gt.s32.totalorder %v367_v34, %v368_v35 }
  0x6a   : > { %v342_v36 = vsel %vm341_vm2, %v339_v32, %v340_v33  ;;  %v370_v37 = vsel %vm369_vm3, %v367_v34, %v368_v35 }
  0x6b   : > { %v344_v38 = vshra.s32 %v342_v36, 16  ;;  %v372_v39 = vshra.s32 %v370_v37, 16  ;;  %v343_v42 = vand.u32 65535, %v342_v36  ;;  %v371_v44 = vand.u32 65535, %v370_v37 }
  0x6d   : > { %v346_v40 = vcvt.s32.f32 %v344_v38  ;;  %v374_v41 = vcvt.s32.f32 %v372_v39  ;;  %v345_v43 = vcvt.s32.f32 %v343_v42  ;;  %v373_v47 = vcvt.s32.f32 %v371_v44 }
  0x6f   : > { %347 = vmin.xlane.f32.xlu0 %v346_v40 }
  0x73   : > { %375 = vmax.xlane.f32.xlu0 %v374_v41 }
  0xfc   : > { %v348_v45 = vpop.xlane.xlu0 %347 }
  0xfd   : > { %vm349_vm4 = vcmp.eq.f32.partialorder %v346_v40, %v348_v45  ;;  %v354_v50 = vcvt.f32.s32 %v348_v45 }
  0xfe   : > { %v350_v46 = vsel %vm349_vm4, %v345_v43, inf }
  0xff   : > { %351 = vmin.xlane.f32.xlu1 %v350_v46  ;;  %v355_v52 = vshll.u32 %v354_v50, 16 }
 0x100   : > { %v376_v48 = vpop.xlane.xlu0 %375 }
 0x101   : > { %vm377_vm5 = vcmp.eq.f32.partialorder %v374_v41, %v376_v48  ;;  %v382_v53 = vcvt.f32.s32 %v376_v48 }
 0x102   : > { %v378_v49 = vsel %vm377_vm5, %v373_v47, -inf }
 0x103   : > { %379 = vmax.xlane.f32.xlu1 %v378_v49  ;;  %v383_v57 = vshll.u32 %v382_v53, 16 }
 0x18c   : > { %v352_v51 = vpop.xlane.xlu1 %351 }
 0x18d   : > { %v353_v54 = vcvt.f32.s32 %v352_v51 }
 0x18f   : > { %v356_v55 = vadd.s32 %v355_v52, %v353_v54 }
 0x190   : > { %v380_v56 = vpop.xlane.xlu1 %379 }
 0x191   : > { %v357_v58 = vrot.slane %v356_v55, 4  ;;  %v381_v59 = vcvt.f32.s32 %v380_v56 }
 0x193   : > { %v384_v60 = vadd.s32 %v383_v57, %v381_v59  ;;  %vm358_vm6 = vcmp.lt.s32.totalorder %v356_v55, %v357_v58 }
 0x194   : > { %v359_v61 = vsel %vm358_vm6, %v356_v55, %v357_v58 }
 0x195   : > { %v385_v62 = vrot.slane %v384_v60, 4  ;;  %v360_v63 = vrot.slane %v359_v61, 2 }
 0x197   : > { %vm386_vm7 = vcmp.gt.s32.totalorder %v384_v60, %v385_v62  ;;  %vm361_vm8 = vcmp.lt.s32.totalorder %v359_v61, %v360_v63 }
 0x198   : > { %v362_v0 = vsel %vm361_vm8, %v359_v61, %v360_v63  ;;  %v387_v1 = vsel %vm386_vm7, %v384_v60, %v385_v62 }
 0x199   : > { %v363_v3 = vrot.slane %v362_v0, 1  ;;  %v388_v11 = vrot.slane %v387_v1, 2 }
 0x19b   : > { %vm364_vm9 = vcmp.lt.s32.totalorder %v362_v0, %v363_v3  ;;  %vm389_vm10 = vcmp.gt.s32.totalorder %v387_v1, %v388_v11 }
 0x19c   : > { %v365_v12 = vsel %vm364_vm9, %v362_v0, %v363_v3  ;;  %v390_v13 = vsel %vm389_vm10, %v387_v1, %v388_v11 }
 0x19d   : > { %3886 = vpush %v365_v12  ;;  %v391_v14 = vrot.slane %v390_v13, 1 }
 0x19f   : > { %vm392_vm11 = vcmp.gt.s32.totalorder %v390_v13, %v391_v14 }
 0x1a0   : > { %v393_v15 = vsel %vm392_vm11, %v390_v13, %v391_v14 }
 0x1a1   : > { %3888 = vpush %v393_v15 }
 0x1ce   : > { %s3887_s12 = spop %3886 }
 0x1cf   : > { %p398_p4 = scmp.lt.s32.totalorder %s3887_s12, %s397_s10 }
 0x1d2   : > { %s3889_s22 = spop %3888 }
 0x1d3   : > { %s395_s11 = sadd.s32 73, %s3889_s22 }
 0x1d4   : > { %p396_p12 = scmp.ge.s32.totalorder %s395_s11, %s3805_s8 }
 0x1d6   : > { %p399_p3 = pnand %p398_p4, %p396_p12 }
 0x1d7   : > { %v4437_v16 = vadd.s32 (!%p399_p3), 8, %v4423_v27  ;;  %v500_v17 = vmul.f32 (!%p399_p3), 0.0, %v4394_v2  ;;  %v501_v18 = vsub.f32 (!%p399_p3), 1.0, %v4394_v2  ;;  %vm512_vm12 = vcmp.ge.s32.totalorder (!%p399_p3), %v4396_v4, 0  ;;  %s6623_s18 = scalar_lea.vmem (!%p399_p3), [#allocation3], %s4369_s5 }
 0x1d8   : > { %402 = sbr.rel (%p399_p3) target bundleno = 1118 (0x45e), region = 40  ;;  %vm513_vm13 = vcmp.lt.s32.totalorder (!%p399_p3), %v4396_v4, 8  ;;  %v4443_v19 = vstv (!%p399_p3), %s3805_s8  ;;  %v4446_v20 = vsub.s32 (!%p399_p3), 0, %v4423_v27  ;;  %v4184_v22 = vmov (!%p399_p3), 0   ;;  %s6624_s6 = smov (!%p399_p3), %s6623_s18 }
 0x1d9   : > { %v502_v21 = vadd.f32 (!%p399_p3), %v501_v18, %v500_v17  ;;  %v515_v23 = vsel (!%p399_p3), %vm512_vm12, 1, %v4184_v22  ;;  %v520_v24 = vsel (!%p399_p3), %vm513_vm13, 1, %v4184_v22  ;;  %v4450_v25 = vsub.s32 (!%p399_p3), %v4413_v10, %v4443_v19  ;;  %vm4452_vm14 = vmand (!%p399_p3), %vm512_vm12, %vm513_vm13 }
 0x1da   : > { %v3806_v30 = vrot.slane (!%p399_p3), %v515_v23, 9  ;;  %v3807_v31 = vrot.slane (!%p399_p3), %v520_v24, 9  ;;  %v3808_v32 = vrot.slane (!%p399_p3), %v515_v23, 10  ;;  %v3809_v33 = vrot.slane (!%p399_p3), %v520_v24, 10 }
 0x1db   : > { %v504_v34 = vrot.slane (!%p399_p3), %v502_v21, 5  ;;  %v508_v35 = vrot.slane (!%p399_p3), %v502_v21, 6  ;;  %v607_v36 = vrot.slane (!%p399_p3), %v4450_v25, %v4429_v29  ;;  %v4459_v37 = vsub.s32 (!%p399_p3), 4, %v4423_v27 }
 0x1dc   : > { %vm4461_vm15 = vcmp.ne.s32.totalorder (!%p399_p3), %v3806_v30, 0  ;;  %vm4465_vm0 = vcmp.ne.s32.totalorder (!%p399_p3), %v3807_v31, 0  ;;  %vm4469_vm1 = vcmp.ne.s32.totalorder (!%p399_p3), %v3808_v32, 0  ;;  %vm4473_vm2 = vcmp.ne.s32.totalorder (!%p399_p3), %v3809_v33, 0 }
 0x1dd   : > { %v505_v41 = vrot.slane (!%p399_p3), %v504_v34, 4  ;;  %v509_v42 = vrot.slane (!%p399_p3), %v508_v35, 4  ;;  %vm519_vm3 = vmand (!%p399_p3), %vm4452_vm14, %vm4461_vm15  ;;  %v4482_v43 = vrot.slane (!%p399_p3), %v607_v36, %v4426_v28  ;;  %v891_v44 = vmul.f32 (!%p399_p3), 0.0, %v501_v18 }
 0x1de   : > { %vm4486_vm4 = vmand (!%p399_p3), %vm519_vm3, %vm4465_vm0  ;;  %v4491_v46 = vadd.s32 (!%p399_p3), 1, %v4396_v4  ;;  %v603_v47 = vrot.slane (!%p399_p3), %v4450_v25, %v4426_v28  ;;  %v4496_v48 = vadd.s32 (!%p399_p3), 16, %v4423_v27  ;;  %v4499_v49 = vadd.s32 (!%p399_p3), 24, %v4423_v27 }
 0x1df   : > { %v4501_v50 = vmul.f32 %v505_v41, %v502_v21  ;;  %vm528_vm5 = vmand %vm4486_vm4, %vm4469_vm1  ;;  %vm617_vm6 = vcmp.eq.s32.totalorder %v4423_v27, %v4482_v43  ;;  %vm619_vm7 = vcmp.eq.s32.totalorder %v4437_v16, %v4482_v43  ;;  %v892_v51 = vadd.f32 %v891_v44, %v4394_v2 }
 0x1e0   : > { %vm532_vm8 = vmand %vm528_vm5, %vm4473_vm2  ;;  %vm896_vm9 = vcmp.ge.s32.totalorder %v4491_v46, 0  ;;  %vm897_vm10 = vcmp.lt.s32.totalorder %v4491_v46, 8  ;;  %v4517_v52 = vrot.slane %v4491_v46, 6  ;;  %v1281_v53 = vrot.slane %v4491_v46, 7 }
 0x1e1   : > { %v511_v54 = vmul.f32 %v509_v42, %v4501_v50  ;;  %v4521_v55 = vmul.f32 %v892_v51, %v505_v41  ;;  %vm4523_vm11 = vmand %vm896_vm9, %vm897_vm10  ;;  %v1263_v2 = vrot.slane %v892_v51, 5  ;;  %v1268_v57 = vsel %vm896_vm9, 1, %v4184_v22 }
 0x1e2   : > { %vm899_vm12 = vmand %vm4523_vm11, %vm4461_vm15  ;;  %v905_v58 = vadd.s32 %v4517_v52, %v281_v9  ;;  %v3810_v59 = vrot.slane %v1268_v57, 9  ;;  %v4534_v60 = vsel %vm897_vm10, 1, %v4184_v22  ;;  %v1282_v61 = vadd.s32 %v1281_v53, %v278_v5 }
 0x1e3   : > { %v4540_v62 = vsel %vm532_vm8, %v511_v54, 0.0  ;;  %v894_v63 = vmul.f32 %v4521_v55, %v509_v42  ;;  %vm4545_vm13 = vmand %vm899_vm12, %vm4465_vm0  ;;  %v1264_v7 = vrot.slane %v1263_v2, 4  ;;  %v3811_v9 = vrot.slane %v4534_v60, 9 }
 0x1e4   : > { %v688_v1 = vrot.slane %v4540_v62, %v4459_v37  ;;  %vm901_vm15 = vmand %vm4545_vm13, %vm4469_vm1  ;;  %v4557_v5 = vsub.s32 %v905_v58, %v4443_v19  ;;  %vm4559_vm3 = vcmp.ne.s32.totalorder %v3810_v59, 0  ;;  %v1283_v11 = vmul.u32 8, %v1282_v61 }
 0x1e5   : > { %vm902_vm0 = vmand %vm901_vm15, %vm4473_vm2  ;;  %v4565_v12 = vmul.f32 %v1264_v7, %v502_v21  ;;  %vm4567_vm5 = vcmp.ne.s32.totalorder %v3811_v9, 0  ;;  %v4571_v14 = vmul.f32 %v1264_v7, %v892_v51  ;;  %v2005_v15 = vrot.slane %v892_v51, 6 }
 0x1e6   : > { %v4574_v17 = vrot.slane %v688_v1, %v4446_v20  ;;  %v4576_v18 = vsel %vm902_vm0, %v894_v63, 0.0  ;;  %v978_v22 = vrot.slane %v4557_v5, %v4429_v29  ;;  %vm1272_vm8 = vmand %vm4452_vm14, %vm4559_vm3  ;;  %v1284_v21 = vadd.s32 %v1283_v11, %v4407_v8 }
 0x1e7   : > { %v1055_v23 = vrot.slane %v4576_v18, %v4446_v20  ;;  %v1059_v24 = vrot.slane %v4576_v18, %v4459_v37  ;;  %v1267_v30 = vmul.f32 %v4565_v12, %v509_v42  ;;  %vm4592_vm9 = vmand %vm1272_vm8, %vm4567_vm5  ;;  %v1642_v32 = vmul.f32 %v4571_v14, %v509_v42 }
 0x1e8   : > { %v700_v26 = vsel %vm617_vm6, %v4574_v17, 0.0  ;;  %v702_v33 = vsel %vm619_vm7, %v4574_v17, 0.0  ;;  %v4606_v34 = vrot.slane %v978_v22, %v4426_v28  ;;  %vm1278_vm14 = vmand %vm4592_vm9, %vm4469_vm1  ;;  %v4613_v35 = vsub.s32 %v1284_v21, %v4443_v19 }
 0x1e9   : > { %v4616_v36 = vrot.slane %v1059_v24, %v4446_v20  ;;  %vm1279_vm6 = vmand %vm1278_vm14, %vm4473_vm2  ;;  %v1648_v38 = vadd.s32 %v1283_v11, %v4517_v52  ;;  %v2006_v10 = vrot.slane %v2005_v15, 4  ;;  %v3812_v41 = vrot.slane %v1268_v57, 10 }
 0x1ea   : > { %vm988_vm7 = vcmp.eq.s32.totalorder %v4423_v27, %v4606_v34  ;;  %vm990_vm10 = vcmp.eq.s32.totalorder %v4437_v16, %v4606_v34  ;;  %v4625_v42 = vsel %vm1279_vm6, %v1267_v30, 0.0  ;;  %v1357_v44 = vrot.slane %v4613_v35, %v4429_v29  ;;  %vm1643_vm12 = vmand %vm4523_vm11, %vm4559_vm3 }
 0x1eb   : > { %v1071_v51 = vsel %vm988_vm7, %v4616_v36, 0.0  ;;  %v1073_v54 = vsel %vm990_vm10, %v4616_v36, 0.0  ;;  %v1434_v2 = vrot.slane %v4625_v42, %v4446_v20  ;;  %v1438_v57 = vrot.slane %v4625_v42, %v4459_v37  ;;  %vm4641_vm15 = vmand %vm1643_vm12, %vm4567_vm5 }
 0x1ec   : > { %v1135_v59 = vadd.f32 %v1071_v51, %v700_v26  ;;  %v1137_v61 = vadd.f32 %v1073_v54, %v702_v33  ;;  %v4646_v56 = vrot.slane %v1357_v44, %v4426_v28  ;;  %vm1645_vm11 = vmand %vm4641_vm15, %vm4469_vm1  ;;  %v4653_v63 = vsub.s32 %v1648_v38, %v4443_v19 }
 0x1ed   : > { %v4656_v7 = vrot.slane %v1438_v57, %v4446_v20  ;;  %vm1646_vm3 = vmand %vm1645_vm11, %vm4473_vm2  ;;  %v2008_v9 = vmul.f32 %v2006_v10, %v4501_v50  ;;  %vm4661_vm0 = vcmp.ne.s32.totalorder %v3812_v41, 0  ;;  %v3813_v39 = vrot.slane %v4534_v60, 10 }
 0x1ee   : > { %vm1367_vm1 = vcmp.eq.s32.totalorder %v4423_v27, %v4646_v56  ;;  %vm1369_vm5 = vcmp.eq.s32.totalorder %v4437_v16, %v4646_v56  ;;  %v4670_v3 = vsel %vm1646_vm3, %v1642_v32, 0.0  ;;  %v1721_v40 = vrot.slane %v4653_v63, %v4429_v29  ;;  %vm2012_vm2 = vmand %vm4486_vm4, %vm4661_vm0 }
 0x1ef   : > { %v1450_v50 = vsel %vm1367_vm1, %v4656_v7, 0.0  ;;  %v1452_v60 = vsel %vm1369_vm5, %v4656_v7, 0.0  ;;  %v1798_v11 = vrot.slane %v4670_v3, %v4446_v20  ;;  %v1802_v13 = vrot.slane %v4670_v3, %v4459_v37  ;;  %vm2379_vm8 = vmand %vm4545_vm13, %vm4661_vm0 }
 0x1f0   : > { %v1514_v15 = vadd.f32 %v1450_v50, %v1135_v59  ;;  %v1516_v22 = vadd.f32 %v1452_v60, %v1137_v61  ;;  %v4689_v45 = vrot.slane %v1721_v40, %v4426_v28  ;;  %vm4691_vm4 = vcmp.ne.s32.totalorder %v3813_v39, 0  ;;  %vm2740_vm14 = vmand %vm4592_vm9, %vm4661_vm0 }
 0x1f1   : > { %v4700_v24 = vrot.slane %v1802_v13, %v4446_v20  ;;  %vm2016_vm13 = vmand %vm2012_vm2, %vm4691_vm4  ;;  %v2018_v0 = vmul.u32 8, %v4491_v46  ;;  %v2378_v30 = vmul.f32 %v2006_v10, %v4521_v55  ;;  %v2739_v32 = vmul.f32 %v2006_v10, %v4565_v12 }
 0x1f2   : > { %vm1731_vm6 = vcmp.eq.s32.totalorder %v4423_v27, %v4689_v45  ;;  %vm1733_vm7 = vcmp.eq.s32.totalorder %v4437_v16, %v4689_v45  ;;  %v4711_v26 = vsel %vm2016_vm13, %v2008_v9, 0.0  ;;  %vm2380_vm10 = vmand %vm2379_vm8, %vm4691_vm4  ;;  %v3102_v33 = vmul.f32 %v2006_v10, %v4571_v14 }
 0x1f3   : > { %v1814_v38 = vsel %vm1731_vm6, %v4700_v24, 0.0  ;;  %v1816_v41 = vsel %vm1733_vm7, %v4700_v24, 0.0  ;;  %v2019_v55 = vadd.s32 %v2018_v0, %v279_v6  ;;  %v2175_v12 = vrot.slane %v4711_v26, %v4459_v37  ;;  %vm2741_vm12 = vmand %vm2740_vm14, %vm4691_vm4 }
 0x1f4   : > { %v1878_v44 = vadd.f32 %v1814_v38, %v1514_v15  ;;  %v1880_v14 = vadd.f32 %v1816_v41, %v1516_v22  ;;  %v4729_v10 = vsel %vm2380_vm10, %v2378_v30, 0.0  ;;  %v4731_v51 = vsel %vm2741_vm12, %v2739_v32, 0.0  ;;  %vm3103_vm11 = vmand %vm4641_vm15, %vm4661_vm0 }
 0x1f5   : > { %v2020_v4 = vmul.u32 8, %v2019_v55  ;;  %v4738_v6 = vrot.slane %v2175_v12, %v4446_v20  ;;  %v2536_v31 = vrot.slane %v4729_v10, %v4459_v37  ;;  %v2743_v54 = vadd.s32 %v2018_v0, %v1281_v53  ;;  %vm3104_vm9 = vmand %vm3103_vm11, %vm4691_vm4 }
 0x1f6   : > { %v2899_v57 = vrot.slane %v4731_v51, %v4459_v37  ;;  %v4748_v59 = vsel %vm3104_vm9, %v3102_v33, 0.0  ;;  %v4754_v58 = vrot.slane %v603_v47, %v4426_v28  ;;  %v684_v61 = vrot.slane %v4540_v62, %v4446_v20 }
 0x1f7   : > { %v2021_v46 = vadd.s32 %v2020_v4, %v4407_v8  ;;  %v2382_v53 = vadd.s32 %v2020_v4, %v4517_v52  ;;  %v4761_v9 = vrot.slane %v2536_v31, %v4446_v20  ;;  %v2744_v1 = vmul.u32 8, %v2743_v54 }
 0x1f8   : > { %v4764_v39 = vrot.slane %v2899_v57, %v4446_v20  ;;  %v3260_v40 = vrot.slane %v4748_v59, %v4459_v37  ;;  %vm616_vm15 = vcmp.eq.s32.totalorder %v4423_v27, %v4754_v58  ;;  %vm618_vm3 = vcmp.eq.s32.totalorder %v4437_v16, %v4754_v58 }
 0x1f9   : > { %v4773_v25 = vsub.s32 %v2021_v46, %v4443_v19  ;;  %v4776_v47 = vsub.s32 %v2382_v53, %v4443_v19  ;;  %v2745_v62 = vadd.s32 %v2744_v1, %v4407_v8  ;;  %v3106_v50 = vadd.s32 %v2744_v1, %v4517_v52 }
 0x1fa   : > { %v4781_v60 = vrot.slane %v3260_v40, %v4446_v20  ;;  %v4784_v37 = vrot.slane %v684_v61, %v4446_v20  ;;  %v974_v13 = vrot.slane %v4557_v5, %v4426_v28  ;;  %v4792_v15 = vrot.slane %v1055_v23, %v4446_v20 }
 0x1fb   : > { %v2094_v8 = vrot.slane %v4773_v25, %v4429_v29  ;;  %v2455_v52 = vrot.slane %v4776_v47, %v4429_v29  ;;  %v4799_v22 = vsub.s32 %v2745_v62, %v4443_v19  ;;  %v4802_v21 = vsub.s32 %v3106_v50, %v4443_v19 }
 0x1fc   : > { %v699_v5 = vsel %vm616_vm15, %v4784_v37, 0.0  ;;  %v701_v0 = vsel %vm618_vm3, %v4784_v37, 0.0  ;;  %v4807_v18 = vrot.slane %v974_v13, %v4426_v28  ;;  %v1353_v23 = vrot.slane %v4613_v35, %v4426_v28 }
 0x1fd   : > { %v4812_v30 = vrot.slane %v2094_v8, %v4426_v28  ;;  %v4815_v32 = vrot.slane %v2455_v52, %v4426_v28  ;;  %v2818_v19 = vrot.slane %v4799_v22, %v4429_v29  ;;  %v3179_v33 = vrot.slane %v4802_v21, %v4429_v29 }
 0x1fe   : > { %vm987_vm0 = vcmp.eq.s32.totalorder %v4423_v27, %v4807_v18  ;;  %vm989_vm1 = vcmp.eq.s32.totalorder %v4437_v16, %v4807_v18  ;;  %v4826_v35 = vrot.slane %v1353_v23, %v4426_v28  ;;  %v4832_v38 = vrot.slane %v1434_v2, %v4446_v20 }
 0x1ff   : > { %vm2104_vm5 = vcmp.eq.s32.totalorder %v4423_v27, %v4812_v30  ;;  %vm2106_vm2 = vcmp.eq.s32.totalorder %v4437_v16, %v4812_v30  ;;  %vm2465_vm8 = vcmp.eq.s32.totalorder %v4423_v27, %v4815_v32  ;;  %vm2467_vm4 = vcmp.eq.s32.totalorder %v4437_v16, %v4815_v32 }
 0x200   : > { %v2187_v29 = vsel %vm2104_vm5, %v4738_v6, 0.0  ;;  %v2189_v41 = vsel %vm2106_vm2, %v4738_v6, 0.0  ;;  %v2548_v42 = vsel %vm2465_vm8, %v4761_v9, 0.0  ;;  %v2550_v2 = vsel %vm2467_vm4, %v4761_v9, 0.0 }
 0x201   : > { %v2251_v55 = vadd.f32 %v2187_v29, %v1878_v44  ;;  %v2253_v12 = vadd.f32 %v2189_v41, %v1880_v14  ;;  %v4847_v4 = vrot.slane %v2818_v19, %v4426_v28  ;;  %v4850_v31 = vrot.slane %v3179_v33, %v4426_v28 }
 0x202   : > { %v1070_v54 = vsel %vm987_vm0, %v4792_v15, 0.0  ;;  %v1072_v57 = vsel %vm989_vm1, %v4792_v15, 0.0  ;;  %vm1366_vm14 = vcmp.eq.s32.totalorder %v4423_v27, %v4826_v35  ;;  %vm1368_vm13 = vcmp.eq.s32.totalorder %v4437_v16, %v4826_v35 }
 0x203   : > { %v2612_v44 = vadd.f32 %v2548_v42, %v2251_v55  ;;  %v2614_v14 = vadd.f32 %v2550_v2, %v2253_v12  ;;  %vm2828_vm6 = vcmp.eq.s32.totalorder %v4423_v27, %v4847_v4  ;;  %vm2830_vm7 = vcmp.eq.s32.totalorder %v4437_v16, %v4847_v4 }
 0x204   : > { %v2911_v61 = vsel %vm2828_vm6, %v4764_v39, 0.0  ;;  %v2913_v46 = vsel %vm2830_vm7, %v4764_v39, 0.0  ;;  %vm3189_vm10 = vcmp.eq.s32.totalorder %v4423_v27, %v4850_v31  ;;  %vm3191_vm12 = vcmp.eq.s32.totalorder %v4437_v16, %v4850_v31 }
 0x205   : > { %v2975_v53 = vadd.f32 %v2911_v61, %v2612_v44  ;;  %v2977_v1 = vadd.f32 %v2913_v46, %v2614_v14  ;;  %v3272_v40 = vsel %vm3189_vm10, %v4781_v60, 0.0  ;;  %v3274_v62 = vsel %vm3191_vm12, %v4781_v60, 0.0 }
 0x206   : > { %v1134_v50 = vadd.f32 %v1070_v54, %v699_v5  ;;  %v1136_v13 = vadd.f32 %v1072_v57, %v701_v0  ;;  %v1449_v8 = vsel %vm1366_vm14, %v4832_v38, 0.0  ;;  %v1451_v52 = vsel %vm1368_vm13, %v4832_v38, 0.0 }
 0x207   : > { %v3336_v23 = vadd.f32 %v3272_v40, %v2975_v53  ;;  %v3338_v19 = vadd.f32 %v3274_v62, %v2977_v1  ;;  %v1717_v33 = vrot.slane %v4653_v63, %v4426_v28  ;;  %v4890_v5 = vrot.slane %v1798_v11, %v4446_v20 }
 0x208   : > { %v1513_v0 = vadd.f32 %v1449_v8, %v1134_v50  ;;  %v1515_v29 = vadd.f32 %v1451_v52, %v1136_v13  ;;  %v2090_v41 = vrot.slane %v4773_v25, %v4426_v28  ;;  %v2171_v42 = vrot.slane %v4711_v26, %v4446_v20 }
 0x209   : > { %v3820_v2 = vpack.c.bf16 %v3338_v19, %v3336_v23  ;;  %v4897_v55 = vrot.slane %v1717_v33, %v4426_v28  ;;  %v2451_v63 = vrot.slane %v4776_v47, %v4426_v28  ;;  %v2532_v3 = vrot.slane %v4729_v10, %v4446_v20 }
 0x20a   : > { %v4904_v11 = vrot.slane %v2090_v41, %v4426_v28  ;;  %v4907_v12 = vrot.slane %v2171_v42, %v4446_v20  ;;  %v2814_v25 = vrot.slane %v4799_v22, %v4426_v28  ;;  %v2895_v26 = vrot.slane %v4731_v51, %v4446_v20 }
 0x20b   : > { %3821 = vmatprep.subr.bf16.mxu0 %v3820_v2  ;;  %vm1730_vm11 = vcmp.eq.s32.totalorder %v4423_v27, %v4897_v55  ;;  %vm1732_vm9 = vcmp.eq.s32.totalorder %v4437_v16, %v4897_v55  ;;  %v4918_v10 = vrot.slane %v2451_v63, %v4426_v28  ;;  %v4921_v47 = vrot.slane %v2532_v3, %v4446_v20 }
 0x20c   : > { %v1813_v54 = vsel %vm1730_vm11, %v4890_v5, 0.0  ;;  %v1815_v22 = vsel %vm1732_vm9, %v4890_v5, 0.0  ;;  %vm2103_vm15 = vcmp.eq.s32.totalorder %v4423_v27, %v4904_v11  ;;  %vm2105_vm3 = vcmp.eq.s32.totalorder %v4437_v16, %v4904_v11 }
 0x20d   : > { %v1877_v51 = vadd.f32 %v1813_v54, %v1513_v0  ;;  %v1879_v57 = vadd.f32 %v1815_v22, %v1515_v29  ;;  %v2186_v44 = vsel %vm2103_vm15, %v4907_v12, 0.0  ;;  %v2188_v14 = vsel %vm2105_vm3, %v4907_v12, 0.0 }
 0x20e   : > { %vm2464_vm0 = vcmp.eq.s32.totalorder %v4423_v27, %v4918_v10  ;;  %vm2466_vm1 = vcmp.eq.s32.totalorder %v4437_v16, %v4918_v10  ;;  %v4936_v61 = vrot.slane %v2814_v25, %v4426_v28  ;;  %v4939_v46 = vrot.slane %v2895_v26, %v4446_v20 }
 0x20f   : > { %v2250_v53 = vadd.f32 %v2186_v44, %v1877_v51  ;;  %v2252_v1 = vadd.f32 %v2188_v14, %v1879_v57  ;;  %v2547_v40 = vsel %vm2464_vm0, %v4921_v47, 0.0  ;;  %v2549_v62 = vsel %vm2466_vm1, %v4921_v47, 0.0 }
 0x210   : > { %vm2827_vm5 = vcmp.eq.s32.totalorder %v4423_v27, %v4936_v61  ;;  %vm2829_vm2 = vcmp.eq.s32.totalorder %v4437_v16, %v4936_v61  ;;  %v3175_v50 = vrot.slane %v4802_v21, %v4426_v28  ;;  %v3256_v13 = vrot.slane %v4748_v59, %v4446_v20 }
 0x211   : > { %v2611_v8 = vadd.f32 %v2547_v40, %v2250_v53  ;;  %v2613_v52 = vadd.f32 %v2549_v62, %v2252_v1  ;;  %v2910_v23 = vsel %vm2827_vm5, %v4939_v46, 0.0  ;;  %v2912_v19 = vsel %vm2829_vm2, %v4939_v46, 0.0 }
 0x212   : > { %v4954_v33 = vrot.slane %v3175_v50, %v4426_v28  ;;  %v4957_v0 = vrot.slane %v3256_v13, %v4446_v20  ;;  %vm621_vm8 = vcmp.eq.s32.totalorder %v4496_v48, %v4482_v43  ;;  %vm623_vm4 = vcmp.eq.s32.totalorder %v4499_v49, %v4482_v43 }
 0x213   : > { %v2974_v21 = vadd.f32 %v2910_v23, %v2611_v8  ;;  %v2976_v59 = vadd.f32 %v2912_v19, %v2613_v52  ;;  %v704_v29 = vsel %vm621_vm8, %v4574_v17, 0.0  ;;  %v706_v41 = vsel %vm623_vm4, %v4574_v17, 0.0 }
 0x214   : > { %vm3188_vm14 = vcmp.eq.s32.totalorder %v4423_v27, %v4954_v33  ;;  %vm3190_vm13 = vcmp.eq.s32.totalorder %v4437_v16, %v4954_v33  ;;  %vm992_vm6 = vcmp.eq.s32.totalorder %v4496_v48, %v4606_v34  ;;  %vm994_vm7 = vcmp.eq.s32.totalorder %v4499_v49, %v4606_v34 }
 0x215   : > { %v3271_v28 = vsel %vm3188_vm14, %v4957_v0, 0.0  ;;  %v3273_v20 = vsel %vm3190_vm13, %v4957_v0, 0.0  ;;  %v1075_v42 = vsel %vm992_vm6, %v4616_v36, 0.0  ;;  %v1077_v2 = vsel %vm994_vm7, %v4616_v36, 0.0 }
 0x216   : > { %v3335_v63 = vadd.f32 %v3271_v28, %v2974_v21  ;;  %v3337_v3 = vadd.f32 %v3273_v20, %v2976_v59  ;;  %v1139_v25 = vadd.f32 %v1075_v42, %v704_v29  ;;  %v1141_v26 = vadd.f32 %v1077_v2, %v706_v41 }
 0x217   : > { %vm1371_vm10 = vcmp.eq.s32.totalorder %v4496_v48, %v4646_v56  ;;  %vm1373_vm12 = vcmp.eq.s32.totalorder %v4499_v49, %v4646_v56  ;;  %vm1735_vm11 = vcmp.eq.s32.totalorder %v4496_v48, %v4689_v45  ;;  %vm1737_vm9 = vcmp.eq.s32.totalorder %v4499_v49, %v4689_v45 }
 0x218   : > { %v3822_v16 = vpack.c.bf16 %v3337_v3, %v3335_v63  ;;  %v1454_v54 = vsel %vm1371_vm10, %v4656_v7, 0.0  ;;  %v1456_v22 = vsel %vm1373_vm12, %v4656_v7, 0.0  ;;  %v1818_v51 = vsel %vm1735_vm11, %v4700_v24, 0.0 }
 0x219   : > { %v1518_v57 = vadd.f32 %v1454_v54, %v1139_v25  ;;  %v1520_v44 = vadd.f32 %v1456_v22, %v1141_v26  ;;  %v1820_v14 = vsel %vm1737_vm9, %v4700_v24, 0.0  ;;  %vm2108_vm15 = vcmp.eq.s32.totalorder %v4496_v48, %v4812_v30 }
 0x21a   : > { %3823 = vmatpush1.bf16.msra.mxu0 %v3822_v16  ;;  %vm2110_vm3 = vcmp.eq.s32.totalorder %v4499_v49, %v4812_v30  ;;  %v2191_v53 = vsel %vm2108_vm15, %v4738_v6, 0.0  ;;  %vm2469_vm0 = vcmp.eq.s32.totalorder %v4496_v48, %v4815_v32  ;;  %vm2471_vm1 = vcmp.eq.s32.totalorder %v4499_v49, %v4815_v32 }
 0x21b   : > { %v1882_v1 = vadd.f32 %v1818_v51, %v1518_v57  ;;  %v1884_v40 = vadd.f32 %v1820_v14, %v1520_v44  ;;  %v2193_v62 = vsel %vm2110_vm3, %v4738_v6, 0.0  ;;  %v2552_v50 = vsel %vm2469_vm0, %v4761_v9, 0.0 }
 0x21c   : > { %v2554_v13 = vsel %vm2471_vm1, %v4761_v9, 0.0  ;;  %vm2832_vm5 = vcmp.eq.s32.totalorder %v4496_v48, %v4847_v4  ;;  %vm2834_vm2 = vcmp.eq.s32.totalorder %v4499_v49, %v4847_v4  ;;  %vm3193_vm8 = vcmp.eq.s32.totalorder %v4496_v48, %v4850_v31 }
 0x21d   : > { %v2255_v8 = vadd.f32 %v2191_v53, %v1882_v1  ;;  %v2257_v52 = vadd.f32 %v2193_v62, %v1884_v40  ;;  %v2915_v23 = vsel %vm2832_vm5, %v4764_v39, 0.0  ;;  %v2917_v19 = vsel %vm2834_vm2, %v4764_v39, 0.0 }
 0x21e   : > { %vm3195_vm4 = vcmp.eq.s32.totalorder %v4499_v49, %v4850_v31  ;;  %v3276_v21 = vsel %vm3193_vm8, %v4781_v60, 0.0  ;;  %vm620_vm14 = vcmp.eq.s32.totalorder %v4496_v48, %v4754_v58  ;;  %vm622_vm13 = vcmp.eq.s32.totalorder %v4499_v49, %v4754_v58 }
 0x21f   : > { %v2616_v59 = vadd.f32 %v2552_v50, %v2255_v8  ;;  %v2618_v29 = vadd.f32 %v2554_v13, %v2257_v52  ;;  %v3278_v41 = vsel %vm3195_vm4, %v4781_v60, 0.0  ;;  %v703_v28 = vsel %vm620_vm14, %v4784_v37, 0.0 }
 0x220   : > { %v705_v20 = vsel %vm622_vm13, %v4784_v37, 0.0  ;;  %vm991_vm6 = vcmp.eq.s32.totalorder %v4496_v48, %v4807_v18  ;;  %vm993_vm7 = vcmp.eq.s32.totalorder %v4499_v49, %v4807_v18  ;;  %vm1370_vm10 = vcmp.eq.s32.totalorder %v4496_v48, %v4826_v35 }
 0x221   : > { %v2979_v42 = vadd.f32 %v2915_v23, %v2616_v59  ;;  %v2981_v2 = vadd.f32 %v2917_v19, %v2618_v29  ;;  %v1074_v63 = vsel %vm991_vm6, %v4792_v15, 0.0  ;;  %v1076_v3 = vsel %vm993_vm7, %v4792_v15, 0.0 }
 0x222   : > { %v1138_v25 = vadd.f32 %v1074_v63, %v703_v28  ;;  %v1140_v26 = vadd.f32 %v1076_v3, %v705_v20  ;;  %vm1372_vm12 = vcmp.eq.s32.totalorder %v4499_v49, %v4826_v35  ;;  %v1453_v16 = vsel %vm1370_vm10, %v4832_v38, 0.0 }
 0x223   : > { %v3340_v54 = vadd.f32 %v3276_v21, %v2979_v42  ;;  %v3342_v22 = vadd.f32 %v3278_v41, %v2981_v2  ;;  %v1455_v51 = vsel %vm1372_vm12, %v4832_v38, 0.0  ;;  %vm1734_vm11 = vcmp.eq.s32.totalorder %v4496_v48, %v4897_v55 }
 0x224   : > { %v1517_v57 = vadd.f32 %v1453_v16, %v1138_v25  ;;  %v1519_v44 = vadd.f32 %v1455_v51, %v1140_v26  ;;  %vm1736_vm9 = vcmp.eq.s32.totalorder %v4499_v49, %v4897_v55  ;;  %v1817_v14 = vsel %vm1734_vm11, %v4890_v5, 0.0 }
 0x225   : > { %v3824_v53 = vpack.c.bf16 %v3342_v22, %v3340_v54  ;;  %v1819_v1 = vsel %vm1736_vm9, %v4890_v5, 0.0  ;;  %vm2107_vm15 = vcmp.eq.s32.totalorder %v4496_v48, %v4904_v11  ;;  %vm2109_vm3 = vcmp.eq.s32.totalorder %v4499_v49, %v4904_v11 }
 0x226   : > { %v1881_v40 = vadd.f32 %v1817_v14, %v1517_v57  ;;  %v1883_v62 = vadd.f32 %v1819_v1, %v1519_v44  ;;  %v2190_v50 = vsel %vm2107_vm15, %v4907_v12, 0.0  ;;  %v2192_v13 = vsel %vm2109_vm3, %v4907_v12, 0.0 }
 0x227   : > { %3825 = vmatprep.subr.bf16.mxu0 %v3824_v53  ;;  %vm2468_vm0 = vcmp.eq.s32.totalorder %v4496_v48, %v4918_v10  ;;  %vm2470_vm1 = vcmp.eq.s32.totalorder %v4499_v49, %v4918_v10  ;;  %vm2831_vm5 = vcmp.eq.s32.totalorder %v4496_v48, %v4936_v61  ;;  %vm2833_vm2 = vcmp.eq.s32.totalorder %v4499_v49, %v4936_v61 }
 0x228   : > { %v2254_v8 = vadd.f32 %v2190_v50, %v1881_v40  ;;  %v2256_v52 = vadd.f32 %v2192_v13, %v1883_v62  ;;  %v2551_v23 = vsel %vm2468_vm0, %v4921_v47, 0.0  ;;  %v2553_v19 = vsel %vm2470_vm1, %v4921_v47, 0.0 }
 0x229   : > { %v2914_v21 = vsel %vm2831_vm5, %v4939_v46, 0.0  ;;  %v2916_v59 = vsel %vm2833_vm2, %v4939_v46, 0.0  ;;  %vm3192_vm8 = vcmp.eq.s32.totalorder %v4496_v48, %v4954_v33  ;;  %vm3194_vm4 = vcmp.eq.s32.totalorder %v4499_v49, %v4954_v33 }
 0x22a   : > { %v2615_v29 = vadd.f32 %v2551_v23, %v2254_v8  ;;  %v2617_v41 = vadd.f32 %v2553_v19, %v2256_v52  ;;  %v3275_v28 = vsel %vm3192_vm8, %v4957_v0, 0.0  ;;  %v3277_v20 = vsel %vm3194_vm4, %v4957_v0, 0.0 }
 0x22b   : > { %v5062_v42 = vadd.s32 32, %v4423_v27  ;;  %v5065_v2 = vadd.s32 40, %v4423_v27  ;;  %v5068_v63 = vadd.s32 48, %v4423_v27  ;;  %v5071_v48 = vadd.s32 56, %v4423_v27 }
 0x22c   : > { %v2978_v3 = vadd.f32 %v2914_v21, %v2615_v29  ;;  %v2980_v49 = vadd.f32 %v2916_v59, %v2617_v41  ;;  %v5074_v25 = vadd.s32 64, %v4423_v27  ;;  %v5077_v26 = vadd.s32 72, %v4423_v27 }
 0x22d   : > { %vm625_vm14 = vcmp.eq.s32.totalorder %v5062_v42, %v4482_v43  ;;  %vm627_vm13 = vcmp.eq.s32.totalorder %v5065_v2, %v4482_v43  ;;  %vm996_vm6 = vcmp.eq.s32.totalorder %v5062_v42, %v4606_v34  ;;  %vm998_vm7 = vcmp.eq.s32.totalorder %v5065_v2, %v4606_v34 }
 0x22e   : > { %v3339_v16 = vadd.f32 %v3275_v28, %v2978_v3  ;;  %v3341_v54 = vadd.f32 %v3277_v20, %v2980_v49  ;;  %v708_v22 = vsel %vm625_vm14, %v4574_v17, 0.0  ;;  %v710_v51 = vsel %vm627_vm13, %v4574_v17, 0.0 }
 0x22f   : > { %v1079_v57 = vsel %vm996_vm6, %v4616_v36, 0.0  ;;  %v1081_v44 = vsel %vm998_vm7, %v4616_v36, 0.0  ;;  %vm1375_vm10 = vcmp.eq.s32.totalorder %v5062_v42, %v4646_v56  ;;  %vm1377_vm12 = vcmp.eq.s32.totalorder %v5065_v2, %v4646_v56 }
 0x230   : > { %v3826_v14 = vpack.c.bf16 %v3341_v54, %v3339_v16  ;;  %v1143_v53 = vadd.f32 %v1079_v57, %v708_v22  ;;  %v1145_v1 = vadd.f32 %v1081_v44, %v710_v51  ;;  %v1458_v40 = vsel %vm1375_vm10, %v4656_v7, 0.0 }
 0x231   : > { %v1460_v62 = vsel %vm1377_vm12, %v4656_v7, 0.0  ;;  %vm1739_vm11 = vcmp.eq.s32.totalorder %v5062_v42, %v4689_v45  ;;  %vm1741_vm9 = vcmp.eq.s32.totalorder %v5065_v2, %v4689_v45  ;;  %vm2112_vm15 = vcmp.eq.s32.totalorder %v5062_v42, %v4812_v30 }
 0x232   : > { %3827 = vmatpush1.bf16.msra.mxu0 %v3826_v14  ;;  %v1522_v50 = vadd.f32 %v1458_v40, %v1143_v53  ;;  %v1524_v13 = vadd.f32 %v1460_v62, %v1145_v1  ;;  %v1822_v8 = vsel %vm1739_vm11, %v4700_v24, 0.0  ;;  %v1824_v52 = vsel %vm1741_vm9, %v4700_v24, 0.0 }
 0x233   : > { %vm2114_vm3 = vcmp.eq.s32.totalorder %v5065_v2, %v4812_v30  ;;  %v2195_v23 = vsel %vm2112_vm15, %v4738_v6, 0.0  ;;  %vm2473_vm0 = vcmp.eq.s32.totalorder %v5062_v42, %v4815_v32  ;;  %vm2475_vm1 = vcmp.eq.s32.totalorder %v5065_v2, %v4815_v32 }
 0x234   : > { %v1886_v19 = vadd.f32 %v1822_v8, %v1522_v50  ;;  %v1888_v21 = vadd.f32 %v1824_v52, %v1524_v13  ;;  %v2197_v59 = vsel %vm2114_vm3, %v4738_v6, 0.0  ;;  %v2556_v29 = vsel %vm2473_vm0, %v4761_v9, 0.0 }
 0x235   : > { %v2558_v41 = vsel %vm2475_vm1, %v4761_v9, 0.0  ;;  %vm2836_vm5 = vcmp.eq.s32.totalorder %v5062_v42, %v4847_v4  ;;  %vm2838_vm2 = vcmp.eq.s32.totalorder %v5065_v2, %v4847_v4  ;;  %vm3197_vm8 = vcmp.eq.s32.totalorder %v5062_v42, %v4850_v31 }
 0x236   : > { %v2259_v28 = vadd.f32 %v2195_v23, %v1886_v19  ;;  %v2261_v20 = vadd.f32 %v2197_v59, %v1888_v21  ;;  %v2919_v3 = vsel %vm2836_vm5, %v4764_v39, 0.0  ;;  %v2921_v49 = vsel %vm2838_vm2, %v4764_v39, 0.0 }
 0x237   : > { %vm3199_vm4 = vcmp.eq.s32.totalorder %v5065_v2, %v4850_v31  ;;  %v3280_v16 = vsel %vm3197_vm8, %v4781_v60, 0.0  ;;  %vm624_vm14 = vcmp.eq.s32.totalorder %v5062_v42, %v4754_v58  ;;  %vm626_vm13 = vcmp.eq.s32.totalorder %v5065_v2, %v4754_v58 }
 0x238   : > { %v2620_v54 = vadd.f32 %v2556_v29, %v2259_v28  ;;  %v2622_v22 = vadd.f32 %v2558_v41, %v2261_v20  ;;  %v3282_v51 = vsel %vm3199_vm4, %v4781_v60, 0.0  ;;  %v707_v57 = vsel %vm624_vm14, %v4784_v37, 0.0 }
 0x239   : > { %v709_v44 = vsel %vm626_vm13, %v4784_v37, 0.0  ;;  %vm995_vm6 = vcmp.eq.s32.totalorder %v5062_v42, %v4807_v18  ;;  %vm997_vm7 = vcmp.eq.s32.totalorder %v5065_v2, %v4807_v18  ;;  %vm1374_vm10 = vcmp.eq.s32.totalorder %v5062_v42, %v4826_v35 }
 0x23a   : > { %v2983_v14 = vadd.f32 %v2919_v3, %v2620_v54  ;;  %v2985_v53 = vadd.f32 %v2921_v49, %v2622_v22  ;;  %v1078_v1 = vsel %vm995_vm6, %v4792_v15, 0.0  ;;  %v1080_v40 = vsel %vm997_vm7, %v4792_v15, 0.0 }
 0x23b   : > { %v1142_v62 = vadd.f32 %v1078_v1, %v707_v57  ;;  %v1144_v50 = vadd.f32 %v1080_v40, %v709_v44  ;;  %vm1376_vm12 = vcmp.eq.s32.totalorder %v5065_v2, %v4826_v35  ;;  %v1457_v13 = vsel %vm1374_vm10, %v4832_v38, 0.0 }
 0x23c   : > { %v3344_v8 = vadd.f32 %v3280_v16, %v2983_v14  ;;  %v3346_v52 = vadd.f32 %v3282_v51, %v2985_v53  ;;  %v1459_v23 = vsel %vm1376_vm12, %v4832_v38, 0.0  ;;  %vm1738_vm11 = vcmp.eq.s32.totalorder %v5062_v42, %v4897_v55 }
 0x23d   : > { %v1521_v19 = vadd.f32 %v1457_v13, %v1142_v62  ;;  %v1523_v21 = vadd.f32 %v1459_v23, %v1144_v50  ;;  %vm1740_vm9 = vcmp.eq.s32.totalorder %v5065_v2, %v4897_v55  ;;  %v1821_v59 = vsel %vm1738_vm11, %v4890_v5, 0.0 }
 0x23e   : > { %v3828_v29 = vpack.c.bf16 %v3346_v52, %v3344_v8  ;;  %v1823_v41 = vsel %vm1740_vm9, %v4890_v5, 0.0  ;;  %vm2111_vm15 = vcmp.eq.s32.totalorder %v5062_v42, %v4904_v11  ;;  %vm2113_vm3 = vcmp.eq.s32.totalorder %v5065_v2, %v4904_v11 }
 0x23f   : > { %v1885_v28 = vadd.f32 %v1821_v59, %v1521_v19  ;;  %v1887_v20 = vadd.f32 %v1823_v41, %v1523_v21  ;;  %v2194_v3 = vsel %vm2111_vm15, %v4907_v12, 0.0  ;;  %v2196_v49 = vsel %vm2113_vm3, %v4907_v12, 0.0 }
 0x240   : > { %3829 = vmatprep.subr.bf16.mxu0 %v3828_v29  ;;  %vm2472_vm0 = vcmp.eq.s32.totalorder %v5062_v42, %v4918_v10  ;;  %vm2474_vm1 = vcmp.eq.s32.totalorder %v5065_v2, %v4918_v10  ;;  %vm2835_vm5 = vcmp.eq.s32.totalorder %v5062_v42, %v4936_v61  ;;  %vm2837_vm2 = vcmp.eq.s32.totalorder %v5065_v2, %v4936_v61 }
 0x241   : > { %v2258_v16 = vadd.f32 %v2194_v3, %v1885_v28  ;;  %v2260_v54 = vadd.f32 %v2196_v49, %v1887_v20  ;;  %v2555_v22 = vsel %vm2472_vm0, %v4921_v47, 0.0  ;;  %v2557_v51 = vsel %vm2474_vm1, %v4921_v47, 0.0 }
 0x242   : > { %v2918_v57 = vsel %vm2835_vm5, %v4939_v46, 0.0  ;;  %v2920_v44 = vsel %vm2837_vm2, %v4939_v46, 0.0  ;;  %vm3196_vm8 = vcmp.eq.s32.totalorder %v5062_v42, %v4954_v33  ;;  %vm3198_vm4 = vcmp.eq.s32.totalorder %v5065_v2, %v4954_v33 }
 0x243   : > { %v2619_v14 = vadd.f32 %v2555_v22, %v2258_v16  ;;  %v2621_v53 = vadd.f32 %v2557_v51, %v2260_v54  ;;  %v3279_v1 = vsel %vm3196_vm8, %v4957_v0, 0.0  ;;  %v3281_v40 = vsel %vm3198_vm4, %v4957_v0, 0.0 }
 0x244   : > { %vm629_vm14 = vcmp.eq.s32.totalorder %v5068_v63, %v4482_v43  ;;  %vm631_vm13 = vcmp.eq.s32.totalorder %v5071_v48, %v4482_v43  ;;  %vm1000_vm6 = vcmp.eq.s32.totalorder %v5068_v63, %v4606_v34  ;;  %vm1002_vm7 = vcmp.eq.s32.totalorder %v5071_v48, %v4606_v34 }
 0x245   : > { %v2982_v42 = vadd.f32 %v2918_v57, %v2619_v14  ;;  %v2984_v2 = vadd.f32 %v2920_v44, %v2621_v53  ;;  %v712_v62 = vsel %vm629_vm14, %v4574_v17, 0.0  ;;  %v714_v50 = vsel %vm631_vm13, %v4574_v17, 0.0 }
 0x246   : > { %v1083_v13 = vsel %vm1000_vm6, %v4616_v36, 0.0  ;;  %v1085_v8 = vsel %vm1002_vm7, %v4616_v36, 0.0  ;;  %vm1379_vm10 = vcmp.eq.s32.totalorder %v5068_v63, %v4646_v56  ;;  %vm1381_vm12 = vcmp.eq.s32.totalorder %v5071_v48, %v4646_v56 }
 0x247   : > { %v3343_v52 = vadd.f32 %v3279_v1, %v2982_v42  ;;  %v3345_v23 = vadd.f32 %v3281_v40, %v2984_v2  ;;  %v1147_v19 = vadd.f32 %v1083_v13, %v712_v62  ;;  %v1149_v21 = vadd.f32 %v1085_v8, %v714_v50 }
 0x248   : > { %v1462_v59 = vsel %vm1379_vm10, %v4656_v7, 0.0  ;;  %v1464_v29 = vsel %vm1381_vm12, %v4656_v7, 0.0  ;;  %vm1743_vm11 = vcmp.eq.s32.totalorder %v5068_v63, %v4689_v45  ;;  %vm1745_vm9 = vcmp.eq.s32.totalorder %v5071_v48, %v4689_v45 }
 0x249   : > { %v3830_v41 = vpack.c.bf16 %v3345_v23, %v3343_v52  ;;  %v1526_v28 = vadd.f32 %v1462_v59, %v1147_v19  ;;  %v1528_v20 = vadd.f32 %v1464_v29, %v1149_v21  ;;  %v1826_v3 = vsel %vm1743_vm11, %v4700_v24, 0.0 }
 0x24a   : > { %v1828_v49 = vsel %vm1745_vm9, %v4700_v24, 0.0  ;;  %vm2116_vm15 = vcmp.eq.s32.totalorder %v5068_v63, %v4812_v30  ;;  %vm2118_vm3 = vcmp.eq.s32.totalorder %v5071_v48, %v4812_v30  ;;  %vm2477_vm0 = vcmp.eq.s32.totalorder %v5068_v63, %v4815_v32 }
 0x24b   : > { %3831 = vmatpush1.bf16.msra.mxu0 %v3830_v41  ;;  %v1890_v16 = vadd.f32 %v1826_v3, %v1526_v28  ;;  %v1892_v54 = vadd.f32 %v1828_v49, %v1528_v20  ;;  %v2199_v22 = vsel %vm2116_vm15, %v4738_v6, 0.0  ;;  %v2201_v51 = vsel %vm2118_vm3, %v4738_v6, 0.0 }
 0x24c   : > { %vm2479_vm1 = vcmp.eq.s32.totalorder %v5071_v48, %v4815_v32  ;;  %v2560_v57 = vsel %vm2477_vm0, %v4761_v9, 0.0  ;;  %vm2840_vm5 = vcmp.eq.s32.totalorder %v5068_v63, %v4847_v4  ;;  %vm2842_vm2 = vcmp.eq.s32.totalorder %v5071_v48, %v4847_v4 }
 0x24d   : > { %v2263_v44 = vadd.f32 %v2199_v22, %v1890_v16  ;;  %v2265_v14 = vadd.f32 %v2201_v51, %v1892_v54  ;;  %v2562_v53 = vsel %vm2479_vm1, %v4761_v9, 0.0  ;;  %v2923_v1 = vsel %vm2840_vm5, %v4764_v39, 0.0 }
 0x24e   : > { %v2925_v40 = vsel %vm2842_vm2, %v4764_v39, 0.0  ;;  %vm3201_vm8 = vcmp.eq.s32.totalorder %v5068_v63, %v4850_v31  ;;  %vm3203_vm4 = vcmp.eq.s32.totalorder %v5071_v48, %v4850_v31  ;;  %vm628_vm14 = vcmp.eq.s32.totalorder %v5068_v63, %v4754_v58 }
 0x24f   : > { %v2624_v42 = vadd.f32 %v2560_v57, %v2263_v44  ;;  %v2626_v2 = vadd.f32 %v2562_v53, %v2265_v14  ;;  %v3284_v62 = vsel %vm3201_vm8, %v4781_v60, 0.0  ;;  %v3286_v50 = vsel %vm3203_vm4, %v4781_v60, 0.0 }
 0x250   : > { %vm630_vm13 = vcmp.eq.s32.totalorder %v5071_v48, %v4754_v58  ;;  %v711_v13 = vsel %vm628_vm14, %v4784_v37, 0.0  ;;  %vm999_vm6 = vcmp.eq.s32.totalorder %v5068_v63, %v4807_v18  ;;  %vm1001_vm7 = vcmp.eq.s32.totalorder %v5071_v48, %v4807_v18 }
 0x251   : > { %v2987_v8 = vadd.f32 %v2923_v1, %v2624_v42  ;;  %v2989_v52 = vadd.f32 %v2925_v40, %v2626_v2  ;;  %v713_v23 = vsel %vm630_vm13, %v4784_v37, 0.0  ;;  %v1082_v19 = vsel %vm999_vm6, %v4792_v15, 0.0 }
 0x252   : > { %v1084_v21 = vsel %vm1001_vm7, %v4792_v15, 0.0  ;;  %v1146_v59 = vadd.f32 %v1082_v19, %v711_v13  ;;  %vm1378_vm10 = vcmp.eq.s32.totalorder %v5068_v63, %v4826_v35  ;;  %vm1380_vm12 = vcmp.eq.s32.totalorder %v5071_v48, %v4826_v35 }
 0x253   : > { %v3348_v29 = vadd.f32 %v3284_v62, %v2987_v8  ;;  %v3350_v41 = vadd.f32 %v3286_v50, %v2989_v52  ;;  %v1148_v28 = vadd.f32 %v1084_v21, %v713_v23  ;;  %v1461_v20 = vsel %vm1378_vm10, %v4832_v38, 0.0 }
 0x254   : > { %v1463_v3 = vsel %vm1380_vm12, %v4832_v38, 0.0  ;;  %v1525_v49 = vadd.f32 %v1461_v20, %v1146_v59  ;;  %vm1742_vm11 = vcmp.eq.s32.totalorder %v5068_v63, %v4897_v55  ;;  %vm1744_vm9 = vcmp.eq.s32.totalorder %v5071_v48, %v4897_v55 }
 0x255   : > { %v3832_v16 = vpack.c.bf16 %v3350_v41, %v3348_v29  ;;  %v1527_v54 = vadd.f32 %v1463_v3, %v1148_v28  ;;  %v1825_v22 = vsel %vm1742_vm11, %v4890_v5, 0.0  ;;  %v1827_v51 = vsel %vm1744_vm9, %v4890_v5, 0.0 }
 0x256   : > { %v1889_v57 = vadd.f32 %v1825_v22, %v1525_v49  ;;  %vm2115_vm15 = vcmp.eq.s32.totalorder %v5068_v63, %v4904_v11  ;;  %vm2117_vm3 = vcmp.eq.s32.totalorder %v5071_v48, %v4904_v11  ;;  %vm2476_vm0 = vcmp.eq.s32.totalorder %v5068_v63, %v4918_v10 }
 0x257   : > { %3833 = vmatprep.subr.bf16.mxu0 %v3832_v16  ;;  %v1891_v44 = vadd.f32 %v1827_v51, %v1527_v54  ;;  %v2198_v14 = vsel %vm2115_vm15, %v4907_v12, 0.0  ;;  %v2200_v53 = vsel %vm2117_vm3, %v4907_v12, 0.0  ;;  %vm2478_vm1 = vcmp.eq.s32.totalorder %v5071_v48, %v4918_v10 }
 0x258   : > { %v2262_v1 = vadd.f32 %v2198_v14, %v1889_v57  ;;  %v2559_v40 = vsel %vm2476_vm0, %v4921_v47, 0.0  ;;  %v2561_v42 = vsel %vm2478_vm1, %v4921_v47, 0.0  ;;  %vm2839_vm5 = vcmp.eq.s32.totalorder %v5068_v63, %v4936_v61 }
 0x259   : > { %v2264_v2 = vadd.f32 %v2200_v53, %v1891_v44  ;;  %vm2841_vm2 = vcmp.eq.s32.totalorder %v5071_v48, %v4936_v61  ;;  %v2922_v62 = vsel %vm2839_vm5, %v4939_v46, 0.0  ;;  %vm3200_vm8 = vcmp.eq.s32.totalorder %v5068_v63, %v4954_v33 }
 0x25a   : > { %v2623_v50 = vadd.f32 %v2559_v40, %v2262_v1  ;;  %v2924_v13 = vsel %vm2841_vm2, %v4939_v46, 0.0  ;;  %vm3202_vm4 = vcmp.eq.s32.totalorder %v5071_v48, %v4954_v33  ;;  %v3283_v8 = vsel %vm3200_vm8, %v4957_v0, 0.0 }
 0x25b   : > { %v2625_v52 = vadd.f32 %v2561_v42, %v2264_v2  ;;  %v3285_v23 = vsel %vm3202_vm4, %v4957_v0, 0.0  ;;  %vm633_vm14 = vcmp.eq.s32.totalorder %v5074_v25, %v4482_v43  ;;  %vm635_vm13 = vcmp.eq.s32.totalorder %v5077_v26, %v4482_v43 }
 0x25c   : > { %v2986_v19 = vadd.f32 %v2922_v62, %v2623_v50  ;;  %v716_v63 = vsel %vm633_vm14, %v4574_v17, 0.0  ;;  %v718_v21 = vsel %vm635_vm13, %v4574_v17, 0.0  ;;  %vm1004_vm6 = vcmp.eq.s32.totalorder %v5074_v25, %v4606_v34 }
 0x25d   : > { %v2988_v48 = vadd.f32 %v2924_v13, %v2625_v52  ;;  %vm1006_vm7 = vcmp.eq.s32.totalorder %v5077_v26, %v4606_v34  ;;  %v1087_v59 = vsel %vm1004_vm6, %v4616_v36, 0.0  ;;  %vm1383_vm10 = vcmp.eq.s32.totalorder %v5074_v25, %v4646_v56 }
 0x25e   : > { %v3347_v29 = vadd.f32 %v3283_v8, %v2986_v19  ;;  %v1089_v41 = vsel %vm1006_vm7, %v4616_v36, 0.0  ;;  %v1151_v28 = vadd.f32 %v1087_v59, %v716_v63  ;;  %vm1385_vm12 = vcmp.eq.s32.totalorder %v5077_v26, %v4646_v56 }
 0x25f   : > { %v3349_v20 = vadd.f32 %v3285_v23, %v2988_v48  ;;  %v1153_v3 = vadd.f32 %v1089_v41, %v718_v21  ;;  %v1466_v49 = vsel %vm1383_vm10, %v4656_v7, 0.0  ;;  %v1468_v16 = vsel %vm1385_vm12, %v4656_v7, 0.0 }
 0x260   : > { %v1530_v54 = vadd.f32 %v1466_v49, %v1151_v28  ;;  %vm1747_vm11 = vcmp.eq.s32.totalorder %v5074_v25, %v4689_v45  ;;  %vm1749_vm9 = vcmp.eq.s32.totalorder %v5077_v26, %v4689_v45  ;;  %vm2120_vm15 = vcmp.eq.s32.totalorder %v5074_v25, %v4812_v30 }
 0x261   : > { %v3834_v22 = vpack.c.bf16 %v3349_v20, %v3347_v29  ;;  %v1532_v51 = vadd.f32 %v1468_v16, %v1153_v3  ;;  %v1830_v57 = vsel %vm1747_vm11, %v4700_v24, 0.0  ;;  %v1832_v44 = vsel %vm1749_vm9, %v4700_v24, 0.0 }
 0x262   : > { %v1894_v14 = vadd.f32 %v1830_v57, %v1530_v54  ;;  %vm2122_vm3 = vcmp.eq.s32.totalorder %v5077_v26, %v4812_v30  ;;  %v2203_v53 = vsel %vm2120_vm15, %v4738_v6, 0.0  ;;  %vm2481_vm0 = vcmp.eq.s32.totalorder %v5074_v25, %v4815_v32 }
 0x263   : > { %3835 = vmatpush1.bf16.msra.mxu0 %v3834_v22  ;;  %v1896_v1 = vadd.f32 %v1832_v44, %v1532_v51  ;;  %v2205_v40 = vsel %vm2122_vm3, %v4738_v6, 0.0  ;;  %vm2483_vm1 = vcmp.eq.s32.totalorder %v5077_v26, %v4815_v32  ;;  %v2564_v42 = vsel %vm2481_vm0, %v4761_v9, 0.0 }
 0x264   : > { %v2267_v2 = vadd.f32 %v2203_v53, %v1894_v14  ;;  %v2566_v62 = vsel %vm2483_vm1, %v4761_v9, 0.0  ;;  %vm2844_vm5 = vcmp.eq.s32.totalorder %v5074_v25, %v4847_v4  ;;  %vm2846_vm2 = vcmp.eq.s32.totalorder %v5077_v26, %v4847_v4 }
 0x265   : > { %v2269_v50 = vadd.f32 %v2205_v40, %v1896_v1  ;;  %v2927_v13 = vsel %vm2844_vm5, %v4764_v39, 0.0  ;;  %v2929_v8 = vsel %vm2846_vm2, %v4764_v39, 0.0  ;;  %vm3205_vm8 = vcmp.eq.s32.totalorder %v5074_v25, %v4850_v31 }
 0x266   : > { %v2628_v52 = vadd.f32 %v2564_v42, %v2267_v2  ;;  %vm3207_vm4 = vcmp.eq.s32.totalorder %v5077_v26, %v4850_v31  ;;  %v3288_v23 = vsel %vm3205_vm8, %v4781_v60, 0.0  ;;  %vm632_vm14 = vcmp.eq.s32.totalorder %v5074_v25, %v4754_v58 }
 0x267   : > { %v2630_v19 = vadd.f32 %v2566_v62, %v2269_v50  ;;  %v3290_v63 = vsel %vm3207_vm4, %v4781_v60, 0.0  ;;  %vm634_vm13 = vcmp.eq.s32.totalorder %v5077_v26, %v4754_v58  ;;  %v715_v21 = vsel %vm632_vm14, %v4784_v37, 0.0 }
 0x268   : > { %v2991_v48 = vadd.f32 %v2927_v13, %v2628_v52  ;;  %v717_v59 = vsel %vm634_vm13, %v4784_v37, 0.0  ;;  %vm1003_vm6 = vcmp.eq.s32.totalorder %v5074_v25, %v4807_v18  ;;  %vm1005_vm7 = vcmp.eq.s32.totalorder %v5077_v26, %v4807_v18 }
 0x269   : > { %v2993_v29 = vadd.f32 %v2929_v8, %v2630_v19  ;;  %v1086_v41 = vsel %vm1003_vm6, %v4792_v15, 0.0  ;;  %v1088_v28 = vsel %vm1005_vm7, %v4792_v15, 0.0  ;;  %vm1382_vm10 = vcmp.eq.s32.totalorder %v5074_v25, %v4826_v35 }
 0x26a   : > { %v3352_v20 = vadd.f32 %v3288_v23, %v2991_v48  ;;  %v1150_v3 = vadd.f32 %v1086_v41, %v715_v21  ;;  %v1152_v49 = vadd.f32 %v1088_v28, %v717_v59  ;;  %vm1384_vm12 = vcmp.eq.s32.totalorder %v5077_v26, %v4826_v35 }
 0x26b   : > { %v3354_v16 = vadd.f32 %v3290_v63, %v2993_v29  ;;  %v1465_v54 = vsel %vm1382_vm10, %v4832_v38, 0.0  ;;  %v1467_v22 = vsel %vm1384_vm12, %v4832_v38, 0.0  ;;  %vm1746_vm11 = vcmp.eq.s32.totalorder %v5074_v25, %v4897_v55 }
 0x26c   : > { %v1529_v51 = vadd.f32 %v1465_v54, %v1150_v3  ;;  %v1531_v57 = vadd.f32 %v1467_v22, %v1152_v49  ;;  %vm1748_vm9 = vcmp.eq.s32.totalorder %v5077_v26, %v4897_v55  ;;  %v1829_v44 = vsel %vm1746_vm11, %v4890_v5, 0.0 }
 0x26d   : > { %v3836_v14 = vpack.c.bf16 %v3354_v16, %v3352_v20  ;;  %v1831_v53 = vsel %vm1748_vm9, %v4890_v5, 0.0  ;;  %vm2119_vm15 = vcmp.eq.s32.totalorder %v5074_v25, %v4904_v11  ;;  %vm2121_vm3 = vcmp.eq.s32.totalorder %v5077_v26, %v4904_v11 }
 0x26e   : > { %v1893_v1 = vadd.f32 %v1829_v44, %v1529_v51  ;;  %v1895_v40 = vadd.f32 %v1831_v53, %v1531_v57  ;;  %v2202_v42 = vsel %vm2119_vm15, %v4907_v12, 0.0  ;;  %v2204_v2 = vsel %vm2121_vm3, %v4907_v12, 0.0 }
 0x26f   : > { %3837 = vmatprep.subr.bf16.mxu0 %v3836_v14  ;;  %vm2480_vm0 = vcmp.eq.s32.totalorder %v5074_v25, %v4918_v10  ;;  %vm2482_vm1 = vcmp.eq.s32.totalorder %v5077_v26, %v4918_v10  ;;  %vm2843_vm5 = vcmp.eq.s32.totalorder %v5074_v25, %v4936_v61  ;;  %vm2845_vm2 = vcmp.eq.s32.totalorder %v5077_v26, %v4936_v61 }
 0x270   : > { %v2266_v62 = vadd.f32 %v2202_v42, %v1893_v1  ;;  %v2268_v50 = vadd.f32 %v2204_v2, %v1895_v40  ;;  %v2563_v13 = vsel %vm2480_vm0, %v4921_v47, 0.0  ;;  %v2565_v8 = vsel %vm2482_vm1, %v4921_v47, 0.0 }
 0x271   : > { %v2926_v52 = vsel %vm2843_vm5, %v4939_v46, 0.0  ;;  %v2928_v23 = vsel %vm2845_vm2, %v4939_v46, 0.0  ;;  %vm3204_vm8 = vcmp.eq.s32.totalorder %v5074_v25, %v4954_v33  ;;  %vm3206_vm4 = vcmp.eq.s32.totalorder %v5077_v26, %v4954_v33 }
 0x272   : > { %v2627_v19 = vadd.f32 %v2563_v13, %v2266_v62  ;;  %v2629_v63 = vadd.f32 %v2565_v8, %v2268_v50  ;;  %v3287_v21 = vsel %vm3204_vm8, %v4957_v0, 0.0  ;;  %v3289_v48 = vsel %vm3206_vm4, %v4957_v0, 0.0 }
 0x273   : > { %v5368_v59 = vadd.s32 80, %v4423_v27  ;;  %v5371_v29 = vadd.s32 88, %v4423_v27  ;;  %v5374_v41 = vadd.s32 96, %v4423_v27  ;;  %v5377_v25 = vadd.s32 104, %v4423_v27 }
 0x274   : > { %v2990_v28 = vadd.f32 %v2926_v52, %v2627_v19  ;;  %v2992_v26 = vadd.f32 %v2928_v23, %v2629_v63  ;;  %v5380_v20 = vadd.s32 112, %v4423_v27  ;;  %v5383_v3 = vadd.s32 120, %v4423_v27 }
 0x275   : > { %vm637_vm14 = vcmp.eq.s32.totalorder %v5368_v59, %v4482_v43  ;;  %vm639_vm13 = vcmp.eq.s32.totalorder %v5371_v29, %v4482_v43  ;;  %vm1008_vm6 = vcmp.eq.s32.totalorder %v5368_v59, %v4606_v34  ;;  %vm1010_vm7 = vcmp.eq.s32.totalorder %v5371_v29, %v4606_v34 }
 0x276   : > { %v3351_v49 = vadd.f32 %v3287_v21, %v2990_v28  ;;  %v3353_v16 = vadd.f32 %v3289_v48, %v2992_v26  ;;  %v720_v54 = vsel %vm637_vm14, %v4574_v17, 0.0  ;;  %v722_v22 = vsel %vm639_vm13, %v4574_v17, 0.0 }
 0x277   : > { %v1091_v51 = vsel %vm1008_vm6, %v4616_v36, 0.0  ;;  %v1093_v57 = vsel %vm1010_vm7, %v4616_v36, 0.0  ;;  %vm1387_vm10 = vcmp.eq.s32.totalorder %v5368_v59, %v4646_v56  ;;  %vm1389_vm12 = vcmp.eq.s32.totalorder %v5371_v29, %v4646_v56 }
 0x278   : > { %v3838_v44 = vpack.c.bf16 %v3353_v16, %v3351_v49  ;;  %v1155_v14 = vadd.f32 %v1091_v51, %v720_v54  ;;  %v1157_v53 = vadd.f32 %v1093_v57, %v722_v22  ;;  %v1470_v1 = vsel %vm1387_vm10, %v4656_v7, 0.0 }
 0x279   : > { %v1472_v40 = vsel %vm1389_vm12, %v4656_v7, 0.0  ;;  %vm1751_vm11 = vcmp.eq.s32.totalorder %v5368_v59, %v4689_v45  ;;  %vm1753_vm9 = vcmp.eq.s32.totalorder %v5371_v29, %v4689_v45  ;;  %vm2124_vm15 = vcmp.eq.s32.totalorder %v5368_v59, %v4812_v30 }
 0x27a   : > { %3839 = vmatpush1.bf16.msra.mxu0 %v3838_v44  ;;  %v1534_v42 = vadd.f32 %v1470_v1, %v1155_v14  ;;  %v1536_v2 = vadd.f32 %v1472_v40, %v1157_v53  ;;  %v1834_v62 = vsel %vm1751_vm11, %v4700_v24, 0.0  ;;  %v1836_v50 = vsel %vm1753_vm9, %v4700_v24, 0.0 }
 0x27b   : > { %vm2126_vm3 = vcmp.eq.s32.totalorder %v5371_v29, %v4812_v30  ;;  %v2207_v13 = vsel %vm2124_vm15, %v4738_v6, 0.0  ;;  %vm2485_vm0 = vcmp.eq.s32.totalorder %v5368_v59, %v4815_v32  ;;  %vm2487_vm1 = vcmp.eq.s32.totalorder %v5371_v29, %v4815_v32 }
 0x27c   : > { %v1898_v8 = vadd.f32 %v1834_v62, %v1534_v42  ;;  %v1900_v52 = vadd.f32 %v1836_v50, %v1536_v2  ;;  %v2209_v23 = vsel %vm2126_vm3, %v4738_v6, 0.0  ;;  %v2568_v19 = vsel %vm2485_vm0, %v4761_v9, 0.0 }
 0x27d   : > { %v2570_v63 = vsel %vm2487_vm1, %v4761_v9, 0.0  ;;  %vm2848_vm5 = vcmp.eq.s32.totalorder %v5368_v59, %v4847_v4  ;;  %vm2850_vm2 = vcmp.eq.s32.totalorder %v5371_v29, %v4847_v4  ;;  %vm3209_vm8 = vcmp.eq.s32.totalorder %v5368_v59, %v4850_v31 }
 0x27e   : > { %v2271_v21 = vadd.f32 %v2207_v13, %v1898_v8  ;;  %v2273_v48 = vadd.f32 %v2209_v23, %v1900_v52  ;;  %v2931_v28 = vsel %vm2848_vm5, %v4764_v39, 0.0  ;;  %v2933_v26 = vsel %vm2850_vm2, %v4764_v39, 0.0 }
 0x27f   : > { %vm3211_vm4 = vcmp.eq.s32.totalorder %v5371_v29, %v4850_v31  ;;  %v3292_v49 = vsel %vm3209_vm8, %v4781_v60, 0.0  ;;  %vm636_vm14 = vcmp.eq.s32.totalorder %v5368_v59, %v4754_v58  ;;  %vm638_vm13 = vcmp.eq.s32.totalorder %v5371_v29, %v4754_v58 }
 0x280   : > { %v2632_v16 = vadd.f32 %v2568_v19, %v2271_v21  ;;  %v2634_v54 = vadd.f32 %v2570_v63, %v2273_v48  ;;  %v3294_v22 = vsel %vm3211_vm4, %v4781_v60, 0.0  ;;  %v719_v51 = vsel %vm636_vm14, %v4784_v37, 0.0 }
 0x281   : > { %v721_v57 = vsel %vm638_vm13, %v4784_v37, 0.0  ;;  %vm1007_vm6 = vcmp.eq.s32.totalorder %v5368_v59, %v4807_v18  ;;  %vm1009_vm7 = vcmp.eq.s32.totalorder %v5371_v29, %v4807_v18  ;;  %vm1386_vm10 = vcmp.eq.s32.totalorder %v5368_v59, %v4826_v35 }
 0x282   : > { %v2995_v44 = vadd.f32 %v2931_v28, %v2632_v16  ;;  %v2997_v14 = vadd.f32 %v2933_v26, %v2634_v54  ;;  %v1090_v53 = vsel %vm1007_vm6, %v4792_v15, 0.0  ;;  %v1092_v1 = vsel %vm1009_vm7, %v4792_v15, 0.0 }
 0x283   : > { %v1154_v40 = vadd.f32 %v1090_v53, %v719_v51  ;;  %v1156_v42 = vadd.f32 %v1092_v1, %v721_v57  ;;  %vm1388_vm12 = vcmp.eq.s32.totalorder %v5371_v29, %v4826_v35  ;;  %v1469_v2 = vsel %vm1386_vm10, %v4832_v38, 0.0 }
 0x284   : > { %v3356_v62 = vadd.f32 %v3292_v49, %v2995_v44  ;;  %v3358_v50 = vadd.f32 %v3294_v22, %v2997_v14  ;;  %v1471_v13 = vsel %vm1388_vm12, %v4832_v38, 0.0  ;;  %vm1750_vm11 = vcmp.eq.s32.totalorder %v5368_v59, %v4897_v55 }
 0x285   : > { %v1533_v8 = vadd.f32 %v1469_v2, %v1154_v40  ;;  %v1535_v52 = vadd.f32 %v1471_v13, %v1156_v42  ;;  %vm1752_vm9 = vcmp.eq.s32.totalorder %v5371_v29, %v4897_v55  ;;  %v1833_v23 = vsel %vm1750_vm11, %v4890_v5, 0.0 }
 0x286   : > { %v3840_v19 = vpack.c.bf16 %v3358_v50, %v3356_v62  ;;  %v1835_v63 = vsel %vm1752_vm9, %v4890_v5, 0.0  ;;  %vm2123_vm15 = vcmp.eq.s32.totalorder %v5368_v59, %v4904_v11  ;;  %vm2125_vm3 = vcmp.eq.s32.totalorder %v5371_v29, %v4904_v11 }
 0x287   : > { %v1897_v21 = vadd.f32 %v1833_v23, %v1533_v8  ;;  %v1899_v48 = vadd.f32 %v1835_v63, %v1535_v52  ;;  %v2206_v28 = vsel %vm2123_vm15, %v4907_v12, 0.0  ;;  %v2208_v26 = vsel %vm2125_vm3, %v4907_v12, 0.0 }
 0x288   : > { %3841 = vmatprep.subr.bf16.mxu0 %v3840_v19  ;;  %vm2484_vm0 = vcmp.eq.s32.totalorder %v5368_v59, %v4918_v10  ;;  %vm2486_vm1 = vcmp.eq.s32.totalorder %v5371_v29, %v4918_v10  ;;  %vm2847_vm5 = vcmp.eq.s32.totalorder %v5368_v59, %v4936_v61  ;;  %vm2849_vm2 = vcmp.eq.s32.totalorder %v5371_v29, %v4936_v61 }
 0x289   : > { %v2270_v49 = vadd.f32 %v2206_v28, %v1897_v21  ;;  %v2272_v16 = vadd.f32 %v2208_v26, %v1899_v48  ;;  %v2567_v54 = vsel %vm2484_vm0, %v4921_v47, 0.0  ;;  %v2569_v22 = vsel %vm2486_vm1, %v4921_v47, 0.0 }
 0x28a   : > { %v2930_v51 = vsel %vm2847_vm5, %v4939_v46, 0.0  ;;  %v2932_v57 = vsel %vm2849_vm2, %v4939_v46, 0.0  ;;  %vm3208_vm8 = vcmp.eq.s32.totalorder %v5368_v59, %v4954_v33  ;;  %vm3210_vm4 = vcmp.eq.s32.totalorder %v5371_v29, %v4954_v33 }
 0x28b   : > { %v2631_v44 = vadd.f32 %v2567_v54, %v2270_v49  ;;  %v2633_v14 = vadd.f32 %v2569_v22, %v2272_v16  ;;  %v3291_v53 = vsel %vm3208_vm8, %v4957_v0, 0.0  ;;  %v3293_v1 = vsel %vm3210_vm4, %v4957_v0, 0.0 }
 0x28c   : > { %vm641_vm14 = vcmp.eq.s32.totalorder %v5374_v41, %v4482_v43  ;;  %vm643_vm13 = vcmp.eq.s32.totalorder %v5377_v25, %v4482_v43  ;;  %vm1012_vm6 = vcmp.eq.s32.totalorder %v5374_v41, %v4606_v34  ;;  %vm1014_vm7 = vcmp.eq.s32.totalorder %v5377_v25, %v4606_v34 }
 0x28d   : > { %v2994_v59 = vadd.f32 %v2930_v51, %v2631_v44  ;;  %v2996_v29 = vadd.f32 %v2932_v57, %v2633_v14  ;;  %v724_v40 = vsel %vm641_vm14, %v4574_v17, 0.0  ;;  %v726_v42 = vsel %vm643_vm13, %v4574_v17, 0.0 }
 0x28e   : > { %v1095_v2 = vsel %vm1012_vm6, %v4616_v36, 0.0  ;;  %v1097_v62 = vsel %vm1014_vm7, %v4616_v36, 0.0  ;;  %vm1391_vm10 = vcmp.eq.s32.totalorder %v5374_v41, %v4646_v56  ;;  %vm1393_vm12 = vcmp.eq.s32.totalorder %v5377_v25, %v4646_v56 }
 0x28f   : > { %v3355_v50 = vadd.f32 %v3291_v53, %v2994_v59  ;;  %v3357_v13 = vadd.f32 %v3293_v1, %v2996_v29  ;;  %v1159_v8 = vadd.f32 %v1095_v2, %v724_v40  ;;  %v1161_v52 = vadd.f32 %v1097_v62, %v726_v42 }
 0x290   : > { %v1474_v23 = vsel %vm1391_vm10, %v4656_v7, 0.0  ;;  %v1476_v19 = vsel %vm1393_vm12, %v4656_v7, 0.0  ;;  %vm1755_vm11 = vcmp.eq.s32.totalorder %v5374_v41, %v4689_v45  ;;  %vm1757_vm9 = vcmp.eq.s32.totalorder %v5377_v25, %v4689_v45 }
 0x291   : > { %v3842_v63 = vpack.c.bf16 %v3357_v13, %v3355_v50  ;;  %v1538_v21 = vadd.f32 %v1474_v23, %v1159_v8  ;;  %v1540_v48 = vadd.f32 %v1476_v19, %v1161_v52  ;;  %v1838_v28 = vsel %vm1755_vm11, %v4700_v24, 0.0 }
 0x292   : > { %v1840_v26 = vsel %vm1757_vm9, %v4700_v24, 0.0  ;;  %vm2128_vm15 = vcmp.eq.s32.totalorder %v5374_v41, %v4812_v30  ;;  %vm2130_vm3 = vcmp.eq.s32.totalorder %v5377_v25, %v4812_v30  ;;  %vm2489_vm0 = vcmp.eq.s32.totalorder %v5374_v41, %v4815_v32 }
 0x293   : > { %3843 = vmatpush1.bf16.msra.mxu0 %v3842_v63  ;;  %v1902_v49 = vadd.f32 %v1838_v28, %v1538_v21  ;;  %v1904_v16 = vadd.f32 %v1840_v26, %v1540_v48  ;;  %v2211_v54 = vsel %vm2128_vm15, %v4738_v6, 0.0  ;;  %v2213_v22 = vsel %vm2130_vm3, %v4738_v6, 0.0 }
 0x294   : > { %vm2491_vm1 = vcmp.eq.s32.totalorder %v5377_v25, %v4815_v32  ;;  %v2572_v51 = vsel %vm2489_vm0, %v4761_v9, 0.0  ;;  %vm2852_vm5 = vcmp.eq.s32.totalorder %v5374_v41, %v4847_v4  ;;  %vm2854_vm2 = vcmp.eq.s32.totalorder %v5377_v25, %v4847_v4 }
 0x295   : > { %v2275_v57 = vadd.f32 %v2211_v54, %v1902_v49  ;;  %v2277_v44 = vadd.f32 %v2213_v22, %v1904_v16  ;;  %v2574_v14 = vsel %vm2491_vm1, %v4761_v9, 0.0  ;;  %v2935_v53 = vsel %vm2852_vm5, %v4764_v39, 0.0 }
 0x296   : > { %v2937_v1 = vsel %vm2854_vm2, %v4764_v39, 0.0  ;;  %vm3213_vm8 = vcmp.eq.s32.totalorder %v5374_v41, %v4850_v31  ;;  %vm3215_vm4 = vcmp.eq.s32.totalorder %v5377_v25, %v4850_v31  ;;  %vm640_vm14 = vcmp.eq.s32.totalorder %v5374_v41, %v4754_v58 }
 0x297   : > { %v2636_v59 = vadd.f32 %v2572_v51, %v2275_v57  ;;  %v2638_v29 = vadd.f32 %v2574_v14, %v2277_v44  ;;  %v3296_v40 = vsel %vm3213_vm8, %v4781_v60, 0.0  ;;  %v3298_v42 = vsel %vm3215_vm4, %v4781_v60, 0.0 }
 0x298   : > { %vm642_vm13 = vcmp.eq.s32.totalorder %v5377_v25, %v4754_v58  ;;  %v723_v2 = vsel %vm640_vm14, %v4784_v37, 0.0  ;;  %vm1011_vm6 = vcmp.eq.s32.totalorder %v5374_v41, %v4807_v18  ;;  %vm1013_vm7 = vcmp.eq.s32.totalorder %v5377_v25, %v4807_v18 }
 0x299   : > { %v2999_v62 = vadd.f32 %v2935_v53, %v2636_v59  ;;  %v3001_v50 = vadd.f32 %v2937_v1, %v2638_v29  ;;  %v725_v13 = vsel %vm642_vm13, %v4784_v37, 0.0  ;;  %v1094_v8 = vsel %vm1011_vm6, %v4792_v15, 0.0 }
 0x29a   : > { %v1096_v52 = vsel %vm1013_vm7, %v4792_v15, 0.0  ;;  %v1158_v23 = vadd.f32 %v1094_v8, %v723_v2  ;;  %vm1390_vm10 = vcmp.eq.s32.totalorder %v5374_v41, %v4826_v35  ;;  %vm1392_vm12 = vcmp.eq.s32.totalorder %v5377_v25, %v4826_v35 }
 0x29b   : > { %v3360_v19 = vadd.f32 %v3296_v40, %v2999_v62  ;;  %v3362_v63 = vadd.f32 %v3298_v42, %v3001_v50  ;;  %v1160_v21 = vadd.f32 %v1096_v52, %v725_v13  ;;  %v1473_v48 = vsel %vm1390_vm10, %v4832_v38, 0.0 }
 0x29c   : > { %v1475_v28 = vsel %vm1392_vm12, %v4832_v38, 0.0  ;;  %v1537_v26 = vadd.f32 %v1473_v48, %v1158_v23  ;;  %vm1754_vm11 = vcmp.eq.s32.totalorder %v5374_v41, %v4897_v55  ;;  %vm1756_vm9 = vcmp.eq.s32.totalorder %v5377_v25, %v4897_v55 }
 0x29d   : > { %v3844_v49 = vpack.c.bf16 %v3362_v63, %v3360_v19  ;;  %v1539_v16 = vadd.f32 %v1475_v28, %v1160_v21  ;;  %v1837_v54 = vsel %vm1754_vm11, %v4890_v5, 0.0  ;;  %v1839_v22 = vsel %vm1756_vm9, %v4890_v5, 0.0 }
 0x29e   : > { %v1901_v51 = vadd.f32 %v1837_v54, %v1537_v26  ;;  %vm2127_vm15 = vcmp.eq.s32.totalorder %v5374_v41, %v4904_v11  ;;  %vm2129_vm3 = vcmp.eq.s32.totalorder %v5377_v25, %v4904_v11  ;;  %vm2488_vm0 = vcmp.eq.s32.totalorder %v5374_v41, %v4918_v10 }
 0x29f   : > { %3845 = vmatprep.subr.bf16.mxu0 %v3844_v49  ;;  %v1903_v57 = vadd.f32 %v1839_v22, %v1539_v16  ;;  %v2210_v44 = vsel %vm2127_vm15, %v4907_v12, 0.0  ;;  %v2212_v14 = vsel %vm2129_vm3, %v4907_v12, 0.0  ;;  %vm2490_vm1 = vcmp.eq.s32.totalorder %v5377_v25, %v4918_v10 }
 0x2a0   : > { %v2274_v53 = vadd.f32 %v2210_v44, %v1901_v51  ;;  %v2571_v1 = vsel %vm2488_vm0, %v4921_v47, 0.0  ;;  %v2573_v59 = vsel %vm2490_vm1, %v4921_v47, 0.0  ;;  %vm2851_vm5 = vcmp.eq.s32.totalorder %v5374_v41, %v4936_v61 }
 0x2a1   : > { %v2276_v29 = vadd.f32 %v2212_v14, %v1903_v57  ;;  %vm2853_vm2 = vcmp.eq.s32.totalorder %v5377_v25, %v4936_v61  ;;  %v2934_v40 = vsel %vm2851_vm5, %v4939_v46, 0.0  ;;  %vm3212_vm8 = vcmp.eq.s32.totalorder %v5374_v41, %v4954_v33 }
 0x2a2   : > { %v2635_v42 = vadd.f32 %v2571_v1, %v2274_v53  ;;  %v2936_v2 = vsel %vm2853_vm2, %v4939_v46, 0.0  ;;  %vm3214_vm4 = vcmp.eq.s32.totalorder %v5377_v25, %v4954_v33  ;;  %v3295_v62 = vsel %vm3212_vm8, %v4957_v0, 0.0 }
 0x2a3   : > { %v2637_v50 = vadd.f32 %v2573_v59, %v2276_v29  ;;  %v3297_v13 = vsel %vm3214_vm4, %v4957_v0, 0.0  ;;  %vm645_vm14 = vcmp.eq.s32.totalorder %v5380_v20, %v4482_v43  ;;  %vm647_vm13 = vcmp.eq.s32.totalorder %v5383_v3, %v4482_v43 }
 0x2a4   : > { %v2998_v8 = vadd.f32 %v2934_v40, %v2635_v42  ;;  %v728_v41 = vsel %vm645_vm14, %v4574_v17, 0.0  ;;  %v730_v52 = vsel %vm647_vm13, %v4574_v17, 0.0  ;;  %vm1016_vm6 = vcmp.eq.s32.totalorder %v5380_v20, %v4606_v34 }
 0x2a5   : > { %v3000_v25 = vadd.f32 %v2936_v2, %v2637_v50  ;;  %vm1018_vm7 = vcmp.eq.s32.totalorder %v5383_v3, %v4606_v34  ;;  %v1099_v23 = vsel %vm1016_vm6, %v4616_v36, 0.0  ;;  %vm1395_vm10 = vcmp.eq.s32.totalorder %v5380_v20, %v4646_v56 }
 0x2a6   : > { %v3359_v19 = vadd.f32 %v3295_v62, %v2998_v8  ;;  %v1101_v63 = vsel %vm1018_vm7, %v4616_v36, 0.0  ;;  %v1163_v21 = vadd.f32 %v1099_v23, %v728_v41  ;;  %vm1397_vm12 = vcmp.eq.s32.totalorder %v5383_v3, %v4646_v56 }
 0x2a7   : > { %v3361_v48 = vadd.f32 %v3297_v13, %v3000_v25  ;;  %v1165_v28 = vadd.f32 %v1101_v63, %v730_v52  ;;  %v1478_v26 = vsel %vm1395_vm10, %v4656_v7, 0.0  ;;  %v1480_v49 = vsel %vm1397_vm12, %v4656_v7, 0.0 }
 0x2a8   : > { %v1542_v16 = vadd.f32 %v1478_v26, %v1163_v21  ;;  %vm1759_vm11 = vcmp.eq.s32.totalorder %v5380_v20, %v4689_v45  ;;  %vm1761_vm9 = vcmp.eq.s32.totalorder %v5383_v3, %v4689_v45  ;;  %vm2132_vm15 = vcmp.eq.s32.totalorder %v5380_v20, %v4812_v30 }
 0x2a9   : > { %v3846_v54 = vpack.c.bf16 %v3361_v48, %v3359_v19  ;;  %v1544_v22 = vadd.f32 %v1480_v49, %v1165_v28  ;;  %v1842_v51 = vsel %vm1759_vm11, %v4700_v24, 0.0  ;;  %v1844_v57 = vsel %vm1761_vm9, %v4700_v24, 0.0 }
 0x2aa   : > { %v1906_v44 = vadd.f32 %v1842_v51, %v1542_v16  ;;  %vm2134_vm3 = vcmp.eq.s32.totalorder %v5383_v3, %v4812_v30  ;;  %v2215_v14 = vsel %vm2132_vm15, %v4738_v6, 0.0  ;;  %vm2493_vm0 = vcmp.eq.s32.totalorder %v5380_v20, %v4815_v32 }
 0x2ab   : > { %3847 = vmatpush1.bf16.msra.mxu0 %v3846_v54  ;;  %v1908_v53 = vadd.f32 %v1844_v57, %v1544_v22  ;;  %v2217_v1 = vsel %vm2134_vm3, %v4738_v6, 0.0  ;;  %vm2495_vm1 = vcmp.eq.s32.totalorder %v5383_v3, %v4815_v32  ;;  %v2576_v59 = vsel %vm2493_vm0, %v4761_v9, 0.0 }
 0x2ac   : > { %v2279_v29 = vadd.f32 %v2215_v14, %v1906_v44  ;;  %v2578_v40 = vsel %vm2495_vm1, %v4761_v9, 0.0  ;;  %vm2856_vm5 = vcmp.eq.s32.totalorder %v5380_v20, %v4847_v4  ;;  %vm2858_vm2 = vcmp.eq.s32.totalorder %v5383_v3, %v4847_v4 }
 0x2ad   : > { %v2281_v42 = vadd.f32 %v2217_v1, %v1908_v53  ;;  %v2939_v2 = vsel %vm2856_vm5, %v4764_v39, 0.0  ;;  %v2941_v62 = vsel %vm2858_vm2, %v4764_v39, 0.0  ;;  %vm3217_vm8 = vcmp.eq.s32.totalorder %v5380_v20, %v4850_v31 }
 0x2ae   : > { %v2640_v50 = vadd.f32 %v2576_v59, %v2279_v29  ;;  %vm3219_vm4 = vcmp.eq.s32.totalorder %v5383_v3, %v4850_v31  ;;  %v3300_v13 = vsel %vm3217_vm8, %v4781_v60, 0.0  ;;  %vm644_vm14 = vcmp.eq.s32.totalorder %v5380_v20, %v4754_v58 }
 0x2af   : > { %v2642_v8 = vadd.f32 %v2578_v40, %v2281_v42  ;;  %v3302_v41 = vsel %vm3219_vm4, %v4781_v60, 0.0  ;;  %vm646_vm13 = vcmp.eq.s32.totalorder %v5383_v3, %v4754_v58  ;;  %v727_v52 = vsel %vm644_vm14, %v4784_v37, 0.0 }
 0x2b0   : > { %v3003_v25 = vadd.f32 %v2939_v2, %v2640_v50  ;;  %v729_v23 = vsel %vm646_vm13, %v4784_v37, 0.0  ;;  %vm1015_vm6 = vcmp.eq.s32.totalorder %v5380_v20, %v4807_v18  ;;  %vm1017_vm7 = vcmp.eq.s32.totalorder %v5383_v3, %v4807_v18 }
 0x2b1   : > { %v3005_v19 = vadd.f32 %v2941_v62, %v2642_v8  ;;  %v1098_v63 = vsel %vm1015_vm6, %v4792_v15, 0.0  ;;  %v1100_v21 = vsel %vm1017_vm7, %v4792_v15, 0.0  ;;  %vm1394_vm10 = vcmp.eq.s32.totalorder %v5380_v20, %v4826_v35 }
 0x2b2   : > { %v3364_v48 = vadd.f32 %v3300_v13, %v3003_v25  ;;  %v1162_v28 = vadd.f32 %v1098_v63, %v727_v52  ;;  %v1164_v26 = vadd.f32 %v1100_v21, %v729_v23  ;;  %vm1396_vm12 = vcmp.eq.s32.totalorder %v5383_v3, %v4826_v35 }
 0x2b3   : > { %v3366_v49 = vadd.f32 %v3302_v41, %v3005_v19  ;;  %v1477_v16 = vsel %vm1394_vm10, %v4832_v38, 0.0  ;;  %v1479_v54 = vsel %vm1396_vm12, %v4832_v38, 0.0  ;;  %vm1758_vm11 = vcmp.eq.s32.totalorder %v5380_v20, %v4897_v55 }
 0x2b4   : > { %v1541_v22 = vadd.f32 %v1477_v16, %v1162_v28  ;;  %v1543_v51 = vadd.f32 %v1479_v54, %v1164_v26  ;;  %vm1760_vm9 = vcmp.eq.s32.totalorder %v5383_v3, %v4897_v55  ;;  %v1841_v57 = vsel %vm1758_vm11, %v4890_v5, 0.0 }
 0x2b5   : > { %v3848_v44 = vpack.c.bf16 %v3366_v49, %v3364_v48  ;;  %v1843_v14 = vsel %vm1760_vm9, %v4890_v5, 0.0  ;;  %vm2131_vm15 = vcmp.eq.s32.totalorder %v5380_v20, %v4904_v11  ;;  %vm2133_vm3 = vcmp.eq.s32.totalorder %v5383_v3, %v4904_v11 }
 0x2b6   : > { %v1905_v53 = vadd.f32 %v1841_v57, %v1541_v22  ;;  %v1907_v1 = vadd.f32 %v1843_v14, %v1543_v51  ;;  %v2214_v59 = vsel %vm2131_vm15, %v4907_v12, 0.0  ;;  %v2216_v29 = vsel %vm2133_vm3, %v4907_v12, 0.0 }
 0x2b7   : > { %3849 = vmatprep.subr.bf16.mxu0 %v3848_v44  ;;  %vm2492_vm0 = vcmp.eq.s32.totalorder %v5380_v20, %v4918_v10  ;;  %vm2494_vm1 = vcmp.eq.s32.totalorder %v5383_v3, %v4918_v10  ;;  %vm2855_vm5 = vcmp.eq.s32.totalorder %v5380_v20, %v4936_v61  ;;  %vm2857_vm2 = vcmp.eq.s32.totalorder %v5383_v3, %v4936_v61 }
 0x2b8   : > { %v2278_v40 = vadd.f32 %v2214_v59, %v1905_v53  ;;  %v2280_v42 = vadd.f32 %v2216_v29, %v1907_v1  ;;  %v2575_v2 = vsel %vm2492_vm0, %v4921_v47, 0.0  ;;  %v2577_v62 = vsel %vm2494_vm1, %v4921_v47, 0.0 }
 0x2b9   : > { %v2938_v50 = vsel %vm2855_vm5, %v4939_v46, 0.0  ;;  %v2940_v13 = vsel %vm2857_vm2, %v4939_v46, 0.0  ;;  %vm3216_vm8 = vcmp.eq.s32.totalorder %v5380_v20, %v4954_v33  ;;  %vm3218_vm4 = vcmp.eq.s32.totalorder %v5383_v3, %v4954_v33 }
 0x2ba   : > { %v2639_v8 = vadd.f32 %v2575_v2, %v2278_v40  ;;  %v2641_v41 = vadd.f32 %v2577_v62, %v2280_v42  ;;  %v3299_v52 = vsel %vm3216_vm8, %v4957_v0, 0.0  ;;  %v3301_v25 = vsel %vm3218_vm4, %v4957_v0, 0.0 }
 0x2bb   : > { %v5674_v23 = vadd.s32 128, %v4423_v27  ;;  %v5677_v19 = vadd.s32 136, %v4423_v27  ;;  %v5680_v63 = vadd.s32 144, %v4423_v27  ;;  %v5683_v20 = vadd.s32 152, %v4423_v27 }
 0x2bc   : > { %v3002_v21 = vadd.f32 %v2938_v50, %v2639_v8  ;;  %v3004_v3 = vadd.f32 %v2940_v13, %v2641_v41  ;;  %v5686_v48 = vadd.s32 160, %v4423_v27  ;;  %v5689_v28 = vadd.s32 168, %v4423_v27 }
 0x2bd   : > { %vm649_vm14 = vcmp.eq.s32.totalorder %v5674_v23, %v4482_v43  ;;  %vm651_vm13 = vcmp.eq.s32.totalorder %v5677_v19, %v4482_v43  ;;  %vm1020_vm6 = vcmp.eq.s32.totalorder %v5674_v23, %v4606_v34  ;;  %vm1022_vm7 = vcmp.eq.s32.totalorder %v5677_v19, %v4606_v34 }
 0x2be   : > { %v3363_v26 = vadd.f32 %v3299_v52, %v3002_v21  ;;  %v3365_v49 = vadd.f32 %v3301_v25, %v3004_v3  ;;  %v732_v16 = vsel %vm649_vm14, %v4574_v17, 0.0  ;;  %v734_v54 = vsel %vm651_vm13, %v4574_v17, 0.0 }
 0x2bf   : > { %v1103_v22 = vsel %vm1020_vm6, %v4616_v36, 0.0  ;;  %v1105_v51 = vsel %vm1022_vm7, %v4616_v36, 0.0  ;;  %vm1399_vm10 = vcmp.eq.s32.totalorder %v5674_v23, %v4646_v56  ;;  %vm1401_vm12 = vcmp.eq.s32.totalorder %v5677_v19, %v4646_v56 }
 0x2c0   : > { %v3850_v57 = vpack.c.bf16 %v3365_v49, %v3363_v26  ;;  %v1167_v44 = vadd.f32 %v1103_v22, %v732_v16  ;;  %v1169_v14 = vadd.f32 %v1105_v51, %v734_v54  ;;  %v1482_v53 = vsel %vm1399_vm10, %v4656_v7, 0.0 }
 0x2c1   : > { %v1484_v1 = vsel %vm1401_vm12, %v4656_v7, 0.0  ;;  %vm1763_vm11 = vcmp.eq.s32.totalorder %v5674_v23, %v4689_v45  ;;  %vm1765_vm9 = vcmp.eq.s32.totalorder %v5677_v19, %v4689_v45  ;;  %vm2136_vm15 = vcmp.eq.s32.totalorder %v5674_v23, %v4812_v30 }
 0x2c2   : > { %3851 = vmatpush1.bf16.msra.mxu0 %v3850_v57  ;;  %v1546_v59 = vadd.f32 %v1482_v53, %v1167_v44  ;;  %v1548_v29 = vadd.f32 %v1484_v1, %v1169_v14  ;;  %v1846_v40 = vsel %vm1763_vm11, %v4700_v24, 0.0  ;;  %v1848_v42 = vsel %vm1765_vm9, %v4700_v24, 0.0 }
 0x2c3   : > { %vm2138_vm3 = vcmp.eq.s32.totalorder %v5677_v19, %v4812_v30  ;;  %v2219_v2 = vsel %vm2136_vm15, %v4738_v6, 0.0  ;;  %vm2497_vm0 = vcmp.eq.s32.totalorder %v5674_v23, %v4815_v32  ;;  %vm2499_vm1 = vcmp.eq.s32.totalorder %v5677_v19, %v4815_v32 }
 0x2c4   : > { %v1910_v62 = vadd.f32 %v1846_v40, %v1546_v59  ;;  %v1912_v50 = vadd.f32 %v1848_v42, %v1548_v29  ;;  %v2221_v13 = vsel %vm2138_vm3, %v4738_v6, 0.0  ;;  %v2580_v8 = vsel %vm2497_vm0, %v4761_v9, 0.0 }
 0x2c5   : > { %v2582_v41 = vsel %vm2499_vm1, %v4761_v9, 0.0  ;;  %vm2860_vm5 = vcmp.eq.s32.totalorder %v5674_v23, %v4847_v4  ;;  %vm2862_vm2 = vcmp.eq.s32.totalorder %v5677_v19, %v4847_v4  ;;  %vm3221_vm8 = vcmp.eq.s32.totalorder %v5674_v23, %v4850_v31 }
 0x2c6   : > { %v2283_v52 = vadd.f32 %v2219_v2, %v1910_v62  ;;  %v2285_v25 = vadd.f32 %v2221_v13, %v1912_v50  ;;  %v2943_v21 = vsel %vm2860_vm5, %v4764_v39, 0.0  ;;  %v2945_v3 = vsel %vm2862_vm2, %v4764_v39, 0.0 }
 0x2c7   : > { %vm3223_vm4 = vcmp.eq.s32.totalorder %v5677_v19, %v4850_v31  ;;  %v3304_v26 = vsel %vm3221_vm8, %v4781_v60, 0.0  ;;  %vm648_vm14 = vcmp.eq.s32.totalorder %v5674_v23, %v4754_v58  ;;  %vm650_vm13 = vcmp.eq.s32.totalorder %v5677_v19, %v4754_v58 }
 0x2c8   : > { %v2644_v49 = vadd.f32 %v2580_v8, %v2283_v52  ;;  %v2646_v16 = vadd.f32 %v2582_v41, %v2285_v25  ;;  %v3306_v54 = vsel %vm3223_vm4, %v4781_v60, 0.0  ;;  %v731_v22 = vsel %vm648_vm14, %v4784_v37, 0.0 }
 0x2c9   : > { %v733_v51 = vsel %vm650_vm13, %v4784_v37, 0.0  ;;  %vm1019_vm6 = vcmp.eq.s32.totalorder %v5674_v23, %v4807_v18  ;;  %vm1021_vm7 = vcmp.eq.s32.totalorder %v5677_v19, %v4807_v18  ;;  %vm1398_vm10 = vcmp.eq.s32.totalorder %v5674_v23, %v4826_v35 }
 0x2ca   : > { %v3007_v57 = vadd.f32 %v2943_v21, %v2644_v49  ;;  %v3009_v44 = vadd.f32 %v2945_v3, %v2646_v16  ;;  %v1102_v14 = vsel %vm1019_vm6, %v4792_v15, 0.0  ;;  %v1104_v53 = vsel %vm1021_vm7, %v4792_v15, 0.0 }
 0x2cb   : > { %v1166_v1 = vadd.f32 %v1102_v14, %v731_v22  ;;  %v1168_v59 = vadd.f32 %v1104_v53, %v733_v51  ;;  %vm1400_vm12 = vcmp.eq.s32.totalorder %v5677_v19, %v4826_v35  ;;  %v1481_v29 = vsel %vm1398_vm10, %v4832_v38, 0.0 }
 0x2cc   : > { %v3368_v40 = vadd.f32 %v3304_v26, %v3007_v57  ;;  %v3370_v42 = vadd.f32 %v3306_v54, %v3009_v44  ;;  %v1483_v2 = vsel %vm1400_vm12, %v4832_v38, 0.0  ;;  %vm1762_vm11 = vcmp.eq.s32.totalorder %v5674_v23, %v4897_v55 }
 0x2cd   : > { %v1545_v62 = vadd.f32 %v1481_v29, %v1166_v1  ;;  %v1547_v50 = vadd.f32 %v1483_v2, %v1168_v59  ;;  %vm1764_vm9 = vcmp.eq.s32.totalorder %v5677_v19, %v4897_v55  ;;  %v1845_v13 = vsel %vm1762_vm11, %v4890_v5, 0.0 }
 0x2ce   : > { %v3852_v8 = vpack.c.bf16 %v3370_v42, %v3368_v40  ;;  %v1847_v41 = vsel %vm1764_vm9, %v4890_v5, 0.0  ;;  %vm2135_vm15 = vcmp.eq.s32.totalorder %v5674_v23, %v4904_v11  ;;  %vm2137_vm3 = vcmp.eq.s32.totalorder %v5677_v19, %v4904_v11 }
 0x2cf   : > { %v1909_v52 = vadd.f32 %v1845_v13, %v1545_v62  ;;  %v1911_v25 = vadd.f32 %v1847_v41, %v1547_v50  ;;  %v2218_v21 = vsel %vm2135_vm15, %v4907_v12, 0.0  ;;  %v2220_v3 = vsel %vm2137_vm3, %v4907_v12, 0.0 }
 0x2d0   : > { %3853 = vmatprep.subr.bf16.mxu0 %v3852_v8  ;;  %vm2496_vm0 = vcmp.eq.s32.totalorder %v5674_v23, %v4918_v10  ;;  %vm2498_vm1 = vcmp.eq.s32.totalorder %v5677_v19, %v4918_v10  ;;  %vm2859_vm5 = vcmp.eq.s32.totalorder %v5674_v23, %v4936_v61  ;;  %vm2861_vm2 = vcmp.eq.s32.totalorder %v5677_v19, %v4936_v61 }
 0x2d1   : > { %v2282_v26 = vadd.f32 %v2218_v21, %v1909_v52  ;;  %v2284_v49 = vadd.f32 %v2220_v3, %v1911_v25  ;;  %v2579_v16 = vsel %vm2496_vm0, %v4921_v47, 0.0  ;;  %v2581_v54 = vsel %vm2498_vm1, %v4921_v47, 0.0 }
 0x2d2   : > { %v2942_v22 = vsel %vm2859_vm5, %v4939_v46, 0.0  ;;  %v2944_v51 = vsel %vm2861_vm2, %v4939_v46, 0.0  ;;  %vm3220_vm8 = vcmp.eq.s32.totalorder %v5674_v23, %v4954_v33  ;;  %vm3222_vm4 = vcmp.eq.s32.totalorder %v5677_v19, %v4954_v33 }
 0x2d3   : > { %v2643_v57 = vadd.f32 %v2579_v16, %v2282_v26  ;;  %v2645_v44 = vadd.f32 %v2581_v54, %v2284_v49  ;;  %v3303_v14 = vsel %vm3220_vm8, %v4957_v0, 0.0  ;;  %v3305_v53 = vsel %vm3222_vm4, %v4957_v0, 0.0 }
 0x2d4   : > { %vm653_vm14 = vcmp.eq.s32.totalorder %v5680_v63, %v4482_v43  ;;  %vm655_vm13 = vcmp.eq.s32.totalorder %v5683_v20, %v4482_v43  ;;  %vm1024_vm6 = vcmp.eq.s32.totalorder %v5680_v63, %v4606_v34  ;;  %vm1026_vm7 = vcmp.eq.s32.totalorder %v5683_v20, %v4606_v34 }
 0x2d5   : > { %v3006_v23 = vadd.f32 %v2942_v22, %v2643_v57  ;;  %v3008_v19 = vadd.f32 %v2944_v51, %v2645_v44  ;;  %v736_v1 = vsel %vm653_vm14, %v4574_v17, 0.0  ;;  %v738_v59 = vsel %vm655_vm13, %v4574_v17, 0.0 }
 0x2d6   : > { %v1107_v29 = vsel %vm1024_vm6, %v4616_v36, 0.0  ;;  %v1109_v40 = vsel %vm1026_vm7, %v4616_v36, 0.0  ;;  %vm1403_vm10 = vcmp.eq.s32.totalorder %v5680_v63, %v4646_v56  ;;  %vm1405_vm12 = vcmp.eq.s32.totalorder %v5683_v20, %v4646_v56 }
 0x2d7   : > { %v3367_v42 = vadd.f32 %v3303_v14, %v3006_v23  ;;  %v3369_v2 = vadd.f32 %v3305_v53, %v3008_v19  ;;  %v1171_v62 = vadd.f32 %v1107_v29, %v736_v1  ;;  %v1173_v50 = vadd.f32 %v1109_v40, %v738_v59 }
 0x2d8   : > { %v1486_v13 = vsel %vm1403_vm10, %v4656_v7, 0.0  ;;  %v1488_v8 = vsel %vm1405_vm12, %v4656_v7, 0.0  ;;  %vm1767_vm11 = vcmp.eq.s32.totalorder %v5680_v63, %v4689_v45  ;;  %vm1769_vm9 = vcmp.eq.s32.totalorder %v5683_v20, %v4689_v45 }
 0x2d9   : > { %v3854_v41 = vpack.c.bf16 %v3369_v2, %v3367_v42  ;;  %v1550_v52 = vadd.f32 %v1486_v13, %v1171_v62  ;;  %v1552_v25 = vadd.f32 %v1488_v8, %v1173_v50  ;;  %v1850_v21 = vsel %vm1767_vm11, %v4700_v24, 0.0 }
 0x2da   : > { %v1852_v3 = vsel %vm1769_vm9, %v4700_v24, 0.0  ;;  %vm2140_vm15 = vcmp.eq.s32.totalorder %v5680_v63, %v4812_v30  ;;  %vm2142_vm3 = vcmp.eq.s32.totalorder %v5683_v20, %v4812_v30  ;;  %vm2501_vm0 = vcmp.eq.s32.totalorder %v5680_v63, %v4815_v32 }
 0x2db   : > { %3855 = vmatpush1.bf16.msra.mxu0 %v3854_v41  ;;  %v1914_v26 = vadd.f32 %v1850_v21, %v1550_v52  ;;  %v1916_v49 = vadd.f32 %v1852_v3, %v1552_v25  ;;  %v2223_v16 = vsel %vm2140_vm15, %v4738_v6, 0.0  ;;  %v2225_v54 = vsel %vm2142_vm3, %v4738_v6, 0.0 }
 0x2dc   : > { %vm2503_vm1 = vcmp.eq.s32.totalorder %v5683_v20, %v4815_v32  ;;  %v2584_v22 = vsel %vm2501_vm0, %v4761_v9, 0.0  ;;  %vm2864_vm5 = vcmp.eq.s32.totalorder %v5680_v63, %v4847_v4  ;;  %vm2866_vm2 = vcmp.eq.s32.totalorder %v5683_v20, %v4847_v4 }
 0x2dd   : > { %v2287_v51 = vadd.f32 %v2223_v16, %v1914_v26  ;;  %v2289_v57 = vadd.f32 %v2225_v54, %v1916_v49  ;;  %v2586_v44 = vsel %vm2503_vm1, %v4761_v9, 0.0  ;;  %v2947_v14 = vsel %vm2864_vm5, %v4764_v39, 0.0 }
 0x2de   : > { %v2949_v53 = vsel %vm2866_vm2, %v4764_v39, 0.0  ;;  %vm3225_vm8 = vcmp.eq.s32.totalorder %v5680_v63, %v4850_v31  ;;  %vm3227_vm4 = vcmp.eq.s32.totalorder %v5683_v20, %v4850_v31  ;;  %vm652_vm14 = vcmp.eq.s32.totalorder %v5680_v63, %v4754_v58 }
 0x2df   : > { %v2648_v23 = vadd.f32 %v2584_v22, %v2287_v51  ;;  %v2650_v19 = vadd.f32 %v2586_v44, %v2289_v57  ;;  %v3308_v1 = vsel %vm3225_vm8, %v4781_v60, 0.0  ;;  %v3310_v59 = vsel %vm3227_vm4, %v4781_v60, 0.0 }
 0x2e0   : > { %vm654_vm13 = vcmp.eq.s32.totalorder %v5683_v20, %v4754_v58  ;;  %v735_v29 = vsel %vm652_vm14, %v4784_v37, 0.0  ;;  %vm1023_vm6 = vcmp.eq.s32.totalorder %v5680_v63, %v4807_v18  ;;  %vm1025_vm7 = vcmp.eq.s32.totalorder %v5683_v20, %v4807_v18 }
 0x2e1   : > { %v3011_v40 = vadd.f32 %v2947_v14, %v2648_v23  ;;  %v3013_v42 = vadd.f32 %v2949_v53, %v2650_v19  ;;  %v737_v2 = vsel %vm654_vm13, %v4784_v37, 0.0  ;;  %v1106_v62 = vsel %vm1023_vm6, %v4792_v15, 0.0 }
 0x2e2   : > { %v1108_v50 = vsel %vm1025_vm7, %v4792_v15, 0.0  ;;  %v1170_v13 = vadd.f32 %v1106_v62, %v735_v29  ;;  %vm1402_vm10 = vcmp.eq.s32.totalorder %v5680_v63, %v4826_v35  ;;  %vm1404_vm12 = vcmp.eq.s32.totalorder %v5683_v20, %v4826_v35 }
 0x2e3   : > { %v3372_v8 = vadd.f32 %v3308_v1, %v3011_v40  ;;  %v3374_v41 = vadd.f32 %v3310_v59, %v3013_v42  ;;  %v1172_v52 = vadd.f32 %v1108_v50, %v737_v2  ;;  %v1485_v25 = vsel %vm1402_vm10, %v4832_v38, 0.0 }
 0x2e4   : > { %v1487_v21 = vsel %vm1404_vm12, %v4832_v38, 0.0  ;;  %v1549_v3 = vadd.f32 %v1485_v25, %v1170_v13  ;;  %vm1766_vm11 = vcmp.eq.s32.totalorder %v5680_v63, %v4897_v55  ;;  %vm1768_vm9 = vcmp.eq.s32.totalorder %v5683_v20, %v4897_v55 }
 0x2e5   : > { %v3856_v26 = vpack.c.bf16 %v3374_v41, %v3372_v8  ;;  %v1551_v49 = vadd.f32 %v1487_v21, %v1172_v52  ;;  %v1849_v16 = vsel %vm1766_vm11, %v4890_v5, 0.0  ;;  %v1851_v54 = vsel %vm1768_vm9, %v4890_v5, 0.0 }
 0x2e6   : > { %v1913_v22 = vadd.f32 %v1849_v16, %v1549_v3  ;;  %vm2139_vm15 = vcmp.eq.s32.totalorder %v5680_v63, %v4904_v11  ;;  %vm2141_vm3 = vcmp.eq.s32.totalorder %v5683_v20, %v4904_v11  ;;  %vm2500_vm0 = vcmp.eq.s32.totalorder %v5680_v63, %v4918_v10 }
 0x2e7   : > { %3857 = vmatprep.subr.bf16.mxu0 %v3856_v26  ;;  %v1915_v51 = vadd.f32 %v1851_v54, %v1551_v49  ;;  %v2222_v57 = vsel %vm2139_vm15, %v4907_v12, 0.0  ;;  %v2224_v44 = vsel %vm2141_vm3, %v4907_v12, 0.0  ;;  %vm2502_vm1 = vcmp.eq.s32.totalorder %v5683_v20, %v4918_v10 }
 0x2e8   : > { %v2286_v14 = vadd.f32 %v2222_v57, %v1913_v22  ;;  %v2583_v53 = vsel %vm2500_vm0, %v4921_v47, 0.0  ;;  %v2585_v23 = vsel %vm2502_vm1, %v4921_v47, 0.0  ;;  %vm2863_vm5 = vcmp.eq.s32.totalorder %v5680_v63, %v4936_v61 }
 0x2e9   : > { %v2288_v19 = vadd.f32 %v2224_v44, %v1915_v51  ;;  %vm2865_vm2 = vcmp.eq.s32.totalorder %v5683_v20, %v4936_v61  ;;  %v2946_v1 = vsel %vm2863_vm5, %v4939_v46, 0.0  ;;  %vm3224_vm8 = vcmp.eq.s32.totalorder %v5680_v63, %v4954_v33 }
 0x2ea   : > { %v2647_v59 = vadd.f32 %v2583_v53, %v2286_v14  ;;  %v2948_v29 = vsel %vm2865_vm2, %v4939_v46, 0.0  ;;  %vm3226_vm4 = vcmp.eq.s32.totalorder %v5683_v20, %v4954_v33  ;;  %v3307_v40 = vsel %vm3224_vm8, %v4957_v0, 0.0 }
 0x2eb   : > { %v2649_v42 = vadd.f32 %v2585_v23, %v2288_v19  ;;  %v3309_v2 = vsel %vm3226_vm4, %v4957_v0, 0.0  ;;  %vm657_vm14 = vcmp.eq.s32.totalorder %v5686_v48, %v4482_v43  ;;  %vm659_vm13 = vcmp.eq.s32.totalorder %v5689_v28, %v4482_v43 }
 0x2ec   : > { %v3010_v62 = vadd.f32 %v2946_v1, %v2647_v59  ;;  %v740_v63 = vsel %vm657_vm14, %v4574_v17, 0.0  ;;  %v742_v50 = vsel %vm659_vm13, %v4574_v17, 0.0  ;;  %vm1028_vm6 = vcmp.eq.s32.totalorder %v5686_v48, %v4606_v34 }
 0x2ed   : > { %v3012_v20 = vadd.f32 %v2948_v29, %v2649_v42  ;;  %vm1030_vm7 = vcmp.eq.s32.totalorder %v5689_v28, %v4606_v34  ;;  %v1111_v13 = vsel %vm1028_vm6, %v4616_v36, 0.0  ;;  %vm1407_vm10 = vcmp.eq.s32.totalorder %v5686_v48, %v4646_v56 }
 0x2ee   : > { %v3371_v8 = vadd.f32 %v3307_v40, %v3010_v62  ;;  %v1113_v41 = vsel %vm1030_vm7, %v4616_v36, 0.0  ;;  %v1175_v52 = vadd.f32 %v1111_v13, %v740_v63  ;;  %vm1409_vm12 = vcmp.eq.s32.totalorder %v5689_v28, %v4646_v56 }
 0x2ef   : > { %v3373_v25 = vadd.f32 %v3309_v2, %v3012_v20  ;;  %v1177_v21 = vadd.f32 %v1113_v41, %v742_v50  ;;  %v1490_v3 = vsel %vm1407_vm10, %v4656_v7, 0.0  ;;  %v1492_v26 = vsel %vm1409_vm12, %v4656_v7, 0.0 }
 0x2f0   : > { %v1554_v49 = vadd.f32 %v1490_v3, %v1175_v52  ;;  %vm1771_vm11 = vcmp.eq.s32.totalorder %v5686_v48, %v4689_v45  ;;  %vm1773_vm9 = vcmp.eq.s32.totalorder %v5689_v28, %v4689_v45  ;;  %vm2144_vm15 = vcmp.eq.s32.totalorder %v5686_v48, %v4812_v30 }
 0x2f1   : > { %v3858_v16 = vpack.c.bf16 %v3373_v25, %v3371_v8  ;;  %v1556_v54 = vadd.f32 %v1492_v26, %v1177_v21  ;;  %v1854_v22 = vsel %vm1771_vm11, %v4700_v24, 0.0  ;;  %v1856_v51 = vsel %vm1773_vm9, %v4700_v24, 0.0 }
 0x2f2   : > { %v1918_v57 = vadd.f32 %v1854_v22, %v1554_v49  ;;  %vm2146_vm3 = vcmp.eq.s32.totalorder %v5689_v28, %v4812_v30  ;;  %v2227_v44 = vsel %vm2144_vm15, %v4738_v6, 0.0  ;;  %vm2505_vm0 = vcmp.eq.s32.totalorder %v5686_v48, %v4815_v32 }
 0x2f3   : > { %3859 = vmatpush1.bf16.msra.mxu0 %v3858_v16  ;;  %v1920_v14 = vadd.f32 %v1856_v51, %v1556_v54  ;;  %v2229_v53 = vsel %vm2146_vm3, %v4738_v6, 0.0  ;;  %vm2507_vm1 = vcmp.eq.s32.totalorder %v5689_v28, %v4815_v32  ;;  %v2588_v23 = vsel %vm2505_vm0, %v4761_v9, 0.0 }
 0x2f4   : > { %v2291_v19 = vadd.f32 %v2227_v44, %v1918_v57  ;;  %v2590_v1 = vsel %vm2507_vm1, %v4761_v9, 0.0  ;;  %vm2868_vm5 = vcmp.eq.s32.totalorder %v5686_v48, %v4847_v4  ;;  %vm2870_vm2 = vcmp.eq.s32.totalorder %v5689_v28, %v4847_v4 }
 0x2f5   : > { %v2293_v59 = vadd.f32 %v2229_v53, %v1920_v14  ;;  %v2951_v29 = vsel %vm2868_vm5, %v4764_v39, 0.0  ;;  %v2953_v40 = vsel %vm2870_vm2, %v4764_v39, 0.0  ;;  %vm3229_vm8 = vcmp.eq.s32.totalorder %v5686_v48, %v4850_v31 }
 0x2f6   : > { %v2652_v42 = vadd.f32 %v2588_v23, %v2291_v19  ;;  %vm3231_vm4 = vcmp.eq.s32.totalorder %v5689_v28, %v4850_v31  ;;  %v3312_v2 = vsel %vm3229_vm8, %v4781_v60, 0.0  ;;  %vm656_vm14 = vcmp.eq.s32.totalorder %v5686_v48, %v4754_v58 }
 0x2f7   : > { %v2654_v62 = vadd.f32 %v2590_v1, %v2293_v59  ;;  %v3314_v63 = vsel %vm3231_vm4, %v4781_v60, 0.0  ;;  %vm658_vm13 = vcmp.eq.s32.totalorder %v5689_v28, %v4754_v58  ;;  %v739_v50 = vsel %vm656_vm14, %v4784_v37, 0.0 }
 0x2f8   : > { %v3015_v20 = vadd.f32 %v2951_v29, %v2652_v42  ;;  %v741_v13 = vsel %vm658_vm13, %v4784_v37, 0.0  ;;  %vm1027_vm6 = vcmp.eq.s32.totalorder %v5686_v48, %v4807_v18  ;;  %vm1029_vm7 = vcmp.eq.s32.totalorder %v5689_v28, %v4807_v18 }
 0x2f9   : > { %v3017_v8 = vadd.f32 %v2953_v40, %v2654_v62  ;;  %v1110_v41 = vsel %vm1027_vm6, %v4792_v15, 0.0  ;;  %v1112_v52 = vsel %vm1029_vm7, %v4792_v15, 0.0  ;;  %vm1406_vm10 = vcmp.eq.s32.totalorder %v5686_v48, %v4826_v35 }
 0x2fa   : > { %v3376_v25 = vadd.f32 %v3312_v2, %v3015_v20  ;;  %v1174_v21 = vadd.f32 %v1110_v41, %v739_v50  ;;  %v1176_v3 = vadd.f32 %v1112_v52, %v741_v13  ;;  %vm1408_vm12 = vcmp.eq.s32.totalorder %v5689_v28, %v4826_v35 }
 0x2fb   : > { %v3378_v26 = vadd.f32 %v3314_v63, %v3017_v8  ;;  %v1489_v49 = vsel %vm1406_vm10, %v4832_v38, 0.0  ;;  %v1491_v16 = vsel %vm1408_vm12, %v4832_v38, 0.0  ;;  %vm1770_vm11 = vcmp.eq.s32.totalorder %v5686_v48, %v4897_v55 }
 0x2fc   : > { %v1553_v54 = vadd.f32 %v1489_v49, %v1174_v21  ;;  %v1555_v22 = vadd.f32 %v1491_v16, %v1176_v3  ;;  %vm1772_vm9 = vcmp.eq.s32.totalorder %v5689_v28, %v4897_v55  ;;  %v1853_v51 = vsel %vm1770_vm11, %v4890_v5, 0.0 }
 0x2fd   : > { %v3860_v57 = vpack.c.bf16 %v3378_v26, %v3376_v25  ;;  %v1855_v44 = vsel %vm1772_vm9, %v4890_v5, 0.0  ;;  %vm2143_vm15 = vcmp.eq.s32.totalorder %v5686_v48, %v4904_v11  ;;  %vm2145_vm3 = vcmp.eq.s32.totalorder %v5689_v28, %v4904_v11 }
 0x2fe   : > { %v1917_v14 = vadd.f32 %v1853_v51, %v1553_v54  ;;  %v1919_v53 = vadd.f32 %v1855_v44, %v1555_v22  ;;  %v2226_v23 = vsel %vm2143_vm15, %v4907_v12, 0.0  ;;  %v2228_v19 = vsel %vm2145_vm3, %v4907_v12, 0.0 }
 0x2ff   : > { %3861 = vmatprep.subr.bf16.mxu0 %v3860_v57  ;;  %vm2504_vm0 = vcmp.eq.s32.totalorder %v5686_v48, %v4918_v10  ;;  %vm2506_vm1 = vcmp.eq.s32.totalorder %v5689_v28, %v4918_v10  ;;  %vm2867_vm5 = vcmp.eq.s32.totalorder %v5686_v48, %v4936_v61  ;;  %vm2869_vm2 = vcmp.eq.s32.totalorder %v5689_v28, %v4936_v61 }
 0x300   : > { %v2290_v1 = vadd.f32 %v2226_v23, %v1917_v14  ;;  %v2292_v59 = vadd.f32 %v2228_v19, %v1919_v53  ;;  %v2587_v29 = vsel %vm2504_vm0, %v4921_v47, 0.0  ;;  %v2589_v40 = vsel %vm2506_vm1, %v4921_v47, 0.0 }
 0x301   : > { %v2950_v42 = vsel %vm2867_vm5, %v4939_v46, 0.0  ;;  %v2952_v2 = vsel %vm2869_vm2, %v4939_v46, 0.0  ;;  %vm3228_vm8 = vcmp.eq.s32.totalorder %v5686_v48, %v4954_v33  ;;  %vm3230_vm4 = vcmp.eq.s32.totalorder %v5689_v28, %v4954_v33  ;;  %v3466_v28 = vld [vmem:[%s6623_s18 + $0x8] sm:$0xff] }
 0x302   : > { %v2651_v62 = vadd.f32 %v2587_v29, %v2290_v1  ;;  %v2653_v63 = vadd.f32 %v2589_v40, %v2292_v59  ;;  %v3311_v50 = vsel %vm3228_vm8, %v4957_v0, 0.0  ;;  %v3313_v20 = vsel %vm3230_vm4, %v4957_v0, 0.0  ;;  %3595 = vmatprep.mubr.f32.mxu0 %v3466_v28 }
 0x303   : > { %v5980_v13 = vadd.s32 176, %v4423_v27  ;;  %v5983_v8 = vadd.s32 184, %v4423_v27  ;;  %v5986_v41 = vadd.s32 192, %v4423_v27  ;;  %v5989_v48 = vadd.s32 200, %v4423_v27 }
 0x304   : > { %v3014_v52 = vadd.f32 %v2950_v42, %v2651_v62  ;;  %v3016_v25 = vadd.f32 %v2952_v2, %v2653_v63  ;;  %v5994_v21 = vadd.s32 208, %v4423_v27  ;;  %v5997_v3 = vadd.s32 216, %v4423_v27 }
 0x305   : > { %vm661_vm14 = vcmp.eq.s32.totalorder %v5980_v13, %v4482_v43  ;;  %vm663_vm13 = vcmp.eq.s32.totalorder %v5983_v8, %v4482_v43  ;;  %vm1032_vm6 = vcmp.eq.s32.totalorder %v5980_v13, %v4606_v34  ;;  %vm1034_vm7 = vcmp.eq.s32.totalorder %v5983_v8, %v4606_v34 }
 0x306   : > { %v3375_v26 = vadd.f32 %v3311_v50, %v3014_v52  ;;  %v3377_v49 = vadd.f32 %v3313_v20, %v3016_v25  ;;  %v744_v16 = vsel %vm661_vm14, %v4574_v17, 0.0  ;;  %v746_v54 = vsel %vm663_vm13, %v4574_v17, 0.0 }
 0x307   : > { %v1115_v22 = vsel %vm1032_vm6, %v4616_v36, 0.0  ;;  %v1117_v51 = vsel %vm1034_vm7, %v4616_v36, 0.0  ;;  %vm1411_vm10 = vcmp.eq.s32.totalorder %v5980_v13, %v4646_v56  ;;  %vm1413_vm12 = vcmp.eq.s32.totalorder %v5983_v8, %v4646_v56 }
 0x308   : > { %v3862_v57 = vpack.c.bf16 %v3377_v49, %v3375_v26  ;;  %v1179_v44 = vadd.f32 %v1115_v22, %v744_v16  ;;  %v1181_v14 = vadd.f32 %v1117_v51, %v746_v54  ;;  %v1494_v53 = vsel %vm1411_vm10, %v4656_v7, 0.0 }
 0x309   : > { %v1496_v23 = vsel %vm1413_vm12, %v4656_v7, 0.0  ;;  %vm1775_vm11 = vcmp.eq.s32.totalorder %v5980_v13, %v4689_v45  ;;  %vm1777_vm9 = vcmp.eq.s32.totalorder %v5983_v8, %v4689_v45  ;;  %vm2148_vm15 = vcmp.eq.s32.totalorder %v5980_v13, %v4812_v30 }
 0x30a   : > { %3863 = vmatpush1.bf16.msra.mxu0 %v3862_v57  ;;  %v1558_v19 = vadd.f32 %v1494_v53, %v1179_v44  ;;  %v1560_v1 = vadd.f32 %v1496_v23, %v1181_v14  ;;  %v1858_v59 = vsel %vm1775_vm11, %v4700_v24, 0.0  ;;  %v1860_v29 = vsel %vm1777_vm9, %v4700_v24, 0.0 }
 0x30b   : > { %vm2150_vm3 = vcmp.eq.s32.totalorder %v5983_v8, %v4812_v30  ;;  %v2231_v40 = vsel %vm2148_vm15, %v4738_v6, 0.0  ;;  %vm2509_vm0 = vcmp.eq.s32.totalorder %v5980_v13, %v4815_v32  ;;  %vm2511_vm1 = vcmp.eq.s32.totalorder %v5983_v8, %v4815_v32 }
 0x30c   : > { %v1922_v42 = vadd.f32 %v1858_v59, %v1558_v19  ;;  %v1924_v2 = vadd.f32 %v1860_v29, %v1560_v1  ;;  %v2233_v62 = vsel %vm2150_vm3, %v4738_v6, 0.0  ;;  %v2592_v63 = vsel %vm2509_vm0, %v4761_v9, 0.0 }
 0x30d   : > { %v2594_v50 = vsel %vm2511_vm1, %v4761_v9, 0.0  ;;  %vm2872_vm5 = vcmp.eq.s32.totalorder %v5980_v13, %v4847_v4  ;;  %vm2874_vm2 = vcmp.eq.s32.totalorder %v5983_v8, %v4847_v4  ;;  %vm3233_vm8 = vcmp.eq.s32.totalorder %v5980_v13, %v4850_v31 }
 0x30e   : > { %v2295_v20 = vadd.f32 %v2231_v40, %v1922_v42  ;;  %v2297_v28 = vadd.f32 %v2233_v62, %v1924_v2  ;;  %v2955_v52 = vsel %vm2872_vm5, %v4764_v39, 0.0  ;;  %v2957_v25 = vsel %vm2874_vm2, %v4764_v39, 0.0 }
 0x30f   : > { %vm3235_vm4 = vcmp.eq.s32.totalorder %v5983_v8, %v4850_v31  ;;  %v3316_v26 = vsel %vm3233_vm8, %v4781_v60, 0.0  ;;  %vm660_vm14 = vcmp.eq.s32.totalorder %v5980_v13, %v4754_v58  ;;  %vm662_vm13 = vcmp.eq.s32.totalorder %v5983_v8, %v4754_v58 }
 0x310   : > { %v2656_v49 = vadd.f32 %v2592_v63, %v2295_v20  ;;  %v2658_v16 = vadd.f32 %v2594_v50, %v2297_v28  ;;  %v3318_v54 = vsel %vm3235_vm4, %v4781_v60, 0.0  ;;  %v743_v22 = vsel %vm660_vm14, %v4784_v37, 0.0 }
 0x311   : > { %v745_v51 = vsel %vm662_vm13, %v4784_v37, 0.0  ;;  %vm1031_vm6 = vcmp.eq.s32.totalorder %v5980_v13, %v4807_v18  ;;  %vm1033_vm7 = vcmp.eq.s32.totalorder %v5983_v8, %v4807_v18  ;;  %vm1410_vm10 = vcmp.eq.s32.totalorder %v5980_v13, %v4826_v35 }
 0x312   : > { %v3019_v57 = vadd.f32 %v2955_v52, %v2656_v49  ;;  %v3021_v44 = vadd.f32 %v2957_v25, %v2658_v16  ;;  %v1114_v14 = vsel %vm1031_vm6, %v4792_v15, 0.0  ;;  %v1116_v53 = vsel %vm1033_vm7, %v4792_v15, 0.0 }
 0x313   : > { %v1178_v23 = vadd.f32 %v1114_v14, %v743_v22  ;;  %v1180_v19 = vadd.f32 %v1116_v53, %v745_v51  ;;  %vm1412_vm12 = vcmp.eq.s32.totalorder %v5983_v8, %v4826_v35  ;;  %v1493_v1 = vsel %vm1410_vm10, %v4832_v38, 0.0 }
 0x314   : > { %v3380_v59 = vadd.f32 %v3316_v26, %v3019_v57  ;;  %v3382_v29 = vadd.f32 %v3318_v54, %v3021_v44  ;;  %v1495_v40 = vsel %vm1412_vm12, %v4832_v38, 0.0  ;;  %vm1774_vm11 = vcmp.eq.s32.totalorder %v5980_v13, %v4897_v55 }
 0x315   : > { %v1557_v42 = vadd.f32 %v1493_v1, %v1178_v23  ;;  %v1559_v2 = vadd.f32 %v1495_v40, %v1180_v19  ;;  %vm1776_vm9 = vcmp.eq.s32.totalorder %v5983_v8, %v4897_v55  ;;  %v1857_v62 = vsel %vm1774_vm11, %v4890_v5, 0.0 }
 0x316   : > { %v3864_v63 = vpack.c.bf16 %v3382_v29, %v3380_v59  ;;  %v1859_v50 = vsel %vm1776_vm9, %v4890_v5, 0.0  ;;  %vm2147_vm15 = vcmp.eq.s32.totalorder %v5980_v13, %v4904_v11  ;;  %vm2149_vm3 = vcmp.eq.s32.totalorder %v5983_v8, %v4904_v11 }
 0x317   : > { %v1921_v20 = vadd.f32 %v1857_v62, %v1557_v42  ;;  %v1923_v28 = vadd.f32 %v1859_v50, %v1559_v2  ;;  %v2230_v52 = vsel %vm2147_vm15, %v4907_v12, 0.0  ;;  %v2232_v25 = vsel %vm2149_vm3, %v4907_v12, 0.0 }
 0x318   : > { %3865 = vmatprep.subr.bf16.mxu0 %v3864_v63  ;;  %vm2508_vm0 = vcmp.eq.s32.totalorder %v5980_v13, %v4918_v10  ;;  %vm2510_vm1 = vcmp.eq.s32.totalorder %v5983_v8, %v4918_v10  ;;  %vm2871_vm5 = vcmp.eq.s32.totalorder %v5980_v13, %v4936_v61  ;;  %vm2873_vm2 = vcmp.eq.s32.totalorder %v5983_v8, %v4936_v61 }
 0x319   : > { %v2294_v26 = vadd.f32 %v2230_v52, %v1921_v20  ;;  %v2296_v49 = vadd.f32 %v2232_v25, %v1923_v28  ;;  %v2591_v16 = vsel %vm2508_vm0, %v4921_v47, 0.0  ;;  %v2593_v54 = vsel %vm2510_vm1, %v4921_v47, 0.0 }
 0x31a   : > { %v2954_v22 = vsel %vm2871_vm5, %v4939_v46, 0.0  ;;  %v2956_v51 = vsel %vm2873_vm2, %v4939_v46, 0.0  ;;  %vm3232_vm8 = vcmp.eq.s32.totalorder %v5980_v13, %v4954_v33  ;;  %vm3234_vm4 = vcmp.eq.s32.totalorder %v5983_v8, %v4954_v33 }
 0x31b   : > { %v2655_v57 = vadd.f32 %v2591_v16, %v2294_v26  ;;  %v2657_v44 = vadd.f32 %v2593_v54, %v2296_v49  ;;  %v3315_v14 = vsel %vm3232_vm8, %v4957_v0, 0.0  ;;  %v3317_v53 = vsel %vm3234_vm4, %v4957_v0, 0.0 }
 0x31c   : > { %vm665_vm14 = vcmp.eq.s32.totalorder %v5986_v41, %v4482_v43  ;;  %vm667_vm13 = vcmp.eq.s32.totalorder %v5989_v48, %v4482_v43  ;;  %vm1036_vm6 = vcmp.eq.s32.totalorder %v5986_v41, %v4606_v34  ;;  %vm1038_vm7 = vcmp.eq.s32.totalorder %v5989_v48, %v4606_v34 }
 0x31d   : > { %v3018_v13 = vadd.f32 %v2954_v22, %v2655_v57  ;;  %v3020_v8 = vadd.f32 %v2956_v51, %v2657_v44  ;;  %v748_v23 = vsel %vm665_vm14, %v4574_v17, 0.0  ;;  %v750_v19 = vsel %vm667_vm13, %v4574_v17, 0.0 }
 0x31e   : > { %v1119_v1 = vsel %vm1036_vm6, %v4616_v36, 0.0  ;;  %v1121_v59 = vsel %vm1038_vm7, %v4616_v36, 0.0  ;;  %vm1415_vm10 = vcmp.eq.s32.totalorder %v5986_v41, %v4646_v56  ;;  %vm1417_vm12 = vcmp.eq.s32.totalorder %v5989_v48, %v4646_v56 }
 0x31f   : > { %v3379_v29 = vadd.f32 %v3315_v14, %v3018_v13  ;;  %v3381_v40 = vadd.f32 %v3317_v53, %v3020_v8  ;;  %v1183_v42 = vadd.f32 %v1119_v1, %v748_v23  ;;  %v1185_v2 = vadd.f32 %v1121_v59, %v750_v19 }
 0x320   : > { %v1498_v62 = vsel %vm1415_vm10, %v4656_v7, 0.0  ;;  %v1500_v63 = vsel %vm1417_vm12, %v4656_v7, 0.0  ;;  %vm1779_vm11 = vcmp.eq.s32.totalorder %v5986_v41, %v4689_v45  ;;  %vm1781_vm9 = vcmp.eq.s32.totalorder %v5989_v48, %v4689_v45 }
 0x321   : > { %v3866_v50 = vpack.c.bf16 %v3381_v40, %v3379_v29  ;;  %v1562_v20 = vadd.f32 %v1498_v62, %v1183_v42  ;;  %v1564_v28 = vadd.f32 %v1500_v63, %v1185_v2  ;;  %v1862_v52 = vsel %vm1779_vm11, %v4700_v24, 0.0 }
 0x322   : > { %v1864_v25 = vsel %vm1781_vm9, %v4700_v24, 0.0  ;;  %vm2152_vm15 = vcmp.eq.s32.totalorder %v5986_v41, %v4812_v30  ;;  %vm2154_vm3 = vcmp.eq.s32.totalorder %v5989_v48, %v4812_v30  ;;  %vm2513_vm0 = vcmp.eq.s32.totalorder %v5986_v41, %v4815_v32 }
 0x323   : > { %3867 = vmatpush1.bf16.msra.mxu0 %v3866_v50  ;;  %v1926_v26 = vadd.f32 %v1862_v52, %v1562_v20  ;;  %v1928_v49 = vadd.f32 %v1864_v25, %v1564_v28  ;;  %v2235_v16 = vsel %vm2152_vm15, %v4738_v6, 0.0  ;;  %v2237_v54 = vsel %vm2154_vm3, %v4738_v6, 0.0 }
 0x324   : > { %vm2515_vm1 = vcmp.eq.s32.totalorder %v5989_v48, %v4815_v32  ;;  %v2596_v22 = vsel %vm2513_vm0, %v4761_v9, 0.0  ;;  %vm2876_vm5 = vcmp.eq.s32.totalorder %v5986_v41, %v4847_v4  ;;  %vm2878_vm2 = vcmp.eq.s32.totalorder %v5989_v48, %v4847_v4 }
 0x325   : > { %v2299_v51 = vadd.f32 %v2235_v16, %v1926_v26  ;;  %v2301_v57 = vadd.f32 %v2237_v54, %v1928_v49  ;;  %v2598_v44 = vsel %vm2515_vm1, %v4761_v9, 0.0  ;;  %v2959_v14 = vsel %vm2876_vm5, %v4764_v39, 0.0 }
 0x326   : > { %v2961_v53 = vsel %vm2878_vm2, %v4764_v39, 0.0  ;;  %vm3237_vm8 = vcmp.eq.s32.totalorder %v5986_v41, %v4850_v31  ;;  %vm3239_vm4 = vcmp.eq.s32.totalorder %v5989_v48, %v4850_v31  ;;  %vm664_vm14 = vcmp.eq.s32.totalorder %v5986_v41, %v4754_v58 }
 0x327   : > { %v2660_v13 = vadd.f32 %v2596_v22, %v2299_v51  ;;  %v2662_v8 = vadd.f32 %v2598_v44, %v2301_v57  ;;  %v3320_v23 = vsel %vm3237_vm8, %v4781_v60, 0.0  ;;  %v3322_v19 = vsel %vm3239_vm4, %v4781_v60, 0.0 }
 0x328   : > { %vm666_vm13 = vcmp.eq.s32.totalorder %v5989_v48, %v4754_v58  ;;  %v747_v1 = vsel %vm664_vm14, %v4784_v37, 0.0  ;;  %vm1035_vm6 = vcmp.eq.s32.totalorder %v5986_v41, %v4807_v18  ;;  %vm1037_vm7 = vcmp.eq.s32.totalorder %v5989_v48, %v4807_v18 }
 0x329   : > { %v3023_v59 = vadd.f32 %v2959_v14, %v2660_v13  ;;  %v3025_v29 = vadd.f32 %v2961_v53, %v2662_v8  ;;  %v749_v40 = vsel %vm666_vm13, %v4784_v37, 0.0  ;;  %v1118_v42 = vsel %vm1035_vm6, %v4792_v15, 0.0 }
 0x32a   : > { %v1120_v2 = vsel %vm1037_vm7, %v4792_v15, 0.0  ;;  %v1182_v62 = vadd.f32 %v1118_v42, %v747_v1  ;;  %vm1414_vm10 = vcmp.eq.s32.totalorder %v5986_v41, %v4826_v35  ;;  %vm1416_vm12 = vcmp.eq.s32.totalorder %v5989_v48, %v4826_v35 }
 0x32b   : > { %v3384_v63 = vadd.f32 %v3320_v23, %v3023_v59  ;;  %v3386_v50 = vadd.f32 %v3322_v19, %v3025_v29  ;;  %v1184_v20 = vadd.f32 %v1120_v2, %v749_v40  ;;  %v1497_v28 = vsel %vm1414_vm10, %v4832_v38, 0.0 }
 0x32c   : > { %v1499_v52 = vsel %vm1416_vm12, %v4832_v38, 0.0  ;;  %v1561_v25 = vadd.f32 %v1497_v28, %v1182_v62  ;;  %vm1778_vm11 = vcmp.eq.s32.totalorder %v5986_v41, %v4897_v55  ;;  %vm1780_vm9 = vcmp.eq.s32.totalorder %v5989_v48, %v4897_v55 }
 0x32d   : > { %v3868_v26 = vpack.c.bf16 %v3386_v50, %v3384_v63  ;;  %v1563_v49 = vadd.f32 %v1499_v52, %v1184_v20  ;;  %v1861_v16 = vsel %vm1778_vm11, %v4890_v5, 0.0  ;;  %v1863_v54 = vsel %vm1780_vm9, %v4890_v5, 0.0 }
 0x32e   : > { %v1925_v22 = vadd.f32 %v1861_v16, %v1561_v25  ;;  %vm2151_vm15 = vcmp.eq.s32.totalorder %v5986_v41, %v4904_v11  ;;  %vm2153_vm3 = vcmp.eq.s32.totalorder %v5989_v48, %v4904_v11  ;;  %vm2512_vm0 = vcmp.eq.s32.totalorder %v5986_v41, %v4918_v10 }
 0x32f   : > { %3869 = vmatprep.subr.bf16.mxu0 %v3868_v26  ;;  %v1927_v51 = vadd.f32 %v1863_v54, %v1563_v49  ;;  %v2234_v57 = vsel %vm2151_vm15, %v4907_v12, 0.0  ;;  %v2236_v44 = vsel %vm2153_vm3, %v4907_v12, 0.0  ;;  %vm2514_vm1 = vcmp.eq.s32.totalorder %v5989_v48, %v4918_v10 }
 0x330   : > { %v2298_v14 = vadd.f32 %v2234_v57, %v1925_v22  ;;  %v2595_v53 = vsel %vm2512_vm0, %v4921_v47, 0.0  ;;  %v2597_v13 = vsel %vm2514_vm1, %v4921_v47, 0.0  ;;  %vm2875_vm5 = vcmp.eq.s32.totalorder %v5986_v41, %v4936_v61 }
 0x331   : > { %v2300_v8 = vadd.f32 %v2236_v44, %v1927_v51  ;;  %vm2877_vm2 = vcmp.eq.s32.totalorder %v5989_v48, %v4936_v61  ;;  %v2958_v23 = vsel %vm2875_vm5, %v4939_v46, 0.0  ;;  %vm3236_vm8 = vcmp.eq.s32.totalorder %v5986_v41, %v4954_v33 }
 0x332   : > { %v2659_v19 = vadd.f32 %v2595_v53, %v2298_v14  ;;  %v2960_v1 = vsel %vm2877_vm2, %v4939_v46, 0.0  ;;  %vm3238_vm4 = vcmp.eq.s32.totalorder %v5989_v48, %v4954_v33  ;;  %v3319_v59 = vsel %vm3236_vm8, %v4957_v0, 0.0 }
 0x333   : > { %v2661_v29 = vadd.f32 %v2597_v13, %v2300_v8  ;;  %v3321_v40 = vsel %vm3238_vm4, %v4957_v0, 0.0  ;;  %vm669_vm14 = vcmp.eq.s32.totalorder %v5994_v21, %v4482_v43  ;;  %vm671_vm13 = vcmp.eq.s32.totalorder %v5997_v3, %v4482_v43 }
 0x334   : > { %v3022_v42 = vadd.f32 %v2958_v23, %v2659_v19  ;;  %v752_v41 = vsel %vm669_vm14, %v4574_v17, 0.0  ;;  %v754_v2 = vsel %vm671_vm13, %v4574_v17, 0.0  ;;  %vm1040_vm6 = vcmp.eq.s32.totalorder %v5994_v21, %v4606_v34 }
 0x335   : > { %v3024_v48 = vadd.f32 %v2960_v1, %v2661_v29  ;;  %vm1042_vm7 = vcmp.eq.s32.totalorder %v5997_v3, %v4606_v34  ;;  %v1123_v62 = vsel %vm1040_vm6, %v4616_v36, 0.0  ;;  %vm1419_vm10 = vcmp.eq.s32.totalorder %v5994_v21, %v4646_v56 }
 0x336   : > { %v3383_v63 = vadd.f32 %v3319_v59, %v3022_v42  ;;  %v1125_v50 = vsel %vm1042_vm7, %v4616_v36, 0.0  ;;  %v1187_v20 = vadd.f32 %v1123_v62, %v752_v41  ;;  %vm1421_vm12 = vcmp.eq.s32.totalorder %v5997_v3, %v4646_v56 }
 0x337   : > { %v3385_v28 = vadd.f32 %v3321_v40, %v3024_v48  ;;  %v1189_v52 = vadd.f32 %v1125_v50, %v754_v2  ;;  %v1502_v25 = vsel %vm1419_vm10, %v4656_v7, 0.0  ;;  %v1504_v26 = vsel %vm1421_vm12, %v4656_v7, 0.0 }
 0x338   : > { %v1566_v49 = vadd.f32 %v1502_v25, %v1187_v20  ;;  %vm1783_vm11 = vcmp.eq.s32.totalorder %v5994_v21, %v4689_v45  ;;  %vm1785_vm9 = vcmp.eq.s32.totalorder %v5997_v3, %v4689_v45  ;;  %vm2156_vm15 = vcmp.eq.s32.totalorder %v5994_v21, %v4812_v30 }
 0x339   : > { %v3870_v16 = vpack.c.bf16 %v3385_v28, %v3383_v63  ;;  %v1568_v54 = vadd.f32 %v1504_v26, %v1189_v52  ;;  %v1866_v22 = vsel %vm1783_vm11, %v4700_v24, 0.0  ;;  %v1868_v51 = vsel %vm1785_vm9, %v4700_v24, 0.0 }
 0x33a   : > { %v1930_v57 = vadd.f32 %v1866_v22, %v1566_v49  ;;  %vm2158_vm3 = vcmp.eq.s32.totalorder %v5997_v3, %v4812_v30  ;;  %v2239_v44 = vsel %vm2156_vm15, %v4738_v6, 0.0  ;;  %vm2517_vm0 = vcmp.eq.s32.totalorder %v5994_v21, %v4815_v32 }
 0x33b   : > { %3871 = vmatpush1.bf16.msra.mxu0 %v3870_v16  ;;  %v1932_v14 = vadd.f32 %v1868_v51, %v1568_v54  ;;  %v2241_v53 = vsel %vm2158_vm3, %v4738_v6, 0.0  ;;  %vm2519_vm1 = vcmp.eq.s32.totalorder %v5997_v3, %v4815_v32  ;;  %v2600_v13 = vsel %vm2517_vm0, %v4761_v9, 0.0 }
 0x33c   : > { %v2303_v8 = vadd.f32 %v2239_v44, %v1930_v57  ;;  %v2602_v23 = vsel %vm2519_vm1, %v4761_v9, 0.0  ;;  %vm2880_vm5 = vcmp.eq.s32.totalorder %v5994_v21, %v4847_v4  ;;  %vm2882_vm2 = vcmp.eq.s32.totalorder %v5997_v3, %v4847_v4 }
 0x33d   : > { %v2305_v19 = vadd.f32 %v2241_v53, %v1932_v14  ;;  %v2963_v1 = vsel %vm2880_vm5, %v4764_v39, 0.0  ;;  %v2965_v59 = vsel %vm2882_vm2, %v4764_v39, 0.0  ;;  %vm3241_vm8 = vcmp.eq.s32.totalorder %v5994_v21, %v4850_v31 }
 0x33e   : > { %v2664_v29 = vadd.f32 %v2600_v13, %v2303_v8  ;;  %vm3243_vm4 = vcmp.eq.s32.totalorder %v5997_v3, %v4850_v31  ;;  %v3324_v40 = vsel %vm3241_vm8, %v4781_v60, 0.0  ;;  %vm668_vm14 = vcmp.eq.s32.totalorder %v5994_v21, %v4754_v58 }
 0x33f   : > { %v2666_v42 = vadd.f32 %v2602_v23, %v2305_v19  ;;  %v3326_v41 = vsel %vm3243_vm4, %v4781_v60, 0.0  ;;  %vm670_vm13 = vcmp.eq.s32.totalorder %v5997_v3, %v4754_v58  ;;  %v751_v2 = vsel %vm668_vm14, %v4784_v37, 0.0 }
 0x340   : > { %v3027_v48 = vadd.f32 %v2963_v1, %v2664_v29  ;;  %v753_v62 = vsel %vm670_vm13, %v4784_v37, 0.0  ;;  %vm1039_vm6 = vcmp.eq.s32.totalorder %v5994_v21, %v4807_v18  ;;  %vm1041_vm7 = vcmp.eq.s32.totalorder %v5997_v3, %v4807_v18 }
 0x341   : > { %v3029_v63 = vadd.f32 %v2965_v59, %v2666_v42  ;;  %v1122_v50 = vsel %vm1039_vm6, %v4792_v15, 0.0  ;;  %v1124_v20 = vsel %vm1041_vm7, %v4792_v15, 0.0  ;;  %vm1418_vm10 = vcmp.eq.s32.totalorder %v5994_v21, %v4826_v35 }
 0x342   : > { %v3388_v28 = vadd.f32 %v3324_v40, %v3027_v48  ;;  %v1186_v52 = vadd.f32 %v1122_v50, %v751_v2  ;;  %v1188_v25 = vadd.f32 %v1124_v20, %v753_v62  ;;  %vm1420_vm12 = vcmp.eq.s32.totalorder %v5997_v3, %v4826_v35 }
 0x343   : > { %v3390_v26 = vadd.f32 %v3326_v41, %v3029_v63  ;;  %v1501_v49 = vsel %vm1418_vm10, %v4832_v38, 0.0  ;;  %v1503_v16 = vsel %vm1420_vm12, %v4832_v38, 0.0  ;;  %vm1782_vm11 = vcmp.eq.s32.totalorder %v5994_v21, %v4897_v55 }
 0x344   : > { %v1565_v54 = vadd.f32 %v1501_v49, %v1186_v52  ;;  %v1567_v22 = vadd.f32 %v1503_v16, %v1188_v25  ;;  %vm1784_vm9 = vcmp.eq.s32.totalorder %v5997_v3, %v4897_v55  ;;  %v1865_v51 = vsel %vm1782_vm11, %v4890_v5, 0.0 }
 0x345   : > { %v3872_v57 = vpack.c.bf16 %v3390_v26, %v3388_v28  ;;  %v1867_v44 = vsel %vm1784_vm9, %v4890_v5, 0.0  ;;  %vm2155_vm15 = vcmp.eq.s32.totalorder %v5994_v21, %v4904_v11  ;;  %vm2157_vm3 = vcmp.eq.s32.totalorder %v5997_v3, %v4904_v11 }
 0x346   : > { %v1929_v14 = vadd.f32 %v1865_v51, %v1565_v54  ;;  %v1931_v53 = vadd.f32 %v1867_v44, %v1567_v22  ;;  %v2238_v13 = vsel %vm2155_vm15, %v4907_v12, 0.0  ;;  %v2240_v8 = vsel %vm2157_vm3, %v4907_v12, 0.0 }
 0x347   : > { %3873 = vmatprep.subr.bf16.mxu0 %v3872_v57  ;;  %vm2516_vm0 = vcmp.eq.s32.totalorder %v5994_v21, %v4918_v10  ;;  %vm2518_vm1 = vcmp.eq.s32.totalorder %v5997_v3, %v4918_v10  ;;  %vm2879_vm5 = vcmp.eq.s32.totalorder %v5994_v21, %v4936_v61  ;;  %vm2881_vm2 = vcmp.eq.s32.totalorder %v5997_v3, %v4936_v61 }
 0x348   : > { %v2302_v23 = vadd.f32 %v2238_v13, %v1929_v14  ;;  %v2304_v19 = vadd.f32 %v2240_v8, %v1931_v53  ;;  %v2599_v1 = vsel %vm2516_vm0, %v4921_v47, 0.0  ;;  %v2601_v59 = vsel %vm2518_vm1, %v4921_v47, 0.0 }
 0x349   : > { %v2962_v29 = vsel %vm2879_vm5, %v4939_v46, 0.0  ;;  %v2964_v40 = vsel %vm2881_vm2, %v4939_v46, 0.0  ;;  %vm3240_vm8 = vcmp.eq.s32.totalorder %v5994_v21, %v4954_v33  ;;  %vm3242_vm4 = vcmp.eq.s32.totalorder %v5997_v3, %v4954_v33 }
 0x34a   : > { %v2663_v42 = vadd.f32 %v2599_v1, %v2302_v23  ;;  %v2665_v41 = vadd.f32 %v2601_v59, %v2304_v19  ;;  %v3323_v2 = vsel %vm3240_vm8, %v4957_v0, 0.0  ;;  %v3325_v48 = vsel %vm3242_vm4, %v4957_v0, 0.0 }
 0x34b   : > { %v6288_v62 = vadd.s32 224, %v4423_v27  ;;  %v6291_v63 = vadd.s32 232, %v4423_v27  ;;  %v6294_v28 = vadd.s32 240, %v4423_v27  ;;  %v6297_v21 = vadd.s32 248, %v4423_v27 }
 0x34c   : > { %v3026_v50 = vadd.f32 %v2962_v29, %v2663_v42  ;;  %v3028_v20 = vadd.f32 %v2964_v40, %v2665_v41 }
 0x34d   : > { %vm673_vm14 = vcmp.eq.s32.totalorder %v6288_v62, %v4482_v43  ;;  %vm675_vm13 = vcmp.eq.s32.totalorder %v6291_v63, %v4482_v43  ;;  %vm1044_vm6 = vcmp.eq.s32.totalorder %v6288_v62, %v4606_v34  ;;  %vm1046_vm7 = vcmp.eq.s32.totalorder %v6291_v63, %v4606_v34 }
 0x34e   : > { %v3387_v3 = vadd.f32 %v3323_v2, %v3026_v50  ;;  %v3389_v52 = vadd.f32 %v3325_v48, %v3028_v20  ;;  %v756_v25 = vsel %vm673_vm14, %v4574_v17, 0.0  ;;  %v758_v26 = vsel %vm675_vm13, %v4574_v17, 0.0 }
 0x34f   : > { %v1127_v27 = vsel %vm1044_vm6, %v4616_v36, 0.0  ;;  %v1129_v49 = vsel %vm1046_vm7, %v4616_v36, 0.0  ;;  %vm1423_vm10 = vcmp.eq.s32.totalorder %v6288_v62, %v4646_v56  ;;  %vm1425_vm12 = vcmp.eq.s32.totalorder %v6291_v63, %v4646_v56 }
 0x350   : > { %v3874_v16 = vpack.c.bf16 %v3389_v52, %v3387_v3  ;;  %v1191_v54 = vadd.f32 %v1127_v27, %v756_v25  ;;  %v1193_v22 = vadd.f32 %v1129_v49, %v758_v26  ;;  %v1506_v51 = vsel %vm1423_vm10, %v4656_v7, 0.0 }
 0x351   : > { %v1508_v57 = vsel %vm1425_vm12, %v4656_v7, 0.0  ;;  %vm1787_vm11 = vcmp.eq.s32.totalorder %v6288_v62, %v4689_v45  ;;  %vm1789_vm9 = vcmp.eq.s32.totalorder %v6291_v63, %v4689_v45  ;;  %vm2160_vm15 = vcmp.eq.s32.totalorder %v6288_v62, %v4812_v30 }
 0x352   : > { %3875 = vmatpush1.bf16.msra.mxu0 %v3874_v16  ;;  %v1570_v44 = vadd.f32 %v1506_v51, %v1191_v54  ;;  %v1572_v14 = vadd.f32 %v1508_v57, %v1193_v22  ;;  %v1870_v53 = vsel %vm1787_vm11, %v4700_v24, 0.0  ;;  %v1872_v13 = vsel %vm1789_vm9, %v4700_v24, 0.0 }
 0x353   : > { %vm2162_vm3 = vcmp.eq.s32.totalorder %v6291_v63, %v4812_v30  ;;  %v2243_v8 = vsel %vm2160_vm15, %v4738_v6, 0.0  ;;  %vm2521_vm0 = vcmp.eq.s32.totalorder %v6288_v62, %v4815_v32  ;;  %vm2523_vm1 = vcmp.eq.s32.totalorder %v6291_v63, %v4815_v32 }
 0x354   : > { %v1934_v23 = vadd.f32 %v1870_v53, %v1570_v44  ;;  %v1936_v19 = vadd.f32 %v1872_v13, %v1572_v14  ;;  %v2245_v1 = vsel %vm2162_vm3, %v4738_v6, 0.0  ;;  %v2604_v59 = vsel %vm2521_vm0, %v4761_v9, 0.0 }
 0x355   : > { %v2606_v29 = vsel %vm2523_vm1, %v4761_v9, 0.0  ;;  %vm2884_vm5 = vcmp.eq.s32.totalorder %v6288_v62, %v4847_v4  ;;  %vm2886_vm2 = vcmp.eq.s32.totalorder %v6291_v63, %v4847_v4  ;;  %vm3245_vm8 = vcmp.eq.s32.totalorder %v6288_v62, %v4850_v31 }
 0x356   : > { %v2307_v40 = vadd.f32 %v2243_v8, %v1934_v23  ;;  %v2309_v42 = vadd.f32 %v2245_v1, %v1936_v19  ;;  %v2967_v41 = vsel %vm2884_vm5, %v4764_v39, 0.0  ;;  %v2969_v2 = vsel %vm2886_vm2, %v4764_v39, 0.0 }
 0x357   : > { %vm3247_vm4 = vcmp.eq.s32.totalorder %v6291_v63, %v4850_v31  ;;  %v3328_v48 = vsel %vm3245_vm8, %v4781_v60, 0.0  ;;  %vm672_vm14 = vcmp.eq.s32.totalorder %v6288_v62, %v4754_v58  ;;  %vm674_vm13 = vcmp.eq.s32.totalorder %v6291_v63, %v4754_v58 }
 0x358   : > { %v2668_v50 = vadd.f32 %v2604_v59, %v2307_v40  ;;  %v2670_v20 = vadd.f32 %v2606_v29, %v2309_v42  ;;  %v3330_v3 = vsel %vm3247_vm4, %v4781_v60, 0.0  ;;  %v755_v52 = vsel %vm672_vm14, %v4784_v37, 0.0 }
 0x359   : > { %v757_v25 = vsel %vm674_vm13, %v4784_v37, 0.0  ;;  %vm1043_vm6 = vcmp.eq.s32.totalorder %v6288_v62, %v4807_v18  ;;  %vm1045_vm7 = vcmp.eq.s32.totalorder %v6291_v63, %v4807_v18  ;;  %vm1422_vm10 = vcmp.eq.s32.totalorder %v6288_v62, %v4826_v35 }
 0x35a   : > { %v3031_v26 = vadd.f32 %v2967_v41, %v2668_v50  ;;  %v3033_v27 = vadd.f32 %v2969_v2, %v2670_v20  ;;  %v1126_v49 = vsel %vm1043_vm6, %v4792_v15, 0.0  ;;  %v1128_v16 = vsel %vm1045_vm7, %v4792_v15, 0.0 }
 0x35b   : > { %v1190_v54 = vadd.f32 %v1126_v49, %v755_v52  ;;  %v1192_v22 = vadd.f32 %v1128_v16, %v757_v25  ;;  %vm1424_vm12 = vcmp.eq.s32.totalorder %v6291_v63, %v4826_v35  ;;  %v1505_v51 = vsel %vm1422_vm10, %v4832_v38, 0.0 }
 0x35c   : > { %v3392_v57 = vadd.f32 %v3328_v48, %v3031_v26  ;;  %v3394_v44 = vadd.f32 %v3330_v3, %v3033_v27  ;;  %v1507_v14 = vsel %vm1424_vm12, %v4832_v38, 0.0  ;;  %vm1786_vm11 = vcmp.eq.s32.totalorder %v6288_v62, %v4897_v55 }
 0x35d   : > { %v1569_v53 = vadd.f32 %v1505_v51, %v1190_v54  ;;  %v1571_v13 = vadd.f32 %v1507_v14, %v1192_v22  ;;  %vm1788_vm9 = vcmp.eq.s32.totalorder %v6291_v63, %v4897_v55  ;;  %v1869_v8 = vsel %vm1786_vm11, %v4890_v5, 0.0 }
 0x35e   : > { %v3876_v23 = vpack.c.bf16 %v3394_v44, %v3392_v57  ;;  %v1871_v19 = vsel %vm1788_vm9, %v4890_v5, 0.0  ;;  %vm2159_vm15 = vcmp.eq.s32.totalorder %v6288_v62, %v4904_v11  ;;  %vm2161_vm3 = vcmp.eq.s32.totalorder %v6291_v63, %v4904_v11 }
 0x35f   : > { %v1933_v1 = vadd.f32 %v1869_v8, %v1569_v53  ;;  %v1935_v59 = vadd.f32 %v1871_v19, %v1571_v13  ;;  %v2242_v29 = vsel %vm2159_vm15, %v4907_v12, 0.0  ;;  %v2244_v40 = vsel %vm2161_vm3, %v4907_v12, 0.0 }
 0x360   : > { %3877 = vmatprep.subr.bf16.mxu0 %v3876_v23  ;;  %vm2520_vm0 = vcmp.eq.s32.totalorder %v6288_v62, %v4918_v10  ;;  %vm2522_vm1 = vcmp.eq.s32.totalorder %v6291_v63, %v4918_v10  ;;  %vm2883_vm5 = vcmp.eq.s32.totalorder %v6288_v62, %v4936_v61  ;;  %vm2885_vm2 = vcmp.eq.s32.totalorder %v6291_v63, %v4936_v61 }
 0x361   : > { %v2306_v42 = vadd.f32 %v2242_v29, %v1933_v1  ;;  %v2308_v41 = vadd.f32 %v2244_v40, %v1935_v59  ;;  %v2603_v2 = vsel %vm2520_vm0, %v4921_v47, 0.0  ;;  %v2605_v48 = vsel %vm2522_vm1, %v4921_v47, 0.0 }
 0x362   : > { %v2966_v50 = vsel %vm2883_vm5, %v4939_v46, 0.0  ;;  %v2968_v20 = vsel %vm2885_vm2, %v4939_v46, 0.0  ;;  %vm3244_vm8 = vcmp.eq.s32.totalorder %v6288_v62, %v4954_v33  ;;  %vm3246_vm4 = vcmp.eq.s32.totalorder %v6291_v63, %v4954_v33 }
 0x363   : > { %v2667_v3 = vadd.f32 %v2603_v2, %v2306_v42  ;;  %v2669_v52 = vadd.f32 %v2605_v48, %v2308_v41  ;;  %v3327_v25 = vsel %vm3244_vm8, %v4957_v0, 0.0  ;;  %v3329_v26 = vsel %vm3246_vm4, %v4957_v0, 0.0 }
 0x364   : > { %vm677_vm14 = vcmp.eq.s32.totalorder %v6294_v28, %v4482_v43  ;;  %vm679_vm13 = vcmp.eq.s32.totalorder %v6297_v21, %v4482_v43  ;;  %vm1048_vm6 = vcmp.eq.s32.totalorder %v6294_v28, %v4606_v34  ;;  %vm1050_vm7 = vcmp.eq.s32.totalorder %v6297_v21, %v4606_v34 }
 0x365   : > { %v3030_v62 = vadd.f32 %v2966_v50, %v2667_v3  ;;  %v3032_v63 = vadd.f32 %v2968_v20, %v2669_v52  ;;  %v760_v27 = vsel %vm677_vm14, %v4574_v17, 0.0  ;;  %v762_v49 = vsel %vm679_vm13, %v4574_v17, 0.0 }
 0x366   : > { %v1131_v16 = vsel %vm1048_vm6, %v4616_v36, 0.0  ;;  %v1133_v54 = vsel %vm1050_vm7, %v4616_v36, 0.0  ;;  %vm1427_vm10 = vcmp.eq.s32.totalorder %v6294_v28, %v4646_v56  ;;  %vm1429_vm12 = vcmp.eq.s32.totalorder %v6297_v21, %v4646_v56 }
 0x367   : > { %v3391_v43 = vadd.f32 %v3327_v25, %v3030_v62  ;;  %v3393_v22 = vadd.f32 %v3329_v26, %v3032_v63  ;;  %v1195_v51 = vadd.f32 %v1131_v16, %v760_v27  ;;  %v1197_v34 = vadd.f32 %v1133_v54, %v762_v49 }
 0x368   : > { %v1510_v57 = vsel %vm1427_vm10, %v4656_v7, 0.0  ;;  %v1512_v44 = vsel %vm1429_vm12, %v4656_v7, 0.0  ;;  %vm1791_vm11 = vcmp.eq.s32.totalorder %v6294_v28, %v4689_v45  ;;  %vm1793_vm9 = vcmp.eq.s32.totalorder %v6297_v21, %v4689_v45 }
 0x369   : > { %v3878_v17 = vpack.c.bf16 %v3393_v22, %v3391_v43  ;;  %v1574_v36 = vadd.f32 %v1510_v57, %v1195_v51  ;;  %v1576_v14 = vadd.f32 %v1512_v44, %v1197_v34  ;;  %v1874_v53 = vsel %vm1791_vm11, %v4700_v24, 0.0  ;;  %v3464_v51 = vld [vmem:[%s4415_s4 + $0x8] sm:$0xff] }
 0x36a   : > { %v1876_v56 = vsel %vm1793_vm9, %v4700_v24, 0.0  ;;  %vm2164_vm15 = vcmp.eq.s32.totalorder %v6294_v28, %v4812_v30  ;;  %vm2166_vm3 = vcmp.eq.s32.totalorder %v6297_v21, %v4812_v30  ;;  %vm2525_vm0 = vcmp.eq.s32.totalorder %v6294_v28, %v4815_v32 }
 0x36b   : > { %3879 = vmatpush1.bf16.msra.mxu0 %v3878_v17  ;;  %v1938_v7 = vadd.f32 %v1874_v53, %v1574_v36  ;;  %v1940_v13 = vadd.f32 %v1876_v56, %v1576_v14  ;;  %v2247_v45 = vsel %vm2164_vm15, %v4738_v6, 0.0  ;;  %v2249_v8 = vsel %vm2166_vm3, %v4738_v6, 0.0 }
 0x36c   : > { %vm2527_vm1 = vcmp.eq.s32.totalorder %v6297_v21, %v4815_v32  ;;  %v2608_v24 = vsel %vm2525_vm0, %v4761_v9, 0.0  ;;  %vm2888_vm5 = vcmp.eq.s32.totalorder %v6294_v28, %v4847_v4  ;;  %vm2890_vm2 = vcmp.eq.s32.totalorder %v6297_v21, %v4847_v4 }
 0x36d   : > { %v2311_v30 = vadd.f32 %v2247_v45, %v1938_v7  ;;  %v2313_v23 = vadd.f32 %v2249_v8, %v1940_v13  ;;  %v2610_v19 = vsel %vm2527_vm1, %v4761_v9, 0.0  ;;  %v2971_v1 = vsel %vm2888_vm5, %v4764_v39, 0.0 }
 0x36e   : > { %v2973_v59 = vsel %vm2890_vm2, %v4764_v39, 0.0  ;;  %vm3249_vm8 = vcmp.eq.s32.totalorder %v6294_v28, %v4850_v31  ;;  %vm3251_vm4 = vcmp.eq.s32.totalorder %v6297_v21, %v4850_v31  ;;  %vm676_vm14 = vcmp.eq.s32.totalorder %v6294_v28, %v4754_v58 }
 0x36f   : > { %v2672_v6 = vadd.f32 %v2608_v24, %v2311_v30  ;;  %v2674_v32 = vadd.f32 %v2610_v19, %v2313_v23  ;;  %v3332_v4 = vsel %vm3249_vm8, %v4781_v60, 0.0  ;;  %v3334_v29 = vsel %vm3251_vm4, %v4781_v60, 0.0 }
 0x370   : > { %vm678_vm13 = vcmp.eq.s32.totalorder %v6297_v21, %v4754_v58  ;;  %v759_v9 = vsel %vm676_vm14, %v4784_v37, 0.0  ;;  %vm1047_vm6 = vcmp.eq.s32.totalorder %v6294_v28, %v4807_v18  ;;  %vm1049_vm7 = vcmp.eq.s32.totalorder %v6297_v21, %v4807_v18 }
 0x371   : > { %v3035_v39 = vadd.f32 %v2971_v1, %v2672_v6  ;;  %v3037_v31 = vadd.f32 %v2973_v59, %v2674_v32  ;;  %v761_v40 = vsel %vm678_vm13, %v4784_v37, 0.0  ;;  %v1130_v42 = vsel %vm1047_vm6, %v4792_v15, 0.0 }
 0x372   : > { %v1132_v41 = vsel %vm1049_vm7, %v4792_v15, 0.0  ;;  %v1194_v60 = vadd.f32 %v1130_v42, %v759_v9  ;;  %vm1426_vm10 = vcmp.eq.s32.totalorder %v6294_v28, %v4826_v35  ;;  %vm1428_vm12 = vcmp.eq.s32.totalorder %v6297_v21, %v4826_v35 }
 0x373   : > { %v3396_v58 = vadd.f32 %v3332_v4, %v3035_v39  ;;  %v3398_v2 = vadd.f32 %v3334_v29, %v3037_v31  ;;  %v1196_v48 = vadd.f32 %v1132_v41, %v761_v40  ;;  %v1509_v18 = vsel %vm1426_vm10, %v4832_v38, 0.0 }
 0x374   : > { %v1511_v50 = vsel %vm1428_vm12, %v4832_v38, 0.0  ;;  %v1573_v20 = vadd.f32 %v1509_v18, %v1194_v60  ;;  %vm1790_vm11 = vcmp.eq.s32.totalorder %v6294_v28, %v4897_v55  ;;  %vm1792_vm9 = vcmp.eq.s32.totalorder %v6297_v21, %v4897_v55 }
 0x375   : > { %v3880_v37 = vpack.c.bf16 %v3398_v2, %v3396_v58  ;;  %v1575_v15 = vadd.f32 %v1511_v50, %v1196_v48  ;;  %v1873_v3 = vsel %vm1790_vm11, %v4890_v5, 0.0  ;;  %v1875_v35 = vsel %vm1792_vm9, %v4890_v5, 0.0 }
 0x376   : > { %v1937_v52 = vadd.f32 %v1873_v3, %v1573_v20  ;;  %vm2163_vm15 = vcmp.eq.s32.totalorder %v6294_v28, %v4904_v11  ;;  %vm2165_vm3 = vcmp.eq.s32.totalorder %v6297_v21, %v4904_v11  ;;  %vm2524_vm0 = vcmp.eq.s32.totalorder %v6294_v28, %v4918_v10 }
 0x377   : > { %3881 = vmatprep.subr.bf16.mxu0 %v3880_v37  ;;  %v1939_v38 = vadd.f32 %v1875_v35, %v1575_v15  ;;  %v2246_v55 = vsel %vm2163_vm15, %v4907_v12, 0.0  ;;  %v2248_v25 = vsel %vm2165_vm3, %v4907_v12, 0.0  ;;  %vm2526_vm1 = vcmp.eq.s32.totalorder %v6297_v21, %v4918_v10 }
 0x378   : > { %v2310_v5 = vadd.f32 %v2246_v55, %v1937_v52  ;;  %v2607_v26 = vsel %vm2524_vm0, %v4921_v47, 0.0  ;;  %v2609_v62 = vsel %vm2526_vm1, %v4921_v47, 0.0  ;;  %vm2887_vm5 = vcmp.eq.s32.totalorder %v6294_v28, %v4936_v61 }
 0x379   : > { %v2312_v11 = vadd.f32 %v2248_v25, %v1939_v38  ;;  %vm2889_vm2 = vcmp.eq.s32.totalorder %v6297_v21, %v4936_v61  ;;  %v2970_v63 = vsel %vm2887_vm5, %v4939_v46, 0.0  ;;  %vm3248_vm8 = vcmp.eq.s32.totalorder %v6294_v28, %v4954_v33  ;;  %v3465_v28 = vld [vmem:[%s6624_s6] sm:$0xff] }
 0x37a   : > { %v2671_v12 = vadd.f32 %v2607_v26, %v2310_v5  ;;  %v2972_v10 = vsel %vm2889_vm2, %v4939_v46, 0.0  ;;  %vm3250_vm4 = vcmp.eq.s32.totalorder %v6297_v21, %v4954_v33  ;;  %v3331_v27 = vsel %vm3248_vm8, %v4957_v0, 0.0  ;;  %v3463_v46 = vld [vmem:[%s4415_s4] sm:$0xff] }
 0x37b   : > { %v2673_v47 = vadd.f32 %v2609_v62, %v2312_v11  ;;  %v3333_v61 = vsel %vm3250_vm4, %v4957_v0, 0.0 }
 0x37c   : > { %v3034_v49 = vadd.f32 %v2970_v63, %v2671_v12 }
 0x37d   : > { %v3036_v16 = vadd.f32 %v2972_v10, %v2673_v47 }
 0x37e   : > { %v3395_v54 = vadd.f32 %v3331_v27, %v3034_v49 }
 0x37f   : > { %v3397_v43 = vadd.f32 %v3333_v61, %v3036_v16 }
 0x381   : > { %v3882_v22 = vpack.c.bf16 %v3397_v43, %v3395_v54 }
 0x383   : > { %3883 = vmatpush1.bf16.msra.mxu0 %v3882_v22 }
 0x386   : > { %3596 = vmatmul.mubr.f32.vlgmr.msra.gmra.mrb[0].mxu0 %v3465_v28 }
 0x459   : > { %v3597_v34 = vpop.f32.mrb[0].mxu0 }
 0x45a   : > { %v3602_v33 = vadd.f32 %v3597_v34, %v3463_v46  ;;  %v3599_v21 = vpop.f32.mrb[1].mxu0 }
 0x45b   : > { %v3603_v57 = vadd.f32 %v3599_v21, %v3464_v51 }
 0x45c   : > { %3604 = vst [vmem:[%s4415_s4] sm:$0xff] %v3602_v33 }
 0x45d   : > { %3605 = vst [vmem:[%s4415_s4 + $0x8] sm:$0xff] %v3603_v57 }
 0x45e PF: > { %s3816_s30 = sshll.u32 %s4163_s20, 2  ;;  %s3632_s29 = sshll.u32 %s4415_s4, 4  ;;  %s6500_s29 = int_to_ptr.vmem [resolvable:$true] %s3632_s29 }
 0x45f   : > { %s3628_s28 = sadd.s32 %s3816_s30, %s4377_s7  ;;  %s3607_s12 = scalar_lea.sflag [#allocation5], %s238_s15 }
 0x460   : > { %s3817_s5 = sshll.u32 %s3628_s28, 7  ;;  %s4041_s10 = scalar_lea.vmem %s6500_s29, 256 }
 0x461   : > { %s3630_s8 = scalar_lea.hbm %s6574_s2, %s3817_s5  ;;  %p4042_p9 = scmp.ne.s32.totalorder %s6500_s29, %s4041_s10 }
 0x462   : > { %p6625_p10 = scmp.ne.s32.totalorder %s6589_s9, 0  ;;  %s4185_s20 = smov [#allocation6]  }
 0x463   : > { %s4045_s7 = sshll.u32 %s4185_s20, 4  ;;  %s4046_s7 = int_to_ptr.vmem [resolvable:$false] %s4045_s7 }
 0x464   : > { %p4043_p13 = pnand %p4042_p9, %p6625_p10  ;;  %s4047_s4 = scalar_lea.vmem %s4046_s7, 512 }
 0x465   : > { %p4048_p1 = scmp.lt.s32.totalorder %s6500_s29, %s4046_s7  ;;  %p4049_p6 = scmp.lt.s32.totalorder %s4047_s4, %s4041_s10 }
 0x466   : > { %p4044_p0 = pneg %p4043_p13 }
 0x467   : > { %p4050_p8 = por %p4049_p6, %p4048_p1 }
 0x469   : > { %p4051_p5 = pnand %p4050_p8, %p4044_p0 }
 0x46b   : > { %4054 = shalt.err (!%p4051_p5)
}
 0x46c   : > { %s4055_s22 = scalar_lea.hbm %s3630_s8, 256  ;;  %s4059_s18 = scalar_lea.hbm %s6574_s2, 1024 }
 0x46d   : > { %p4056_p11 = scmp.ne.s32.totalorder %s3630_s8, %s4055_s22  ;;  %p4060_p4 = scmp.lt.u32.totalorder %s3630_s8, %s6574_s2 }
 0x46e   : > { %p4061_p12 = scmp.lt.u32.totalorder %s4059_s18, %s4055_s22  ;;  %p4063_p9 = scmp.lt.u32.totalorder %s4055_s22, %s3630_s8 }
 0x46f   : > { %p4057_p2 = pnand %p4056_p11, %p6625_p10 }
 0x470   : > { %p4062_p3 = por %p4061_p12, %p4060_p4 }
 0x471   : > { %p4058_p7 = pneg %p4057_p2 }
 0x472   : > { %p4064_p13 = por %p4063_p9, %p4062_p3 }
 0x474   : > { %p4065_p0 = pnand %p4064_p13, %p4058_p7 }
 0x476   : > { %4068 = shalt.err (!%p4065_p0)
}
 0x477   : > { %3892 = dma.vmem_to_hbm [thread:$0]  (%p6625_p10), %s6500_s29, 256, %s3630_s8, %s3607_s12  }
 0x478 PF: > { %s6626_s28 = sld [smem:[#allocation9_spill]]  ;;  %p3903_p1 = scmp.ge.s32.totalorder %s4179_s24, 2 }
 0x479   : > { %p6627_p6 = scmp.ne.s32.totalorder %s6590_s25, 0 }
 0x47b   : > { %p3899_p8 = pnand %p3903_p1, %p6627_p6 }
 0x47e   : > { %s3648_s5 = sand.u32 1, %s6626_s28  }
 0x47f   : > { %s3649_s26 = scalar_lea.sflag [#allocation5], %s3648_s5 }
 0x480   : > { %4126 = dma.done.wait (!%p3899_p8), %s3649_s26, 256  }
 0x481   : > { %4128 = vsyncadd (!%p3899_p8), %s3649_s26, 4294967040  ;;  %s20_s24 = sadd.s32 1, %s4179_s24   ;;  %s6629_s9 = sld [smem:[#allocation14_spill]] }
 0x482   : > { %p6528_p5 = scmp.ge.s32.totalorder %s20_s24, 10   ;;  %s6630_s29 = sld [smem:[#allocation10_spill]] }
 0x483   : > { %s6631_s25 = sld [smem:[#allocation11_spill]]  ;;  %s6632_s22 = sld [smem:[#allocation12_spill]] }
 0x484   : > { %s6633_s8 = sld [smem:[#allocation13_spill]]  ;;  %s6635_s12 = smov %s4135_s13 }
 0x485   : > { %s6636_s13 = smov %s4139_s14  ;;  %s6637_s14 = smov %s4318_s27 }
 0x486   : > { %s6638_s15 = smov %s4147_s16  ;;  %s6639_s16 = smov %s4151_s17 }
 0x487   : > { %s6640_s17 = smov %s6629_s9  ;;  %s6641_s18 = smov %s4167_s21 }
 0x488   : > { %s6642_s19 = smov %s6630_s29  ;;  %s6643_s20 = smov %s4175_s23 }
 0x489   : > { %s6644_s21 = smov %s6631_s25  ;;  %19 = sbr.rel (!%p6528_p5) target bundleno = 10 (0xa), region = 98 }
 0x48a   : > { %s6645_s23 = smov %s6633_s8 }
 0x490   :  { %3666 = vsyncpa [#allocation4], 1 }
 0x491   :  { %3668 = vsyncpa [#allocation4 + $0x1], 1 }
 0x492   :  { %3669 = vsyncpa [#allocation5], 1 }
 0x493   :  { %3671 = vsyncpa [#allocation5 + $0x1], 1 }

</bundles_post_ra>
